<compile_context>
chip_gen: v5e
topology: v5e:2x2
jax: 0.10.0
libtpu: 0.0.40
codegen_flags: <defaults>
</compile_context>

<pallas_src>
import jax
import jax.numpy as jnp
import numpy as np
from jax.experimental import pallas as pl
from jax.experimental.pallas import tpu as pltpu  # noqa: F401  (kept per template)

# ----------------------------- problem sizes -----------------------------
B = 2           # batch_size
N = 8           # n_nodes
F = 32          # node_feature_dim
H = 32          # EGNN hidden dim
DC = 3          # coordinate dim
HEAD1, HEAD2 = 128, 64
OUT = 8         # output_dim
OUT_PAD = 128   # lane-dense output block width (sliced to OUT in the wrapper)

BN = B * N
BNN = B * N * N

assert F == H, "sublane-packing of [w2; nb; nw2] assumes F == H"


def _silu(x):
    return x * (1.0 / (1.0 + jnp.exp(-x)))


# ------------------------------- kernel ----------------------------------
def egnn_regression_kernel(h1_ref, x1_ref, h2_ref, x2_ref, sel_ref,
                           w_in_ref, w_mid_ref, bias_ref,
                           fw1_ref, fb1_ref, fw2_ref, fb2_ref, fw3_ref, fb3_ref,
                           out_ref):
    # Constant 0/1 selection matrices (block-diagonal per graph, incl. self loops):
    #   ri[r, q] = 1 iff q is the destination node of edge r
    #   rj[r, q] = 1 iff q is the source node of edge r
    ri = sel_ref[0]            # (BNN, BN)
    rj = sel_ref[1]            # (BNN, BN)

    def egnn_layer(h, xf, l):
        # ---- unpack packed parameter slabs with static (free) slices ----
        w_in = w_in_ref[l]     # (3F, H) = [wa; wb; na]
        wa, wb, na = w_in[0:F], w_in[F:2 * F], w_in[2 * F:3 * F]
        w_mid = w_mid_ref[l]   # (3H, H) = [w2; nb; nw2]
        w2, nb, nw2 = w_mid[0:H], w_mid[H:2 * H], w_mid[2 * H:3 * H]
        bv = bias_ref[l]       # (5, H)  = [wd; b1; b2; nb1; nb2]
        wd, b1, b2, nb1, nb2 = bv[0:1], bv[1:2], bv[2:3], bv[3:4], bv[4:5]

        # ---- node projections (one matmul each over the whole folded batch) ----
        hi = jnp.dot(h, wa, preferred_element_type=jnp.float32)      # (BN, H)
        hj = jnp.dot(h, wb, preferred_element_type=jnp.float32)      # (BN, H)

        # ---- one batched edge computation over all B*N*N intra-graph edges ----
        hi_e = jnp.dot(ri, hi, preferred_element_type=jnp.float32)   # (BNN, H)
        hj_e = jnp.dot(rj, hj, preferred_element_type=jnp.float32)   # (BNN, H)
        xi_e = jnp.dot(ri, xf, preferred_element_type=jnp.float32)   # (BNN, DC)
        xj_e = jnp.dot(rj, xf, preferred_element_type=jnp.float32)   # (BNN, DC)
        d = xi_e - xj_e
        d2 = jnp.sum(d * d, axis=-1, keepdims=True)                  # (BNN, 1)

        m = _silu(hi_e + hj_e + d2 * wd + b1)                        # (BNN, H)
        m = _silu(jnp.dot(m, w2, preferred_element_type=jnp.float32) + b2)
        agg = jnp.sum(m.reshape(BN, N, H), axis=1)                   # (BN, H)

        n = _silu(jnp.dot(h, na, preferred_element_type=jnp.float32)
                  + jnp.dot(agg, nb, preferred_element_type=jnp.float32) + nb1)
        return h + jnp.dot(n, nw2, preferred_element_type=jnp.float32) + nb2

    h1 = h1_ref[...].reshape(BN, F)
    x1 = x1_ref[...].reshape(BN, DC)
    h2 = h2_ref[...].reshape(BN, F)
    x2 = x2_ref[...].reshape(BN, DC)

    o1 = egnn_layer(h1, x1, 0)
    o2 = egnn_layer(h2, x2, 1)

    # out.view(B, N, -1).mean(dim=1) -> mean over nodes, then concat.
    p1 = jnp.mean(o1.reshape(B, N, F), axis=1)                       # (B, F)
    p2 = jnp.mean(o2.reshape(B, N, F), axis=1)                       # (B, F)
    feat = jnp.concatenate([p1, p2], axis=-1)                        # (B, 2F)

    # fc head; Dropout(p=0.5) is identity in eval mode.  w3/b3 are zero-padded to
    # OUT_PAD lanes in the wrapper so the final store is lane-dense.
    z = jnp.maximum(jnp.dot(feat, fw1_ref[...], preferred_element_type=jnp.float32)
                    + fb1_ref[...], 0.0)
    z = jnp.maximum(jnp.dot(z, fw2_ref[...], preferred_element_type=jnp.float32)
                    + fb2_ref[...], 0.0)
    z = jnp.dot(z, fw3_ref[...], preferred_element_type=jnp.float32) + fb3_ref[...]
    out_ref[...] = z                                                 # (B, OUT_PAD)


# ------------------------------- wrapper ----------------------------------
def _selection_matrices():
    r = np.arange(BNN)
    dest = r // N                            # b*N + i
    src = (r % N) + N * (r // (N * N))       # b*N + j
    nodes = np.arange(BN)
    ri = (dest[:, None] == nodes[None, :]).astype(np.float32)
    rj = (src[:, None] == nodes[None, :]).astype(np.float32)
    return jnp.asarray(np.stack([ri, rj], axis=0))       # (2, BNN, BN)


def _pack_layer(p):
    w_in = jnp.concatenate([p["wa"], p["wb"], p["na"]], axis=0)          # (3F, H)
    w_mid = jnp.concatenate([p["w2"], p["nb"], p["nw2"]], axis=0)        # (3H, H)
    bias = jnp.concatenate([p["wd"], p["b1"], p["b2"], p["nb1"], p["nb2"]], axis=0)  # (5, H)
    return w_in, w_mid, bias


def egnn_with_regression(h1, x1, h2, x2, p1, p2, ph):
    sel = _selection_matrices()
    wi1, wm1, bz1 = _pack_layer(p1)
    wi2, wm2, bz2 = _pack_layer(p2)
    w_in = jnp.stack([wi1, wi2], axis=0)     # (2, 3F, H)
    w_mid = jnp.stack([wm1, wm2], axis=0)    # (2, 3H, H)
    bias = jnp.stack([bz1, bz2], axis=0)     # (2, 5, H)

    # Pad the last head layer to a lane-dense 128-wide output.
    fw3 = jnp.zeros((HEAD2, OUT_PAD), jnp.float32).at[:, :OUT].set(ph["w3"])
    fb3 = jnp.zeros((1, OUT_PAD), jnp.float32).at[:, :OUT].set(ph["b3"])

    inputs = (h1, x1, h2, x2, sel, w_in, w_mid, bias,
              ph["w1"], ph["b1"], ph["w2"], ph["b2"], fw3, fb3)

    # Advisory cost estimate (tiny kernel; keep XLA's scheduler honest).
    per_layer_flops = (3 * 2 * BN * F * H          # wa/wb/na projections
                       + 2 * 2 * BNN * BN * H      # ri/rj gathers of h
                       + 2 * 2 * BNN * BN * DC     # ri/rj gathers of x
                       + 2 * BNN * H * H           # edge MLP matmul
                       + 2 * 2 * BN * H * H)       # agg@nb and n@nw2
    head_flops = (2 * B * (2 * F) * HEAD1 + 2 * B * HEAD1 * HEAD2
                  + 2 * B * HEAD2 * OUT_PAD)
    flops = 2 * per_layer_flops + head_flops
    transcendentals = 2 * (2 * BNN * H + BN * H)
    bytes_accessed = sum(int(a.size) * 4 for a in inputs) + B * OUT_PAD * 4

    out = pl.pallas_call(
        egnn_regression_kernel,
        out_shape=jax.ShapeDtypeStruct((B, OUT_PAD), jnp.float32),
        cost_estimate=pl.CostEstimate(flops=flops,
                                      transcendentals=transcendentals,
                                      bytes_accessed=bytes_accessed),
    )(*inputs)
    return out[:, :OUT]


# --------------------------- pure-JAX reference ----------------------------
def _egnn_layer_ref(h, x, p):
    hi = h @ p["wa"]
    hj = h @ p["wb"]
    rows = []
    for i in range(N):
        diff = x - x[i:i + 1]
        d2 = jnp.sum(diff * diff, axis=-1, keepdims=True)
        m = _silu(hi[i:i + 1] + hj + d2 * p["wd"] + p["b1"])
        m = _silu(m @ p["w2"] + p["b2"])
        rows.append(jnp.sum(m, axis=0, keepdims=True))
    agg = jnp.concatenate(rows, axis=0)
    n = _silu(h @ p["na"] + agg @ p["nb"] + p["nb1"])
    return h + n @ p["nw2"] + p["nb2"]


def forward_ref(h1, x1, h2, x2, p1, p2, ph):
    outs = []
    for b in range(B):
        o1 = _egnn_layer_ref(h1[b], x1[b], p1)
        o2 = _egnn_layer_ref(h2[b], x2[b], p2)
        feat = jnp.concatenate(
            [o1.mean(0, keepdims=True), o2.mean(0, keepdims=True)], axis=-1)
        z = jnp.maximum(feat @ ph["w1"] + ph["b1"], 0.0)
        z = jnp.maximum(z @ ph["w2"] + ph["b2"], 0.0)
        z = z @ ph["w3"] + ph["b3"]
        outs.append(z)
    return jnp.concatenate(outs, axis=0)


# ------------------------------ param init ---------------------------------
def init_params(key):
    keys = iter(jax.random.split(key, 64))

    def w(shape, fan_in):
        return (jax.random.normal(next(keys), shape, jnp.float32)
                / jnp.sqrt(jnp.float32(fan_in)))

    def egnn_params():
        return dict(
            wa=w((F, H), F), wb=w((F, H), F), wd=w((1, H), 1),
            b1=0.1 * w((1, H), 1), w2=w((H, H), H), b2=0.1 * w((1, H), 1),
            na=w((F, H), F), nb=w((H, H), H), nb1=0.1 * w((1, H), 1),
            nw2=w((H, F), H), nb2=0.1 * w((1, F), 1),
        )

    p1 = egnn_params()
    p2 = egnn_params()
    ph = dict(
        w1=w((2 * F, HEAD1), 2 * F), b1=0.1 * w((1, HEAD1), 1),
        w2=w((HEAD1, HEAD2), HEAD1), b2=0.1 * w((1, HEAD2), 1),
        w3=w((HEAD2, OUT), HEAD2), b3=0.1 * w((1, OUT), 1),
    )
    return p1, p2, ph


# --------------------------------- main -------------------------------------
if __name__ == "__main__":
    key = jax.random.PRNGKey(0)
    kp, kh1, kx1, kh2, kx2 = jax.random.split(key, 5)

    p1, p2, ph = init_params(kp)
    h1 = jax.random.normal(kh1, (B, N, F), jnp.float32)
    x1 = jax.random.normal(kx1, (B, N, DC), jnp.float32)
    h2 = jax.random.normal(kh2, (B, N, F), jnp.float32)
    x2 = jax.random.normal(kx2, (B, N, DC), jnp.float32)

    out = egnn_with_regression(h1, x1, h2, x2, p1, p2, ph)
    out = jax.block_until_ready(out)

    ref = forward_ref(h1, x1, h2, x2, p1, p2, ph)
    assert out.shape == (B, OUT), out.shape
    assert jnp.all(jnp.isfinite(out))
    assert jnp.allclose(out, ref, rtol=2e-2, atol=2e-2), (out, ref)

    print("KERNEL_OK")
</pallas_src>

<mosaic_0001>
module attributes {stable_mosaic.version = 11 : i64} {
  func.func @egnn_regression_kernel(%arg0: memref<2x8x32xf32, #tpu.memory_space<vmem>>, %arg1: memref<2x8x3xf32, #tpu.memory_space<vmem>>, %arg2: memref<2x8x32xf32, #tpu.memory_space<vmem>>, %arg3: memref<2x8x3xf32, #tpu.memory_space<vmem>>, %arg4: memref<2x128x16xf32, #tpu.memory_space<vmem>>, %arg5: memref<2x96x32xf32, #tpu.memory_space<vmem>>, %arg6: memref<2x96x32xf32, #tpu.memory_space<vmem>>, %arg7: memref<2x5x32xf32, #tpu.memory_space<vmem>>, %arg8: memref<64x128xf32, #tpu.memory_space<vmem>>, %arg9: memref<1x128xf32, #tpu.memory_space<vmem>>, %arg10: memref<128x64xf32, #tpu.memory_space<vmem>>, %arg11: memref<1x64xf32, #tpu.memory_space<vmem>>, %arg12: memref<64x128xf32, #tpu.memory_space<vmem>>, %arg13: memref<1x128xf32, #tpu.memory_space<vmem>>, %arg14: memref<2x128xf32, #tpu.memory_space<vmem>>) attributes {dimension_semantics = [], scalar_prefetch = 0 : i64, scratch_operands = 0 : i64, tpu.core_type = #tpu.core_type<tc>} {
    %c0 = arith.constant 0 : index
    %c0_0 = arith.constant 0 : index
    %c0_1 = arith.constant 0 : index
    %0 = vector.load %arg4[%c0, %c0_0, %c0_1] : memref<2x128x16xf32, #tpu.memory_space<vmem>>, vector<1x128x16xf32>
    %1 = vector.shape_cast %0 : vector<1x128x16xf32> to vector<128x16xf32>
    %c1 = arith.constant 1 : index
    %c0_2 = arith.constant 0 : index
    %c0_3 = arith.constant 0 : index
    %2 = vector.load %arg4[%c1, %c0_2, %c0_3] : memref<2x128x16xf32, #tpu.memory_space<vmem>>, vector<1x128x16xf32>
    %3 = vector.shape_cast %2 : vector<1x128x16xf32> to vector<128x16xf32>
    %c0_4 = arith.constant 0 : index
    %c0_5 = arith.constant 0 : index
    %c0_6 = arith.constant 0 : index
    %4 = vector.load %arg0[%c0_4, %c0_5, %c0_6] : memref<2x8x32xf32, #tpu.memory_space<vmem>>, vector<2x8x32xf32>
    %5 = vector.shape_cast %4 : vector<2x8x32xf32> to vector<16x32xf32>
    %c0_7 = arith.constant 0 : index
    %c0_8 = arith.constant 0 : index
    %c0_9 = arith.constant 0 : index
    %6 = vector.load %arg1[%c0_7, %c0_8, %c0_9] : memref<2x8x3xf32, #tpu.memory_space<vmem>>, vector<2x8x3xf32>
    %7 = vector.shape_cast %6 : vector<2x8x3xf32> to vector<16x3xf32>
    %c0_10 = arith.constant 0 : index
    %c0_11 = arith.constant 0 : index
    %c0_12 = arith.constant 0 : index
    %8 = vector.load %arg2[%c0_10, %c0_11, %c0_12] : memref<2x8x32xf32, #tpu.memory_space<vmem>>, vector<2x8x32xf32>
    %9 = vector.shape_cast %8 : vector<2x8x32xf32> to vector<16x32xf32>
    %c0_13 = arith.constant 0 : index
    %c0_14 = arith.constant 0 : index
    %c0_15 = arith.constant 0 : index
    %10 = vector.load %arg3[%c0_13, %c0_14, %c0_15] : memref<2x8x3xf32, #tpu.memory_space<vmem>>, vector<2x8x3xf32>
    %11 = vector.shape_cast %10 : vector<2x8x3xf32> to vector<16x3xf32>
    %c0_16 = arith.constant 0 : index
    %c0_17 = arith.constant 0 : index
    %c0_18 = arith.constant 0 : index
    %12 = vector.load %arg5[%c0_16, %c0_17, %c0_18] : memref<2x96x32xf32, #tpu.memory_space<vmem>>, vector<1x96x32xf32>
    %13 = vector.shape_cast %12 : vector<1x96x32xf32> to vector<96x32xf32>
    %14 = vector.extract_strided_slice %13 {offsets = [0, 0], sizes = [32, 32], strides = [1, 1]} : vector<96x32xf32> to vector<32x32xf32>
    %15 = vector.extract_strided_slice %13 {offsets = [32, 0], sizes = [32, 32], strides = [1, 1]} : vector<96x32xf32> to vector<32x32xf32>
    %16 = vector.extract_strided_slice %13 {offsets = [64, 0], sizes = [32, 32], strides = [1, 1]} : vector<96x32xf32> to vector<32x32xf32>
    %c0_19 = arith.constant 0 : index
    %c0_20 = arith.constant 0 : index
    %c0_21 = arith.constant 0 : index
    %17 = vector.load %arg6[%c0_19, %c0_20, %c0_21] : memref<2x96x32xf32, #tpu.memory_space<vmem>>, vector<1x96x32xf32>
    %18 = vector.shape_cast %17 : vector<1x96x32xf32> to vector<96x32xf32>
    %19 = vector.extract_strided_slice %18 {offsets = [0, 0], sizes = [32, 32], strides = [1, 1]} : vector<96x32xf32> to vector<32x32xf32>
    %20 = vector.extract_strided_slice %18 {offsets = [32, 0], sizes = [32, 32], strides = [1, 1]} : vector<96x32xf32> to vector<32x32xf32>
    %21 = vector.extract_strided_slice %18 {offsets = [64, 0], sizes = [32, 32], strides = [1, 1]} : vector<96x32xf32> to vector<32x32xf32>
    %c0_22 = arith.constant 0 : index
    %c0_23 = arith.constant 0 : index
    %c0_24 = arith.constant 0 : index
    %22 = vector.load %arg7[%c0_22, %c0_23, %c0_24] : memref<2x5x32xf32, #tpu.memory_space<vmem>>, vector<1x5x32xf32>
    %23 = vector.shape_cast %22 : vector<1x5x32xf32> to vector<5x32xf32>
    %24 = vector.extract_strided_slice %23 {offsets = [0, 0], sizes = [1, 32], strides = [1, 1]} : vector<5x32xf32> to vector<1x32xf32>
    %25 = vector.extract_strided_slice %23 {offsets = [1, 0], sizes = [1, 32], strides = [1, 1]} : vector<5x32xf32> to vector<1x32xf32>
    %26 = vector.extract_strided_slice %23 {offsets = [2, 0], sizes = [1, 32], strides = [1, 1]} : vector<5x32xf32> to vector<1x32xf32>
    %27 = vector.extract_strided_slice %23 {offsets = [3, 0], sizes = [1, 32], strides = [1, 1]} : vector<5x32xf32> to vector<1x32xf32>
    %28 = vector.extract_strided_slice %23 {offsets = [4, 0], sizes = [1, 32], strides = [1, 1]} : vector<5x32xf32> to vector<1x32xf32>
    %cst = arith.constant dense<0.000000e+00> : vector<16x32xf32>
    %29 = tpu.matmul %5, %14, %cst {dimension_numbers = #tpu.dot_dimension_numbers<[1], [0], [0], [1], [0, 0, 1, 1], [], []>} : vector<16x32xf32>, vector<32x32xf32>, vector<16x32xf32> -> vector<16x32xf32>
    %cst_25 = arith.constant dense<0.000000e+00> : vector<16x32xf32>
    %30 = tpu.matmul %5, %15, %cst_25 {dimension_numbers = #tpu.dot_dimension_numbers<[1], [0], [0], [1], [0, 0, 1, 1], [], []>} : vector<16x32xf32>, vector<32x32xf32>, vector<16x32xf32> -> vector<16x32xf32>
    %cst_26 = arith.constant dense<0.000000e+00> : vector<128x32xf32>
    %31 = tpu.matmul %1, %29, %cst_26 {dimension_numbers = #tpu.dot_dimension_numbers<[1], [0], [0], [1], [0, 0, 1, 1], [], []>} : vector<128x16xf32>, vector<16x32xf32>, vector<128x32xf32> -> vector<128x32xf32>
    %cst_27 = arith.constant dense<0.000000e+00> : vector<128x32xf32>
    %32 = tpu.matmul %3, %30, %cst_27 {dimension_numbers = #tpu.dot_dimension_numbers<[1], [0], [0], [1], [0, 0, 1, 1], [], []>} : vector<128x16xf32>, vector<16x32xf32>, vector<128x32xf32> -> vector<128x32xf32>
    %cst_28 = arith.constant dense<0.000000e+00> : vector<128x3xf32>
    %33 = tpu.matmul %1, %7, %cst_28 {dimension_numbers = #tpu.dot_dimension_numbers<[1], [0], [0], [1], [0, 0, 1, 1], [], []>} : vector<128x16xf32>, vector<16x3xf32>, vector<128x3xf32> -> vector<128x3xf32>
    %cst_29 = arith.constant dense<0.000000e+00> : vector<128x3xf32>
    %34 = tpu.matmul %3, %7, %cst_29 {dimension_numbers = #tpu.dot_dimension_numbers<[1], [0], [0], [1], [0, 0, 1, 1], [], []>} : vector<128x16xf32>, vector<16x3xf32>, vector<128x3xf32> -> vector<128x3xf32>
    %35 = arith.subf %33, %34 : vector<128x3xf32>
    %36 = arith.mulf %35, %35 : vector<128x3xf32>
    %cst_30 = arith.constant dense<0.000000e+00> : vector<128xf32>
    %37 = vector.multi_reduction <add>, %36, %cst_30 [1] : vector<128x3xf32> to vector<128xf32>
    %38 = vector.shape_cast %37 : vector<128xf32> to vector<128x1xf32>
    %39 = arith.addf %31, %32 : vector<128x32xf32>
    %40 = vector.broadcast %38 : vector<128x1xf32> to vector<128x32xf32>
    %41 = vector.broadcast %24 : vector<1x32xf32> to vector<128x32xf32>
    %42 = arith.mulf %40, %41 : vector<128x32xf32>
    %43 = arith.addf %39, %42 : vector<128x32xf32>
    %44 = vector.broadcast %25 : vector<1x32xf32> to vector<128x32xf32>
    %45 = arith.addf %43, %44 : vector<128x32xf32>
    %cst_31 = arith.constant 0.000000e+00 : f32
    %46 = vector.broadcast %cst_31 : f32 to vector<128x32xf32>
    %47 = arith.subf %46, %45 : vector<128x32xf32>
    %48 = math.exp %47 : vector<128x32xf32>
    %cst_32 = arith.constant 1.000000e+00 : f32
    %49 = vector.broadcast %cst_32 : f32 to vector<128x32xf32>
    %50 = arith.addf %49, %48 : vector<128x32xf32>
    %cst_33 = arith.constant 1.000000e+00 : f32
    %51 = vector.broadcast %cst_33 : f32 to vector<128x32xf32>
    %52 = arith.divf %51, %50 : vector<128x32xf32>
    %53 = arith.mulf %45, %52 : vector<128x32xf32>
    %cst_34 = arith.constant dense<0.000000e+00> : vector<128x32xf32>
    %54 = tpu.matmul %53, %19, %cst_34 {dimension_numbers = #tpu.dot_dimension_numbers<[1], [0], [0], [1], [0, 0, 1, 1], [], []>} : vector<128x32xf32>, vector<32x32xf32>, vector<128x32xf32> -> vector<128x32xf32>
    %55 = vector.broadcast %26 : vector<1x32xf32> to vector<128x32xf32>
    %56 = arith.addf %54, %55 : vector<128x32xf32>
    %cst_35 = arith.constant 0.000000e+00 : f32
    %57 = vector.broadcast %cst_35 : f32 to vector<128x32xf32>
    %58 = arith.subf %57, %56 : vector<128x32xf32>
    %59 = math.exp %58 : vector<128x32xf32>
    %cst_36 = arith.constant 1.000000e+00 : f32
    %60 = vector.broadcast %cst_36 : f32 to vector<128x32xf32>
    %61 = arith.addf %60, %59 : vector<128x32xf32>
    %cst_37 = arith.constant 1.000000e+00 : f32
    %62 = vector.broadcast %cst_37 : f32 to vector<128x32xf32>
    %63 = arith.divf %62, %61 : vector<128x32xf32>
    %64 = arith.mulf %56, %63 : vector<128x32xf32>
    %65 = vector.shape_cast %64 : vector<128x32xf32> to vector<16x8x32xf32>
    %cst_38 = arith.constant dense<0.000000e+00> : vector<16x32xf32>
    %66 = vector.multi_reduction <add>, %65, %cst_38 [1] : vector<16x8x32xf32> to vector<16x32xf32>
    %cst_39 = arith.constant dense<0.000000e+00> : vector<16x32xf32>
    %67 = tpu.matmul %5, %16, %cst_39 {dimension_numbers = #tpu.dot_dimension_numbers<[1], [0], [0], [1], [0, 0, 1, 1], [], []>} : vector<16x32xf32>, vector<32x32xf32>, vector<16x32xf32> -> vector<16x32xf32>
    %cst_40 = arith.constant dense<0.000000e+00> : vector<16x32xf32>
    %68 = tpu.matmul %66, %20, %cst_40 {dimension_numbers = #tpu.dot_dimension_numbers<[1], [0], [0], [1], [0, 0, 1, 1], [], []>} : vector<16x32xf32>, vector<32x32xf32>, vector<16x32xf32> -> vector<16x32xf32>
    %69 = arith.addf %67, %68 : vector<16x32xf32>
    %70 = vector.broadcast %27 : vector<1x32xf32> to vector<16x32xf32>
    %71 = arith.addf %69, %70 : vector<16x32xf32>
    %cst_41 = arith.constant 0.000000e+00 : f32
    %72 = vector.broadcast %cst_41 : f32 to vector<16x32xf32>
    %73 = arith.subf %72, %71 : vector<16x32xf32>
    %74 = math.exp %73 : vector<16x32xf32>
    %cst_42 = arith.constant 1.000000e+00 : f32
    %75 = vector.broadcast %cst_42 : f32 to vector<16x32xf32>
    %76 = arith.addf %75, %74 : vector<16x32xf32>
    %cst_43 = arith.constant 1.000000e+00 : f32
    %77 = vector.broadcast %cst_43 : f32 to vector<16x32xf32>
    %78 = arith.divf %77, %76 : vector<16x32xf32>
    %79 = arith.mulf %71, %78 : vector<16x32xf32>
    %cst_44 = arith.constant dense<0.000000e+00> : vector<16x32xf32>
    %80 = tpu.matmul %79, %21, %cst_44 {dimension_numbers = #tpu.dot_dimension_numbers<[1], [0], [0], [1], [0, 0, 1, 1], [], []>} : vector<16x32xf32>, vector<32x32xf32>, vector<16x32xf32> -> vector<16x32xf32>
    %81 = arith.addf %5, %80 : vector<16x32xf32>
    %82 = vector.broadcast %28 : vector<1x32xf32> to vector<16x32xf32>
    %83 = arith.addf %81, %82 : vector<16x32xf32>
    %c1_45 = arith.constant 1 : index
    %c0_46 = arith.constant 0 : index
    %c0_47 = arith.constant 0 : index
    %84 = vector.load %arg5[%c1_45, %c0_46, %c0_47] : memref<2x96x32xf32, #tpu.memory_space<vmem>>, vector<1x96x32xf32>
    %85 = vector.shape_cast %84 : vector<1x96x32xf32> to vector<96x32xf32>
    %86 = vector.extract_strided_slice %85 {offsets = [0, 0], sizes = [32, 32], strides = [1, 1]} : vector<96x32xf32> to vector<32x32xf32>
    %87 = vector.extract_strided_slice %85 {offsets = [32, 0], sizes = [32, 32], strides = [1, 1]} : vector<96x32xf32> to vector<32x32xf32>
    %88 = vector.extract_strided_slice %85 {offsets = [64, 0], sizes = [32, 32], strides = [1, 1]} : vector<96x32xf32> to vector<32x32xf32>
    %c1_48 = arith.constant 1 : index
    %c0_49 = arith.constant 0 : index
    %c0_50 = arith.constant 0 : index
    %89 = vector.load %arg6[%c1_48, %c0_49, %c0_50] : memref<2x96x32xf32, #tpu.memory_space<vmem>>, vector<1x96x32xf32>
    %90 = vector.shape_cast %89 : vector<1x96x32xf32> to vector<96x32xf32>
    %91 = vector.extract_strided_slice %90 {offsets = [0, 0], sizes = [32, 32], strides = [1, 1]} : vector<96x32xf32> to vector<32x32xf32>
    %92 = vector.extract_strided_slice %90 {offsets = [32, 0], sizes = [32, 32], strides = [1, 1]} : vector<96x32xf32> to vector<32x32xf32>
    %93 = vector.extract_strided_slice %90 {offsets = [64, 0], sizes = [32, 32], strides = [1, 1]} : vector<96x32xf32> to vector<32x32xf32>
    %c1_51 = arith.constant 1 : index
    %c0_52 = arith.constant 0 : index
    %c0_53 = arith.constant 0 : index
    %94 = vector.load %arg7[%c1_51, %c0_52, %c0_53] : memref<2x5x32xf32, #tpu.memory_space<vmem>>, vector<1x5x32xf32>
    %95 = vector.shape_cast %94 : vector<1x5x32xf32> to vector<5x32xf32>
    %96 = vector.extract_strided_slice %95 {offsets = [0, 0], sizes = [1, 32], strides = [1, 1]} : vector<5x32xf32> to vector<1x32xf32>
    %97 = vector.extract_strided_slice %95 {offsets = [1, 0], sizes = [1, 32], strides = [1, 1]} : vector<5x32xf32> to vector<1x32xf32>
    %98 = vector.extract_strided_slice %95 {offsets = [2, 0], sizes = [1, 32], strides = [1, 1]} : vector<5x32xf32> to vector<1x32xf32>
    %99 = vector.extract_strided_slice %95 {offsets = [3, 0], sizes = [1, 32], strides = [1, 1]} : vector<5x32xf32> to vector<1x32xf32>
    %100 = vector.extract_strided_slice %95 {offsets = [4, 0], sizes = [1, 32], strides = [1, 1]} : vector<5x32xf32> to vector<1x32xf32>
    %cst_54 = arith.constant dense<0.000000e+00> : vector<16x32xf32>
    %101 = tpu.matmul %9, %86, %cst_54 {dimension_numbers = #tpu.dot_dimension_numbers<[1], [0], [0], [1], [0, 0, 1, 1], [], []>} : vector<16x32xf32>, vector<32x32xf32>, vector<16x32xf32> -> vector<16x32xf32>
    %cst_55 = arith.constant dense<0.000000e+00> : vector<16x32xf32>
    %102 = tpu.matmul %9, %87, %cst_55 {dimension_numbers = #tpu.dot_dimension_numbers<[1], [0], [0], [1], [0, 0, 1, 1], [], []>} : vector<16x32xf32>, vector<32x32xf32>, vector<16x32xf32> -> vector<16x32xf32>
    %cst_56 = arith.constant dense<0.000000e+00> : vector<128x32xf32>
    %103 = tpu.matmul %1, %101, %cst_56 {dimension_numbers = #tpu.dot_dimension_numbers<[1], [0], [0], [1], [0, 0, 1, 1], [], []>} : vector<128x16xf32>, vector<16x32xf32>, vector<128x32xf32> -> vector<128x32xf32>
    %cst_57 = arith.constant dense<0.000000e+00> : vector<128x32xf32>
    %104 = tpu.matmul %3, %102, %cst_57 {dimension_numbers = #tpu.dot_dimension_numbers<[1], [0], [0], [1], [0, 0, 1, 1], [], []>} : vector<128x16xf32>, vector<16x32xf32>, vector<128x32xf32> -> vector<128x32xf32>
    %cst_58 = arith.constant dense<0.000000e+00> : vector<128x3xf32>
    %105 = tpu.matmul %1, %11, %cst_58 {dimension_numbers = #tpu.dot_dimension_numbers<[1], [0], [0], [1], [0, 0, 1, 1], [], []>} : vector<128x16xf32>, vector<16x3xf32>, vector<128x3xf32> -> vector<128x3xf32>
    %cst_59 = arith.constant dense<0.000000e+00> : vector<128x3xf32>
    %106 = tpu.matmul %3, %11, %cst_59 {dimension_numbers = #tpu.dot_dimension_numbers<[1], [0], [0], [1], [0, 0, 1, 1], [], []>} : vector<128x16xf32>, vector<16x3xf32>, vector<128x3xf32> -> vector<128x3xf32>
    %107 = arith.subf %105, %106 : vector<128x3xf32>
    %108 = arith.mulf %107, %107 : vector<128x3xf32>
    %cst_60 = arith.constant dense<0.000000e+00> : vector<128xf32>
    %109 = vector.multi_reduction <add>, %108, %cst_60 [1] : vector<128x3xf32> to vector<128xf32>
    %110 = vector.shape_cast %109 : vector<128xf32> to vector<128x1xf32>
    %111 = arith.addf %103, %104 : vector<128x32xf32>
    %112 = vector.broadcast %110 : vector<128x1xf32> to vector<128x32xf32>
    %113 = vector.broadcast %96 : vector<1x32xf32> to vector<128x32xf32>
    %114 = arith.mulf %112, %113 : vector<128x32xf32>
    %115 = arith.addf %111, %114 : vector<128x32xf32>
    %116 = vector.broadcast %97 : vector<1x32xf32> to vector<128x32xf32>
    %117 = arith.addf %115, %116 : vector<128x32xf32>
    %cst_61 = arith.constant 0.000000e+00 : f32
    %118 = vector.broadcast %cst_61 : f32 to vector<128x32xf32>
    %119 = arith.subf %118, %117 : vector<128x32xf32>
    %120 = math.exp %119 : vector<128x32xf32>
    %cst_62 = arith.constant 1.000000e+00 : f32
    %121 = vector.broadcast %cst_62 : f32 to vector<128x32xf32>
    %122 = arith.addf %121, %120 : vector<128x32xf32>
    %cst_63 = arith.constant 1.000000e+00 : f32
    %123 = vector.broadcast %cst_63 : f32 to vector<128x32xf32>
    %124 = arith.divf %123, %122 : vector<128x32xf32>
    %125 = arith.mulf %117, %124 : vector<128x32xf32>
    %cst_64 = arith.constant dense<0.000000e+00> : vector<128x32xf32>
    %126 = tpu.matmul %125, %91, %cst_64 {dimension_numbers = #tpu.dot_dimension_numbers<[1], [0], [0], [1], [0, 0, 1, 1], [], []>} : vector<128x32xf32>, vector<32x32xf32>, vector<128x32xf32> -> vector<128x32xf32>
    %127 = vector.broadcast %98 : vector<1x32xf32> to vector<128x32xf32>
    %128 = arith.addf %126, %127 : vector<128x32xf32>
    %cst_65 = arith.constant 0.000000e+00 : f32
    %129 = vector.broadcast %cst_65 : f32 to vector<128x32xf32>
    %130 = arith.subf %129, %128 : vector<128x32xf32>
    %131 = math.exp %130 : vector<128x32xf32>
    %cst_66 = arith.constant 1.000000e+00 : f32
    %132 = vector.broadcast %cst_66 : f32 to vector<128x32xf32>
    %133 = arith.addf %132, %131 : vector<128x32xf32>
    %cst_67 = arith.constant 1.000000e+00 : f32
    %134 = vector.broadcast %cst_67 : f32 to vector<128x32xf32>
    %135 = arith.divf %134, %133 : vector<128x32xf32>
    %136 = arith.mulf %128, %135 : vector<128x32xf32>
    %137 = vector.shape_cast %136 : vector<128x32xf32> to vector<16x8x32xf32>
    %cst_68 = arith.constant dense<0.000000e+00> : vector<16x32xf32>
    %138 = vector.multi_reduction <add>, %137, %cst_68 [1] : vector<16x8x32xf32> to vector<16x32xf32>
    %cst_69 = arith.constant dense<0.000000e+00> : vector<16x32xf32>
    %139 = tpu.matmul %9, %88, %cst_69 {dimension_numbers = #tpu.dot_dimension_numbers<[1], [0], [0], [1], [0, 0, 1, 1], [], []>} : vector<16x32xf32>, vector<32x32xf32>, vector<16x32xf32> -> vector<16x32xf32>
    %cst_70 = arith.constant dense<0.000000e+00> : vector<16x32xf32>
    %140 = tpu.matmul %138, %92, %cst_70 {dimension_numbers = #tpu.dot_dimension_numbers<[1], [0], [0], [1], [0, 0, 1, 1], [], []>} : vector<16x32xf32>, vector<32x32xf32>, vector<16x32xf32> -> vector<16x32xf32>
    %141 = arith.addf %139, %140 : vector<16x32xf32>
    %142 = vector.broadcast %99 : vector<1x32xf32> to vector<16x32xf32>
    %143 = arith.addf %141, %142 : vector<16x32xf32>
    %cst_71 = arith.constant 0.000000e+00 : f32
    %144 = vector.broadcast %cst_71 : f32 to vector<16x32xf32>
    %145 = arith.subf %144, %143 : vector<16x32xf32>
    %146 = math.exp %145 : vector<16x32xf32>
    %cst_72 = arith.constant 1.000000e+00 : f32
    %147 = vector.broadcast %cst_72 : f32 to vector<16x32xf32>
    %148 = arith.addf %147, %146 : vector<16x32xf32>
    %cst_73 = arith.constant 1.000000e+00 : f32
    %149 = vector.broadcast %cst_73 : f32 to vector<16x32xf32>
    %150 = arith.divf %149, %148 : vector<16x32xf32>
    %151 = arith.mulf %143, %150 : vector<16x32xf32>
    %cst_74 = arith.constant dense<0.000000e+00> : vector<16x32xf32>
    %152 = tpu.matmul %151, %93, %cst_74 {dimension_numbers = #tpu.dot_dimension_numbers<[1], [0], [0], [1], [0, 0, 1, 1], [], []>} : vector<16x32xf32>, vector<32x32xf32>, vector<16x32xf32> -> vector<16x32xf32>
    %153 = arith.addf %9, %152 : vector<16x32xf32>
    %154 = vector.broadcast %100 : vector<1x32xf32> to vector<16x32xf32>
    %155 = arith.addf %153, %154 : vector<16x32xf32>
    %156 = vector.shape_cast %83 : vector<16x32xf32> to vector<2x8x32xf32>
    %cst_75 = arith.constant dense<0.000000e+00> : vector<2x32xf32>
    %157 = vector.multi_reduction <add>, %156, %cst_75 [1] : vector<2x8x32xf32> to vector<2x32xf32>
    %cst_76 = arith.constant 8.000000e+00 : f32
    %158 = vector.broadcast %cst_76 : f32 to vector<2x32xf32>
    %159 = arith.divf %157, %158 : vector<2x32xf32>
    %160 = vector.shape_cast %155 : vector<16x32xf32> to vector<2x8x32xf32>
    %cst_77 = arith.constant dense<0.000000e+00> : vector<2x32xf32>
    %161 = vector.multi_reduction <add>, %160, %cst_77 [1] : vector<2x8x32xf32> to vector<2x32xf32>
    %cst_78 = arith.constant 8.000000e+00 : f32
    %162 = vector.broadcast %cst_78 : f32 to vector<2x32xf32>
    %163 = arith.divf %161, %162 : vector<2x32xf32>
    %164 = tpu.concatenate %159, %163 in 1 : vector<2x32xf32>, vector<2x32xf32> -> vector<2x64xf32>
    %c0_79 = arith.constant 0 : index
    %c0_80 = arith.constant 0 : index
    %165 = vector.load %arg8[%c0_79, %c0_80] : memref<64x128xf32, #tpu.memory_space<vmem>>, vector<64x128xf32>
    %cst_81 = arith.constant dense<0.000000e+00> : vector<2x128xf32>
    %166 = tpu.matmul %164, %165, %cst_81 {dimension_numbers = #tpu.dot_dimension_numbers<[1], [0], [0], [1], [0, 0, 1, 1], [], []>} : vector<2x64xf32>, vector<64x128xf32>, vector<2x128xf32> -> vector<2x128xf32>
    %c0_82 = arith.constant 0 : index
    %c0_83 = arith.constant 0 : index
    %167 = vector.load %arg9[%c0_82, %c0_83] : memref<1x128xf32, #tpu.memory_space<vmem>>, vector<1x128xf32>
    %168 = vector.broadcast %167 : vector<1x128xf32> to vector<2x128xf32>
    %169 = arith.addf %166, %168 : vector<2x128xf32>
    %cst_84 = arith.constant 0.000000e+00 : f32
    %170 = vector.broadcast %cst_84 : f32 to vector<2x128xf32>
    %171 = arith.maximumf %169, %170 : vector<2x128xf32>
    %c0_85 = arith.constant 0 : index
    %c0_86 = arith.constant 0 : index
    %172 = vector.load %arg10[%c0_85, %c0_86] : memref<128x64xf32, #tpu.memory_space<vmem>>, vector<128x64xf32>
    %cst_87 = arith.constant dense<0.000000e+00> : vector<2x64xf32>
    %173 = tpu.matmul %171, %172, %cst_87 {dimension_numbers = #tpu.dot_dimension_numbers<[1], [0], [0], [1], [0, 0, 1, 1], [], []>} : vector<2x128xf32>, vector<128x64xf32>, vector<2x64xf32> -> vector<2x64xf32>
    %c0_88 = arith.constant 0 : index
    %c0_89 = arith.constant 0 : index
    %174 = vector.load %arg11[%c0_88, %c0_89] : memref<1x64xf32, #tpu.memory_space<vmem>>, vector<1x64xf32>
    %175 = vector.broadcast %174 : vector<1x64xf32> to vector<2x64xf32>
    %176 = arith.addf %173, %175 : vector<2x64xf32>
    %cst_90 = arith.constant 0.000000e+00 : f32
    %177 = vector.broadcast %cst_90 : f32 to vector<2x64xf32>
    %178 = arith.maximumf %176, %177 : vector<2x64xf32>
    %c0_91 = arith.constant 0 : index
    %c0_92 = arith.constant 0 : index
    %179 = vector.load %arg12[%c0_91, %c0_92] : memref<64x128xf32, #tpu.memory_space<vmem>>, vector<64x128xf32>
    %cst_93 = arith.constant dense<0.000000e+00> : vector<2x128xf32>
    %180 = tpu.matmul %178, %179, %cst_93 {dimension_numbers = #tpu.dot_dimension_numbers<[1], [0], [0], [1], [0, 0, 1, 1], [], []>} : vector<2x64xf32>, vector<64x128xf32>, vector<2x128xf32> -> vector<2x128xf32>
    %c0_94 = arith.constant 0 : index
    %c0_95 = arith.constant 0 : index
    %181 = vector.load %arg13[%c0_94, %c0_95] : memref<1x128xf32, #tpu.memory_space<vmem>>, vector<1x128xf32>
    %182 = vector.broadcast %181 : vector<1x128xf32> to vector<2x128xf32>
    %183 = arith.addf %180, %182 : vector<2x128xf32>
    %c0_96 = arith.constant 0 : index
    %c0_97 = arith.constant 0 : index
    %184 = vector.load %arg14[%c0_96, %c0_97] : memref<2x128xf32, #tpu.memory_space<vmem>>, vector<2x128xf32>
    tpu.vector_store %arg14[%c0_96, %c0_97], %183 {strides = array<i32>} : memref<2x128xf32, #tpu.memory_space<vmem>>, vector<2x128xf32>,
    return
  }
}

</mosaic_0001>

<bundles_post_ra>
// kernel: tpu_custom_call.1
= control target key start
LH: loop header
LB: loop body
LE: loop exit
PB: predicated region body
PF: predicated region fallthrough
CT: control target
= control target key end

     0   :  { %vm5945_vm0 = vcmask 130048   ;;  %vm114_vm1 = vcmask 261120   ;;  %s5929_s0 = inlined_call_operand.vmem [shape: f32[2,8,32], index: 0, kind: input, shape index: {}]   ;;  %s5930_s1 = inlined_call_operand.vmem [shape: f32[2,8,3], index: 1, kind: input, shape index: {}]   ;;  %s5931_s2 = inlined_call_operand.vmem [shape: f32[2,8,32], index: 2, kind: input, shape index: {}]   ;;  %s5932_s3 = inlined_call_operand.vmem [shape: f32[2,8,3], index: 3, kind: input, shape index: {}]   ;;  %s5933_s4 = inlined_call_operand.vmem [shape: f32[2,128,16], index: 4, kind: input, shape index: {}]   ;;  %s5934_s5 = inlined_call_operand.vmem [shape: f32[2,96,32], index: 5, kind: input, shape index: {}]   ;;  %s5935_s6 = inlined_call_operand.vmem [shape: f32[2,96,32], index: 6, kind: input, shape index: {}]   ;;  %s5936_s7 = inlined_call_operand.vmem [shape: f32[2,5,32], index: 7, kind: input, shape index: {}]   ;;  %s5937_s8 = inlined_call_operand.vmem [shape: f32[64,128], index: 8, kind: input, shape index: {}]   ;;  %s5938_s9 = inlined_call_operand.vmem [shape: f32[1,128], index: 9, kind: input, shape index: {}]   ;;  %s5939_s10 = inlined_call_operand.vmem [shape: f32[128,64], index: 10, kind: input, shape index: {}]   ;;  %s5940_s11 = inlined_call_operand.vmem [shape: f32[1,64], index: 11, kind: input, shape index: {}]   ;;  %s5941_s12 = inlined_call_operand.vmem [shape: f32[64,128], index: 12, kind: input, shape index: {}]   ;;  %s5942_s13 = inlined_call_operand.vmem [shape: f32[1,128], index: 13, kind: input, shape index: {}]   ;;  %s5943_s14 = inlined_call_operand.hbm [shape: f32[2,128], index: 14, kind: output, shape index: {}]  }
   0x1   :  { %v92_v0 = vld [vmem:[%s5934_s5 + $0x18] sm:$0xff]  ;;  %v84_v2 = vld [vmem:[%s5930_s1 + $0x8] sm:$0xff]  ;;  %v91_v3 = vld [vmem:[%s5934_s5 + $0x10] sm:$0xff] }
   0x2   :  { %v96_v1 = vld [vmem:[%s5934_s5 + $0x38] sm:$0xff]  ;;  %133 = vmatpush.msra.mxu0 %v92_v0  ;;  %v95_v4 = vld [vmem:[%s5934_s5 + $0x30] sm:$0xff]  ;;  %v83_v5 = vld [vmem:[%s5930_s1] sm:$0xff]  ;;  %343 = vmatpush.msra.mxu3 %v84_v2 }
   0x3   :  { %156 = vmatpush.msra.mxu1 %v96_v1  ;;  %v4035_v6 = vld [vmem:[%s5933_s4] sm:$0xff]  ;;  %v90_v7 = vld [vmem:[%s5934_s5 + $0x8] sm:$0xff] }
   0x4   :  { %134 = vmatpush.msra.mxu0 %v91_v3  ;;  %v94_v8 = vld [vmem:[%s5934_s5 + $0x28] sm:$0xff]  ;;  %344 = vmatpush.msra.mxu3 %v83_v5  ;;  %v89_v9 = vld [vmem:[%s5934_s5] sm:$0xff] }
   0x5   :  { %157 = vmatpush.msra.mxu1 %v95_v4  ;;  %3394 = vmatmul.msk.f32.vlgmr.msra.gmra.mxu3 %vm5945_vm0, %v4035_v6  ;;  %v93_v10 = vld [vmem:[%s5934_s5 + $0x20] sm:$0xff] }
   0x6   :  { %135 = vmatpush.msra.mxu0 %v90_v7  ;;  %v81_v11 = vld [vmem:[%s5929_s0] sm:$0xff]  ;;  %3583 = vmatpush.msrb.mxu3 %v84_v2 }
   0x7   :  { %158 = vmatpush.msra.mxu1 %v94_v8 }
   0x8   :  { %136 = vmatpush.msra.mxu0 %v89_v9 }
   0x9   :  { %19 = vsyncpa [#allocation3], 0  ;;  %159 = vmatpush.msra.mxu1 %v93_v10  ;;  %3374 = vmatmul.msk.f32.vlgmr.msra.gmra.mxu0 %vm114_vm1, %v81_v11  ;;  %v4059_v12 = vld [vmem:[%s5933_s4 + $0x8] sm:$0xff]  ;;  %v4071_v14 = vld [vmem:[%s5933_s4 + $0x10] sm:$0xff]  ;;  %vm5944_vm2 = vcmask 23552   ;;  %s3937_s15 = smov 32  }
   0xa   :  { %3376 = vmatmul.msk.f32.vlgmr.msra.gmra.mxu1 %vm114_vm1, %v81_v11  ;;  %408 = vmatpush.msrb.mxu0 %v84_v2  ;;  %v82_v13 = vld [vmem:[%s5929_s0 + $0x8] sm:$0xff]  ;;  %v3358_v15 = vld [vmem:[%s5933_s4 + $0x80] sm:$0xff]  ;;  %v4082_v16 = vld [vmem:[%s5933_s4 + $0x18] sm:$0xff] }
   0xb   :  { %3584 = vmatpush.msrb.mxu3 %v83_v5  ;;  %v3359_v17 = vld [vmem:[%s5933_s4 + $0x88] sm:$0xff]  ;;  %v4093_v18 = vld [vmem:[%s5933_s4 + $0x20] sm:$0xff]  ;;  %v4100_v19 = vld [vmem:[%s5933_s4 + $0x90] sm:$0xff] }
   0xc   :  { %409 = vmatpush.msrb.mxu0 %v83_v5  ;;  %v4107_v20 = vld [vmem:[%s5933_s4 + $0x28] sm:$0xff]  ;;  %v4114_v21 = vld [vmem:[%s5933_s4 + $0x98] sm:$0xff]  ;;  %v4121_v22 = vld [vmem:[%s5933_s4 + $0x30] sm:$0xff] }
   0xd   :  { %3395 = vmatmul.msk.f32.gmra.mxu3 %vm5945_vm0, %v4059_v12  ;;  %v4128_v23 = vld [vmem:[%s5933_s4 + $0xa0] sm:$0xff]  ;;  %v4135_v24 = vld [vmem:[%s5933_s4 + $0x38] sm:$0xff]  ;;  %v4142_v25 = vld [vmem:[%s5933_s4 + $0xa8] sm:$0xff] }
   0xe   :  { %v4149_v26 = vld [vmem:[%s5933_s4 + $0x40] sm:$0xff]  ;;  %v4156_v27 = vld [vmem:[%s5933_s4 + $0xb0] sm:$0xff]  ;;  %v4163_v28 = vld [vmem:[%s5933_s4 + $0x48] sm:$0xff] }
   0xf   :  { %v4170_v29 = vld [vmem:[%s5933_s4 + $0xb8] sm:$0xff]  ;;  %v4177_v30 = vld [vmem:[%s5933_s4 + $0x50] sm:$0xff]  ;;  %v4184_v31 = vld [vmem:[%s5933_s4 + $0xc0] sm:$0xff] }
  0x10   :  { %v4191_v32 = vld [vmem:[%s5933_s4 + $0x58] sm:$0xff]  ;;  %v4198_v33 = vld [vmem:[%s5933_s4 + $0xc8] sm:$0xff]  ;;  %v4205_v34 = vld [vmem:[%s5933_s4 + $0x60] sm:$0xff] }
  0x11   :  { %3375 = vmatmul.msk.f32.gmra.mxu0 %vm114_vm1, %v82_v13  ;;  %v4212_v35 = vld [vmem:[%s5933_s4 + $0xd0] sm:$0xff]  ;;  %v4219_v36 = vld [vmem:[%s5933_s4 + $0x68] sm:$0xff]  ;;  %v4233_v38 = vld [vmem:[%s5933_s4 + $0x78] sm:$0xff] }
  0x12   :  { %3377 = vmatmul.msk.f32.gmra.mxu1 %vm114_vm1, %v82_v13  ;;  %v4226_v37 = vld [vmem:[%s5933_s4 + $0x70] sm:$0xff]  ;;  %v4240_v39 = vld [vmem:[%s5933_s4 + $0xd8] sm:$0xff]  ;;  %v4247_v43 = vld [vmem:[%s5933_s4 + $0xe0] sm:$0xff] }
  0x13   :  { %v4255_v47 = vld [vmem:[%s5933_s4 + $0xe8] sm:$0xff]  ;;  %v4266_v53 = vld [vmem:[%s5933_s4 + $0xf0] sm:$0xff]  ;;  %v4278_v59 = vld [vmem:[%s5933_s4 + $0xf8] sm:$0xff] }
  0x14   :  { %v104_v11 = vld [vmem:[%s5935_s6 + $0x18] sm:$0xff] }
  0x15   :  { %3396 = vmatmul.msk.f32.gmra.mxu3 %vm5945_vm0, %v4071_v14 }
  0x19   :  { %3410 = vmatmul.msk.f32.vlgmr.msrb.gmra.mxu0 %vm5945_vm0, %v3358_v15 }
  0x1d   :  { %3397 = vmatmul.msk.f32.gmra.mxu3 %vm5945_vm0, %v4082_v16 }
  0x21   :  { %3411 = vmatmul.msk.f32.gmra.mxu0 %vm5945_vm0, %v3359_v17 }
  0x25   :  { %3398 = vmatmul.msk.f32.gmra.mxu3 %vm5945_vm0, %v4093_v18 }
  0x29   :  { %3412 = vmatmul.msk.f32.gmra.mxu0 %vm5945_vm0, %v4100_v19 }
  0x2d   :  { %3399 = vmatmul.msk.f32.gmra.mxu3 %vm5945_vm0, %v4107_v20 }
  0x31   :  { %3413 = vmatmul.msk.f32.gmra.mxu0 %vm5945_vm0, %v4114_v21 }
  0x35   :  { %3400 = vmatmul.msk.f32.gmra.mxu3 %vm5945_vm0, %v4121_v22 }
  0x39   :  { %3414 = vmatmul.msk.f32.gmra.mxu0 %vm5945_vm0, %v4128_v23 }
  0x3d   :  { %3401 = vmatmul.msk.f32.gmra.mxu3 %vm5945_vm0, %v4135_v24 }
  0x41   :  { %3415 = vmatmul.msk.f32.gmra.mxu0 %vm5945_vm0, %v4142_v25 }
  0x45   :  { %3402 = vmatmul.msk.f32.gmra.mxu3 %vm5945_vm0, %v4149_v26 }
  0x49   :  { %3416 = vmatmul.msk.f32.gmra.mxu0 %vm5945_vm0, %v4156_v27 }
  0x4d   :  { %3403 = vmatmul.msk.f32.gmra.mxu3 %vm5945_vm0, %v4163_v28 }
  0x51   :  { %3417 = vmatmul.msk.f32.gmra.mxu0 %vm5945_vm0, %v4170_v29 }
  0x55   :  { %3404 = vmatmul.msk.f32.gmra.mxu3 %vm5945_vm0, %v4177_v30 }
  0x59   :  { %3418 = vmatmul.msk.f32.gmra.mxu0 %vm5945_vm0, %v4184_v31 }
  0x5d   :  { %3405 = vmatmul.msk.f32.gmra.mxu3 %vm5945_vm0, %v4191_v32 }
  0x61   :  { %3419 = vmatmul.msk.f32.gmra.mxu0 %vm5945_vm0, %v4198_v33 }
  0x65   :  { %3406 = vmatmul.msk.f32.gmra.mxu3 %vm5945_vm0, %v4205_v34 }
  0x69   :  { %3420 = vmatmul.msk.f32.gmra.mxu0 %vm5945_vm0, %v4212_v35 }
  0x6d   :  { %3407 = vmatmul.msk.f32.gmra.mxu3 %vm5945_vm0, %v4219_v36 }
  0x75   :  { %3408 = vmatmul.msk.f32.gmra.mxu3 %vm5945_vm0, %v4226_v37 }
  0x7d   :  { %3409 = vmatmul.msk.f32.gmra.mxu3 %vm5945_vm0, %v4233_v38 }
  0x85   :  { %3421 = vmatmul.msk.f32.vlgmr.msrb.gmra.mxu3 %vm5945_vm0, %v4240_v39 }
  0x86   :  { %v138_v40 = vpop.f32.mrf.mxu0 }
  0x87   :  { %v161_v41 = vpop.f32.mrf.mxu1 }
  0x88   :  { %v346_v42 = vpop.f32.mrf.mxu3 }
  0x8d   :  { %3422 = vmatmul.msk.f32.gmra.mxu3 %vm5945_vm0, %v4247_v43 }
  0x8e   :  { %v141_v44 = vpop.f32.mrf.mxu0 }
  0x8f   :  { %v164_v45 = vpop.f32.mrf.mxu1 }
  0x90   :  { %230 = vmatpush.msrb.mxu1 %v164_v45  ;;  %3581 = vmatpush.msra.mxu2 %v164_v45  ;;  %v349_v46 = vpop.f32.mrf.mxu3 }
  0x92   :  { %231 = vmatpush.msrb.mxu1 %v161_v41  ;;  %3582 = vmatpush.msra.mxu2 %v161_v41 }
  0x93   :  { %3378 = vmatmul.msk.f32.vlgmr.msrb.gmra.mxu1 %vm5945_vm0, %v3358_v15  ;;  %3379 = vmatmul.msk.f32.vlgmr.msra.gmra.mxu2 %vm5945_vm0, %v3359_v17 }
  0x94   :  { %554 = vmatpush.msra.mxu1 %v141_v44  ;;  %1036 = vmatpush.msrb.mxu2 %v104_v11 }
  0x95   :  { %3423 = vmatmul.msk.f32.gmra.mxu3 %vm5945_vm0, %v4255_v47 }
  0x96   :  { %v411_v48 = vpop.f32.mrf.mxu0  ;;  %555 = vmatpush.msra.mxu1 %v138_v40 }
  0x97   :  { %v459_v49 = vsub.f32 %v346_v42, %v411_v48 }
  0x98   :  { %v352_v50 = vpop.f32.mrf.mxu3 }
  0x99   :  { %v475_v51 = vmul.f32 %v459_v49, %v459_v49 }
  0x9b   :  { %3426 = vmatmul.msk.f32.vlgmr.msra.gmra.mxu1 %vm5945_vm0, %v4035_v6  ;;  %v492_v52 = vsel %vm5944_vm2, %v475_v51, 0.0  ;;  %3380 = vmatmul.msk.f32.gmra.mxu2 %vm5945_vm0, %v4100_v19 }
  0x9c   :  { %493 = vadd.xlane.f32.xlu0 %v492_v52 }
  0x9d   :  { %3424 = vmatmul.msk.f32.gmra.mxu3 %vm5945_vm0, %v4266_v53 }
  0x9e   :  { %v414_v54 = vpop.f32.mrf.mxu0 }
  0x9f   :  { %v460_v55 = vsub.f32 %v349_v46, %v414_v54 }
  0xa0   :  { %v355_v57 = vpop.f32.mrf.mxu3 }
  0xa1   :  { %v476_v56 = vmul.f32 %v460_v55, %v460_v55 }
  0xa3   :  { %3427 = vmatmul.msk.f32.gmra.mxu1 %vm5945_vm0, %v4059_v12  ;;  %v495_v58 = vsel %vm5944_vm2, %v476_v56, 0.0  ;;  %3381 = vmatmul.msk.f32.gmra.mxu2 %vm5945_vm0, %v4114_v21 }
  0xa4   :  { %496 = vadd.xlane.f32.xlu0 %v495_v58 }
  0xa5   :  { %3425 = vmatmul.msk.f32.gmra.mxu3 %vm5945_vm0, %v4278_v59 }
  0xa6   :  { %v417_v60 = vpop.f32.mrf.mxu0 }
  0xa7   :  { %v461_v61 = vsub.f32 %v352_v50, %v417_v60 }
  0xa8   :  { %v358_v62 = vpop.f32.mrf.mxu3 }
  0xa9   :  { %v477_v63 = vmul.f32 %v461_v61, %v461_v61 }
  0xab   :  { %3428 = vmatmul.msk.f32.gmra.mxu1 %vm5945_vm0, %v4071_v14  ;;  %v498_v0 = vsel %vm5944_vm2, %v477_v63, 0.0  ;;  %3382 = vmatmul.msk.f32.gmra.mxu2 %vm5945_vm0, %v4128_v23 }
  0xac   :  { %499 = vadd.xlane.f32.xlu1 %v498_v0 }
  0xae   :  { %v420_v1 = vpop.f32.mrf.mxu0 }
  0xaf   :  { %v462_v2 = vsub.f32 %v355_v57, %v420_v1 }
  0xb0   :  { %v361_v4 = vpop.f32.mrf.mxu3 }
  0xb1   :  { %v478_v3 = vmul.f32 %v462_v2, %v462_v2 }
  0xb3   :  { %3429 = vmatmul.msk.f32.gmra.mxu1 %vm5945_vm0, %v4082_v16  ;;  %v501_v5 = vsel %vm5944_vm2, %v478_v3, 0.0  ;;  %3383 = vmatmul.msk.f32.gmra.mxu2 %vm5945_vm0, %v4142_v25 }
  0xb4   :  { %502 = vadd.xlane.f32.xlu1 %v501_v5  ;;  %v101_v5 = vld [vmem:[%s5935_s6] sm:$0xff] }
  0xb6   :  { %v423_v6 = vpop.f32.mrf.mxu0 }
  0xb7   :  { %v463_v7 = vsub.f32 %v358_v62, %v423_v6 }
  0xb8   :  { %v364_v8 = vpop.f32.mrf.mxu3 }
  0xb9   :  { %v479_v9 = vmul.f32 %v463_v7, %v463_v7 }
  0xbb   :  { %3430 = vmatmul.msk.f32.gmra.mxu1 %vm5945_vm0, %v4093_v18  ;;  %v504_v10 = vsel %vm5944_vm2, %v479_v9, 0.0  ;;  %3384 = vmatmul.msk.f32.gmra.mxu2 %vm5945_vm0, %v4156_v27 }
  0xbc   :  { %505 = vadd.xlane.f32.xlu2 %v504_v10 }
  0xbe   :  { %v426_v12 = vpop.f32.mrf.mxu0 }
  0xbf   :  { %v464_v13 = vsub.f32 %v361_v4, %v426_v12 }
  0xc0   :  { %v367_v15 = vpop.f32.mrf.mxu3 }
  0xc1   :  { %v480_v14 = vmul.f32 %v464_v13, %v464_v13 }
  0xc3   :  { %3431 = vmatmul.msk.f32.gmra.mxu1 %vm5945_vm0, %v4107_v20  ;;  %v507_v16 = vsel %vm5944_vm2, %v480_v14, 0.0  ;;  %3385 = vmatmul.msk.f32.gmra.mxu2 %vm5945_vm0, %v4170_v29 }
  0xc4   :  { %508 = vadd.xlane.f32.xlu2 %v507_v16 }
  0xc6   :  { %v429_v17 = vpop.f32.mrf.mxu0 }
  0xc7   :  { %v465_v18 = vsub.f32 %v364_v8, %v429_v17 }
  0xc8   :  { %v370_v21 = vpop.f32.mrf.mxu3 }
  0xc9   :  { %v481_v19 = vmul.f32 %v465_v18, %v465_v18 }
  0xcb   :  { %3432 = vmatmul.msk.f32.gmra.mxu1 %vm5945_vm0, %v4121_v22  ;;  %v510_v23 = vsel %vm5944_vm2, %v481_v19, 0.0  ;;  %3386 = vmatmul.msk.f32.gmra.mxu2 %vm5945_vm0, %v4184_v31  ;;  %v103_v31 = vld [vmem:[%s5935_s6 + $0x10] sm:$0xff] }
  0xcc   :  { %511 = vadd.xlane.f32.xlu0 %v510_v23  ;;  %1037 = vmatpush.msrb.mxu2 %v103_v31 }
  0xce   :  { %v432_v20 = vpop.f32.mrf.mxu0 }
  0xcf   :  { %v466_v25 = vsub.f32 %v367_v15, %v432_v20 }
  0xd0   :  { %v373_v40 = vpop.f32.mrf.mxu3 }
  0xd1   :  { %v482_v27 = vmul.f32 %v466_v25, %v466_v25 }
  0xd3   :  { %3433 = vmatmul.msk.f32.gmra.mxu1 %vm5945_vm0, %v4135_v24  ;;  %v513_v29 = vsel %vm5944_vm2, %v482_v27, 0.0  ;;  %3387 = vmatmul.msk.f32.gmra.mxu2 %vm5945_vm0, %v4198_v33 }
  0xd4   :  { %514 = vadd.xlane.f32.xlu1 %v513_v29 }
  0xd6   :  { %v435_v22 = vpop.f32.mrf.mxu0 }
  0xd7   :  { %v467_v41 = vsub.f32 %v370_v21, %v435_v22 }
  0xd8   :  { %v376_v44 = vpop.f32.mrf.mxu3 }
  0xd9   :  { %v483_v42 = vmul.f32 %v467_v41, %v467_v41 }
  0xdb   :  { %3434 = vmatmul.msk.f32.gmra.mxu1 %vm5945_vm0, %v4149_v26  ;;  %v516_v24 = vsel %vm5944_vm2, %v483_v42, 0.0  ;;  %3388 = vmatmul.msk.f32.gmra.mxu2 %vm5945_vm0, %v4212_v35 }
  0xdc   :  { %517 = vadd.xlane.f32.xlu2 %v516_v24 }
  0xde   :  { %v438_v33 = vpop.f32.mrf.mxu0 }
  0xdf   :  { %v468_v45 = vsub.f32 %v373_v40, %v438_v33 }
  0xe0   :  { %v379_v48 = vpop.f32.mrf.mxu3 }
  0xe1   :  { %v484_v46 = vmul.f32 %v468_v45, %v468_v45 }
  0xe3   :  { %3435 = vmatmul.msk.f32.gmra.mxu1 %vm5945_vm0, %v4163_v28  ;;  %v519_v49 = vsel %vm5944_vm2, %v484_v46, 0.0  ;;  %3389 = vmatmul.msk.f32.gmra.mxu2 %vm5945_vm0, %v4240_v39 }
  0xe4   :  { %520 = vadd.xlane.f32.xlu0 %v519_v49 }
  0xe6   :  { %v441_v26 = vpop.f32.mrf.mxu0 }
  0xe7   :  { %v469_v50 = vsub.f32 %v376_v44, %v441_v26 }
  0xe8   :  { %v382_v52 = vpop.f32.mrf.mxu3 }
  0xe9   :  { %v485_v51 = vmul.f32 %v469_v50, %v469_v50 }
  0xeb   :  { %3436 = vmatmul.msk.f32.gmra.mxu1 %vm5945_vm0, %v4177_v30  ;;  %v522_v35 = vsel %vm5944_vm2, %v485_v51, 0.0  ;;  %3390 = vmatmul.msk.f32.gmra.mxu2 %vm5945_vm0, %v4247_v43 }
  0xec   :  { %523 = vadd.xlane.f32.xlu1 %v522_v35 }
  0xf0   :  { %v385_v28 = vpop.f32.mrf.mxu3 }
  0xf3   :  { %3437 = vmatmul.msk.f32.gmra.mxu1 %vm5945_vm0, %v4191_v32  ;;  %3391 = vmatmul.msk.f32.gmra.mxu2 %vm5945_vm0, %v4255_v47 }
  0xf8   :  { %v388_v39 = vpop.f32.mrf.mxu3 }
  0xfb   :  { %3438 = vmatmul.msk.f32.gmra.mxu1 %vm5945_vm0, %v4205_v34  ;;  %3392 = vmatmul.msk.f32.gmra.mxu2 %vm5945_vm0, %v4266_v53  ;;  %v102_v34 = vld [vmem:[%s5935_s6 + $0x8] sm:$0xff] }
  0xfc   :  { %1038 = vmatpush.msrb.mxu2 %v102_v34 }
  0xfe   :  { %1039 = vmatpush.msrb.mxu2 %v101_v5 }
 0x100   :  { %v391_v30 = vpop.f32.mrf.mxu3 }
 0x103   :  { %3439 = vmatmul.msk.f32.gmra.mxu1 %vm5945_vm0, %v4219_v36  ;;  %3393 = vmatmul.msk.f32.gmra.mxu2 %vm5945_vm0, %v4278_v59  ;;  %v4356_v36 = vld [vmem:[%s5936_s7] sm:$0x1f] }
 0x104   :  { %v4361_v58 = vperm.slane %v4356_v36, 0  ;;  %v4366_v0 = vperm.slane %v4356_v36, 1 }
 0x108   :  { %v444_v43 = vpop.f32.mrf.mxu3 }
 0x109   :  { %v470_v54 = vsub.f32 %v379_v48, %v444_v43 }
 0x10b   :  { %3440 = vmatmul.msk.f32.gmra.mxu1 %vm5945_vm0, %v4226_v37  ;;  %v486_v32 = vmul.f32 %v470_v54, %v470_v54 }
 0x10d   :  { %v525_v47 = vsel %vm5944_vm2, %v486_v32, 0.0 }
 0x10e   :  { %526 = vadd.xlane.f32.xlu2 %v525_v47 }
 0x10f   :  { %v494_v37 = vpop.xlane.xlu0 %493 }
 0x110   :  { %v233_v53 = vpop.f32.mrf.mxu1  ;;  %v447_v55 = vpop.f32.mrf.mxu3  ;;  %v606_v62 = vmul.f32 %v4361_v58, %v494_v37 }
 0x111   :  { %v471_v56 = vsub.f32 %v382_v52, %v447_v55 }
 0x113   :  { %3441 = vmatmul.msk.f32.gmra.mxu1 %vm5945_vm0, %v4233_v38  ;;  %v487_v57 = vmul.f32 %v471_v56, %v471_v56 }
 0x115   :  { %v528_v59 = vsel %vm5944_vm2, %v487_v57, 0.0 }
 0x116   :  { %v236_v60 = vpop.f32.mrf.mxu2  ;;  %529 = vadd.xlane.f32.xlu0 %v528_v59 }
 0x117   :  { %v497_v6 = vpop.xlane.xlu0 %496 }
 0x118   :  { %v557_v61 = vpop.f32.mrf.mxu1  ;;  %v450_v1 = vpop.f32.mrf.mxu3  ;;  %v607_v12 = vmul.f32 %v4361_v58, %v497_v6 }
 0x119   :  { %v558_v63 = vadd.f32 %v557_v61, %v233_v53  ;;  %v472_v2 = vsub.f32 %v385_v28, %v450_v1 }
 0x11b   :  { %v622_v3 = vadd.f32 %v606_v62, %v558_v63  ;;  %v488_v38 = vmul.f32 %v472_v2, %v472_v2 }
 0x11d   :  { %v4369_v4 = vadd.f32 %v4366_v0, %v622_v3  ;;  %v531_v7 = vsel %vm5944_vm2, %v488_v38, 0.0 }
 0x11e   :  { %v239_v8 = vpop.f32.mrf.mxu2  ;;  %532 = vadd.xlane.f32.xlu1 %v531_v7 }
 0x11f   :  { %v655_v9 = vsub.f32 0.0, %v4369_v4  ;;  %v500_v17 = vpop.xlane.xlu1 %499 }
 0x120   :  { %v560_v10 = vpop.f32.mrf.mxu1  ;;  %v453_v14 = vpop.f32.mrf.mxu3  ;;  %v608_v29 = vmul.f32 %v4361_v58, %v500_v17 }
 0x121   :  { %v671_v11 = vmul.f32 1.442695, %v655_v9  ;;  %v561_v13 = vadd.f32 %v560_v10, %v236_v60  ;;  %v473_v15 = vsub.f32 %v388_v39, %v453_v14 }
 0x123   :  { %3595 = vpow2.f32 %v671_v11  ;;  %v623_v16 = vadd.f32 %v607_v12, %v561_v13  ;;  %v489_v18 = vmul.f32 %v473_v15, %v473_v15 }
 0x125   :  { %v4378_v19 = vadd.f32 %v4366_v0, %v623_v16  ;;  %v534_v21 = vsel %vm5944_vm2, %v489_v18, 0.0 }
 0x126   :  { %v242_v23 = vpop.f32.mrf.mxu2  ;;  %535 = vadd.xlane.f32.xlu2 %v534_v21 }
 0x127   :  { %v656_v20 = vsub.f32 0.0, %v4378_v19  ;;  %v503_v45 = vpop.xlane.xlu1 %502 }
 0x128   :  { %v563_v25 = vpop.f32.mrf.mxu1  ;;  %v456_v41 = vpop.f32.mrf.mxu3  ;;  %v609_v52 = vmul.f32 %v4361_v58, %v503_v45 }
 0x129   :  { %v3596_v27 = vpop.eup %3595  ;;  %v673_v40 = vmul.f32 1.442695, %v656_v20  ;;  %v564_v22 = vadd.f32 %v563_v25, %v239_v8  ;;  %v474_v44 = vsub.f32 %v391_v30, %v456_v41 }
 0x12a   :  { %v703_v42 = vadd.f32 1.0, %v3596_v27 }
 0x12b   :  { %3597 = vpow2.f32 %v673_v40  ;;  %v624_v31 = vadd.f32 %v608_v29, %v564_v22  ;;  %v490_v24 = vmul.f32 %v474_v44, %v474_v44 }
 0x12c   :  { %3599 = vrcp.f32 %v703_v42  ;;  %v728_v47 = vand.u32 2147483647, %v703_v42  ;;  %v730_v53 = vand.u32 2147483648, %v703_v42  ;;  %vm724_vm4 = vweird.f32 %v703_v42 }
 0x12d   :  { %v4384_v33 = vadd.f32 %v4366_v0, %v624_v31  ;;  %v537_v46 = vsel %vm5944_vm2, %v490_v24, 0.0 }
 0x12e   :  { %v245_v48 = vpop.f32.mrf.mxu2  ;;  %538 = vadd.xlane.f32.xlu0 %v537_v46  ;;  %vm729_vm6 = vcmp.eq.f32.partialorder %v728_v47, 8.507059e+37  ;;  %v731_v3 = vor.u32 1.1754944e-38, %v730_v53 }
 0x12f   :  { %v657_v49 = vsub.f32 0.0, %v4384_v33  ;;  %v506_v54 = vpop.xlane.xlu2 %505 }
 0x130   :  { %v566_v26 = vpop.f32.mrf.mxu1  ;;  %v610_v61 = vmul.f32 %v4361_v58, %v506_v54 }
 0x131   :  { %v3598_v50 = vpop.eup %3597  ;;  %v675_v51 = vmul.f32 1.442695, %v657_v49  ;;  %v567_v35 = vadd.f32 %v566_v26, %v242_v23 }
 0x132   :  { %v3600_v28 = vpop.eup %3599  ;;  %v704_v39 = vadd.f32 1.0, %v3598_v50 }
 0x133   :  { %3601 = vpow2.f32 %v675_v51  ;;  %v625_v30 = vadd.f32 %v609_v52, %v567_v35  ;;  %v720_v43 = vmul.f32 %v3600_v28, %v703_v42  ;;  %vm725_vm3 = vweird.f32 %v3600_v28 }
 0x134   :  { %3603 = vrcp.f32 %v704_v39  ;;  %vm726_vm5 = vmor %vm724_vm4, %vm725_vm3  ;;  %v743_v12 = vand.u32 2147483647, %v704_v39  ;;  %v745_v13 = vand.u32 2147483648, %v704_v39  ;;  %vm739_vm8 = vweird.f32 %v704_v39 }
 0x135   :  { %v4390_v32 = vadd.f32 %v4366_v0, %v625_v30  ;;  %v721_v34 = vsub.f32 1.0, %v720_v43 }
 0x136   :  { %v248_v55 = vpop.f32.mrf.mxu2  ;;  %vm744_vm10 = vcmp.eq.f32.partialorder %v743_v12, 8.507059e+37  ;;  %v746_v40 = vor.u32 1.1754944e-38, %v745_v13 }
 0x137   :  { %v658_v56 = vsub.f32 0.0, %v4390_v32  ;;  %v722_v37 = vmul.f32 %v3600_v28, %v721_v34  ;;  %v509_v11 = vpop.xlane.xlu2 %508 }
 0x138   :  { %v569_v57 = vpop.f32.mrf.mxu1  ;;  %v611_v23 = vmul.f32 %v4361_v58, %v509_v11 }
 0x139   :  { %v3602_v59 = vpop.eup %3601  ;;  %v677_v60 = vmul.f32 1.442695, %v658_v56  ;;  %v570_v62 = vadd.f32 %v569_v57, %v245_v48  ;;  %v723_v63 = vadd.f32 %v3600_v28, %v722_v37 }
 0x13a   :  { %v3604_v1 = vpop.eup %3603  ;;  %v705_v2 = vadd.f32 1.0, %v3602_v59 }
 0x13b   :  { %3605 = vpow2.f32 %v677_v60  ;;  %v626_v38 = vadd.f32 %v610_v61, %v570_v62  ;;  %v727_v5 = vsel %vm726_vm5, %v3600_v28, %v723_v63  ;;  %v735_v6 = vmul.f32 %v3604_v1, %v704_v39 }
 0x13c   :  { %3607 = vrcp.f32 %v705_v2  ;;  %v732_v7 = vsel %vm729_vm6, %v731_v3, %v727_v5  ;;  %vm740_vm7 = vweird.f32 %v3604_v1  ;;  %v758_v46 = vand.u32 2147483647, %v705_v2 }
 0x13d   :  { %v4395_v8 = vadd.f32 %v4366_v0, %v626_v38  ;;  %v959_v9 = vmul.f32 %v732_v7, %v4369_v4  ;;  %v736_v10 = vsub.f32 1.0, %v735_v6  ;;  %vm741_vm9 = vmor %vm739_vm8, %vm740_vm7  ;;  %v760_v48 = vand.u32 2147483648, %v705_v2 }
 0x13e   :  { %v251_v14 = vpop.f32.mrf.mxu2  ;;  %vm754_vm12 = vweird.f32 %v705_v2  ;;  %vm759_vm14 = vcmp.eq.f32.partialorder %v758_v46, 8.507059e+37 }
 0x13f   :  { %v659_v15 = vsub.f32 0.0, %v4395_v8  ;;  %3442 = vmatmul.msk.f32.vlgmr.msrb.gmra.mxu2 %vm114_vm1, %v959_v9  ;;  %v737_v16 = vmul.f32 %v3604_v1, %v736_v10  ;;  %v512_v45 = vpop.xlane.xlu0 %511  ;;  %v761_v54 = vor.u32 1.1754944e-38, %v760_v48 }
 0x140   :  { %v572_v17 = vpop.f32.mrf.mxu1  ;;  %v612_v28 = vmul.f32 %v4361_v58, %v512_v45 }
 0x141   :  { %v3606_v18 = vpop.eup %3605  ;;  %v679_v21 = vmul.f32 1.442695, %v659_v15  ;;  %v573_v20 = vadd.f32 %v572_v17, %v248_v55  ;;  %v738_v25 = vadd.f32 %v3604_v1, %v737_v16 }
 0x142   :  { %v3608_v4 = vpop.eup %3607  ;;  %v706_v27 = vadd.f32 1.0, %v3606_v18 }
 0x143   :  { %3609 = vpow2.f32 %v679_v21  ;;  %v627_v29 = vadd.f32 %v611_v23, %v573_v20  ;;  %v742_v22 = vsel %vm741_vm9, %v3604_v1, %v738_v25  ;;  %v750_v41 = vmul.f32 %v3608_v4, %v705_v2 }
 0x144   :  { %3611 = vrcp.f32 %v706_v27  ;;  %v747_v42 = vsel %vm744_vm10, %v746_v40, %v742_v22  ;;  %vm755_vm11 = vweird.f32 %v3608_v4  ;;  %v773_v60 = vand.u32 2147483647, %v706_v27 }
 0x145   :  { %v4402_v44 = vadd.f32 %v4366_v0, %v627_v29  ;;  %v960_v31 = vmul.f32 %v747_v42, %v4378_v19  ;;  %v751_v24 = vsub.f32 1.0, %v750_v41  ;;  %vm756_vm13 = vmor %vm754_vm12, %vm755_vm11  ;;  %v775_v61 = vand.u32 2147483648, %v706_v27 }
 0x146   :  { %v254_v51 = vpop.f32.mrf.mxu2  ;;  %vm769_vm3 = vweird.f32 %v706_v27  ;;  %vm774_vm5 = vcmp.eq.f32.partialorder %v773_v60, 8.507059e+37 }
 0x147   :  { %v660_v49 = vsub.f32 0.0, %v4402_v44  ;;  %3443 = vmatmul.msk.f32.gmra.mxu2 %vm114_vm1, %v960_v31  ;;  %v752_v26 = vmul.f32 %v3608_v4, %v751_v24  ;;  %v515_v59 = vpop.xlane.xlu1 %514  ;;  %v776_v9 = vor.u32 1.1754944e-38, %v775_v61 }
 0x148   :  { %v575_v50 = vpop.f32.mrf.mxu1  ;;  %v613_v38 = vmul.f32 %v4361_v58, %v515_v59 }
 0x149   :  { %v3610_v52 = vpop.eup %3609  ;;  %v681_v35 = vmul.f32 1.442695, %v660_v49  ;;  %v576_v39 = vadd.f32 %v575_v50, %v251_v14  ;;  %v753_v30 = vadd.f32 %v3608_v4, %v752_v26 }
 0x14a   :  { %v3612_v19 = vpop.eup %3611  ;;  %v707_v43 = vadd.f32 1.0, %v3610_v52 }
 0x14b   :  { %3613 = vpow2.f32 %v681_v35  ;;  %v628_v34 = vadd.f32 %v612_v28, %v576_v39  ;;  %v757_v47 = vsel %vm756_vm13, %v3608_v4, %v753_v30  ;;  %v765_v53 = vmul.f32 %v3612_v19, %v706_v27 }
 0x14c   :  { %3615 = vrcp.f32 %v707_v43  ;;  %v762_v55 = vsel %vm759_vm14, %v761_v54, %v757_v47  ;;  %vm770_vm15 = vweird.f32 %v3612_v19  ;;  %v788_v21 = vand.u32 2147483647, %v707_v43 }
 0x14d   :  { %v4409_v56 = vadd.f32 %v4366_v0, %v628_v34  ;;  %v961_v37 = vmul.f32 %v762_v55, %v4384_v33  ;;  %v766_v57 = vsub.f32 1.0, %v765_v53  ;;  %vm771_vm4 = vmor %vm769_vm3, %vm770_vm15  ;;  %v790_v23 = vand.u32 2147483648, %v707_v43 }
 0x14e   :  { %v257_v10 = vpop.f32.mrf.mxu2  ;;  %vm784_vm7 = vweird.f32 %v707_v43  ;;  %vm789_vm9 = vcmp.eq.f32.partialorder %v788_v21, 8.507059e+37 }
 0x14f   :  { %v661_v62 = vsub.f32 0.0, %v4409_v56  ;;  %3444 = vmatmul.msk.f32.gmra.mxu2 %vm114_vm1, %v961_v37  ;;  %v767_v63 = vmul.f32 %v3612_v19, %v766_v57  ;;  %v518_v18 = vpop.xlane.xlu2 %517  ;;  %v791_v31 = vor.u32 1.1754944e-38, %v790_v23 }
 0x150   :  { %v578_v1 = vpop.f32.mrf.mxu1  ;;  %v614_v29 = vmul.f32 %v4361_v58, %v518_v18 }
 0x151   :  { %v3614_v2 = vpop.eup %3613  ;;  %v683_v3 = vmul.f32 1.442695, %v661_v62  ;;  %v579_v5 = vadd.f32 %v578_v1, %v254_v51  ;;  %v768_v6 = vadd.f32 %v3612_v19, %v767_v63 }
 0x152   :  { %v3616_v7 = vpop.eup %3615  ;;  %v708_v33 = vadd.f32 1.0, %v3614_v2 }
 0x153   :  { %3617 = vpow2.f32 %v683_v3  ;;  %v629_v11 = vadd.f32 %v613_v38, %v579_v5  ;;  %v772_v12 = vsel %vm771_vm4, %v3612_v19, %v768_v6  ;;  %v780_v13 = vmul.f32 %v3616_v7, %v707_v43 }
 0x154   :  { %3619 = vrcp.f32 %v708_v33  ;;  %v777_v14 = vsel %vm774_vm5, %v776_v9, %v772_v12  ;;  %vm785_vm6 = vweird.f32 %v3616_v7  ;;  %v803_v35 = vand.u32 2147483647, %v708_v33 }
 0x155   :  { %v4416_v15 = vadd.f32 %v4366_v0, %v629_v11  ;;  %v962_v16 = vmul.f32 %v777_v14, %v4390_v32  ;;  %v781_v17 = vsub.f32 1.0, %v780_v13  ;;  %vm786_vm8 = vmor %vm784_vm7, %vm785_vm6  ;;  %v805_v28 = vand.u32 2147483648, %v708_v33 }
 0x156   :  { %v260_v49 = vpop.f32.mrf.mxu2  ;;  %vm799_vm11 = vweird.f32 %v708_v33  ;;  %vm804_vm13 = vcmp.eq.f32.partialorder %v803_v35, 8.507059e+37 }
 0x157   :  { %v662_v20 = vsub.f32 0.0, %v4416_v15  ;;  %3445 = vmatmul.msk.f32.gmra.mxu2 %vm114_vm1, %v962_v16  ;;  %v782_v25 = vmul.f32 %v3616_v7, %v781_v17  ;;  %v521_v52 = vpop.xlane.xlu0 %520  ;;  %v806_v37 = vor.u32 1.1754944e-38, %v805_v28 }
 0x158   :  { %v581_v4 = vpop.f32.mrf.mxu1  ;;  %v615_v34 = vmul.f32 %v4361_v58, %v521_v52 }
 0x159   :  { %v3618_v27 = vpop.eup %3617  ;;  %v685_v40 = vmul.f32 1.442695, %v662_v20  ;;  %v582_v22 = vadd.f32 %v581_v4, %v257_v10  ;;  %v783_v41 = vadd.f32 %v3616_v7, %v782_v25 }
 0x15a   :  { %v3620_v42 = vpop.eup %3619  ;;  %v709_v32 = vadd.f32 1.0, %v3618_v27 }
 0x15b   :  { %3621 = vpow2.f32 %v685_v40  ;;  %v630_v24 = vadd.f32 %v614_v29, %v582_v22  ;;  %v787_v45 = vsel %vm786_vm8, %v3616_v7, %v783_v41  ;;  %v795_v46 = vmul.f32 %v3620_v42, %v708_v33 }
 0x15c   :  { %3623 = vrcp.f32 %v709_v32  ;;  %v792_v48 = vsel %vm789_vm9, %v791_v31, %v787_v45  ;;  %vm800_vm10 = vweird.f32 %v3620_v42  ;;  %v818_v38 = vand.u32 2147483647, %v709_v32 }
 0x15d   :  { %v4423_v26 = vadd.f32 %v4366_v0, %v630_v24  ;;  %v963_v50 = vmul.f32 %v792_v48, %v4395_v8  ;;  %v796_v51 = vsub.f32 1.0, %v795_v46  ;;  %vm801_vm12 = vmor %vm799_vm11, %vm800_vm10  ;;  %v820_v5 = vand.u32 2147483648, %v709_v32 }
 0x15e   :  { %v263_v3 = vpop.f32.mrf.mxu2  ;;  %vm814_vm15 = vweird.f32 %v709_v32  ;;  %vm819_vm4 = vcmp.eq.f32.partialorder %v818_v38, 8.507059e+37 }
 0x15f   :  { %v663_v39 = vsub.f32 0.0, %v4423_v26  ;;  %3446 = vmatmul.msk.f32.gmra.mxu2 %vm114_vm1, %v963_v50  ;;  %v797_v30 = vmul.f32 %v3620_v42, %v796_v51  ;;  %v524_v2 = vpop.xlane.xlu1 %523  ;;  %v821_v16 = vor.u32 1.1754944e-38, %v820_v5 }
 0x160   :  { %v584_v19 = vpop.f32.mrf.mxu1  ;;  %v616_v11 = vmul.f32 %v4361_v58, %v524_v2 }
 0x161   :  { %v3622_v43 = vpop.eup %3621  ;;  %v687_v54 = vmul.f32 1.442695, %v663_v39  ;;  %v585_v47 = vadd.f32 %v584_v19, %v260_v49  ;;  %v798_v53 = vadd.f32 %v3620_v42, %v797_v30 }
 0x162   :  { %v3624_v55 = vpop.eup %3623  ;;  %v710_v8 = vadd.f32 1.0, %v3622_v43 }
 0x163   :  { %3625 = vpow2.f32 %v687_v54  ;;  %v631_v57 = vadd.f32 %v615_v34, %v585_v47  ;;  %v802_v59 = vsel %vm801_vm12, %v3620_v42, %v798_v53  ;;  %v810_v60 = vmul.f32 %v3624_v55, %v709_v32 }
 0x164   :  { %3627 = vrcp.f32 %v710_v8  ;;  %v807_v61 = vsel %vm804_vm13, %v806_v37, %v802_v59  ;;  %vm815_vm14 = vweird.f32 %v3624_v55  ;;  %v835_v27 = vand.u32 2147483648, %v710_v8 }
 0x165   :  { %v4430_v62 = vadd.f32 %v4366_v0, %v631_v57  ;;  %v964_v63 = vmul.f32 %v807_v61, %v4402_v44  ;;  %v811_v1 = vsub.f32 1.0, %v810_v60  ;;  %vm816_vm3 = vmor %vm814_vm15, %vm815_vm14  ;;  %v833_v22 = vand.u32 2147483647, %v710_v8 }
 0x166   :  { %vm829_vm6 = vweird.f32 %v710_v8  ;;  %v836_v45 = vor.u32 1.1754944e-38, %v835_v27  ;;  %v266_v28 = vpop.f32.mrf.mxu2 }
 0x167   :  { %v664_v6 = vsub.f32 0.0, %v4430_v62  ;;  %3447 = vmatmul.msk.f32.gmra.mxu2 %vm114_vm1, %v964_v63  ;;  %v812_v7 = vmul.f32 %v3624_v55, %v811_v1  ;;  %vm834_vm8 = vcmp.eq.f32.partialorder %v833_v22, 8.507059e+37 }
 0x168   :  { %v587_v33 = vpop.f32.mrf.mxu1 }
 0x169   :  { %v3626_v9 = vpop.eup %3625  ;;  %v689_v10 = vmul.f32 1.442695, %v664_v6  ;;  %v588_v12 = vadd.f32 %v587_v33, %v263_v3  ;;  %v813_v13 = vadd.f32 %v3624_v55, %v812_v7 }
 0x16a   :  { %v3628_v44 = vpop.eup %3627  ;;  %v711_v14 = vadd.f32 1.0, %v3626_v9 }
 0x16b   :  { %3629 = vpow2.f32 %v689_v10  ;;  %v632_v17 = vadd.f32 %v616_v11, %v588_v12  ;;  %v817_v18 = vsel %vm816_vm3, %v3624_v55, %v813_v13  ;;  %v825_v21 = vmul.f32 %v3628_v44, %v710_v8 }
 0x16c   :  { %3631 = vrcp.f32 %v711_v14  ;;  %v822_v23 = vsel %vm819_vm4, %v821_v16, %v817_v18  ;;  %vm830_vm5 = vweird.f32 %v3628_v44  ;;  %v850_v51 = vand.u32 2147483648, %v711_v14 }
 0x16d   :  { %v4437_v20 = vadd.f32 %v4366_v0, %v632_v17  ;;  %v965_v25 = vmul.f32 %v822_v23, %v4409_v56  ;;  %v826_v4 = vsub.f32 1.0, %v825_v21  ;;  %vm831_vm7 = vmor %vm829_vm6, %vm830_vm5  ;;  %v848_v35 = vand.u32 2147483647, %v711_v14 }
 0x16e   :  { %vm844_vm10 = vweird.f32 %v711_v14  ;;  %v851_v34 = vor.u32 1.1754944e-38, %v850_v51  ;;  %v269_v63 = vpop.f32.mrf.mxu2 }
 0x16f   :  { %v665_v40 = vsub.f32 0.0, %v4437_v20  ;;  %3448 = vmatmul.msk.f32.gmra.mxu2 %vm114_vm1, %v965_v25  ;;  %v827_v29 = vmul.f32 %v3628_v44, %v826_v4  ;;  %vm849_vm12 = vcmp.eq.f32.partialorder %v848_v35, 8.507059e+37 }
 0x170   :  { %v590_v39 = vpop.f32.mrf.mxu1 }
 0x171   :  { %v3630_v41 = vpop.eup %3629  ;;  %v691_v42 = vmul.f32 1.442695, %v665_v40  ;;  %v828_v32 = vadd.f32 %v3628_v44, %v827_v29  ;;  %v591_v60 = vadd.f32 %v590_v39, %v266_v28 }
 0x172   :  { %v3632_v31 = vpop.eup %3631  ;;  %v712_v24 = vadd.f32 1.0, %v3630_v41 }
 0x173   :  { %3633 = vpow2.f32 %v691_v42  ;;  %v832_v46 = vsel %vm831_vm7, %v3628_v44, %v828_v32  ;;  %v840_v56 = vmul.f32 %v3632_v31, %v711_v14  ;;  %vm845_vm9 = vweird.f32 %v3632_v31 }
 0x174   :  { %3635 = vrcp.f32 %v712_v24  ;;  %v837_v48 = vsel %vm834_vm8, %v836_v45, %v832_v46  ;;  %vm846_vm11 = vmor %vm844_vm10, %vm845_vm9  ;;  %v865_v37 = vand.u32 2147483648, %v712_v24  ;;  %v863_v59 = vand.u32 2147483647, %v712_v24 }
 0x175   :  { %v966_v49 = vmul.f32 %v837_v48, %v4416_v15  ;;  %v841_v50 = vsub.f32 1.0, %v840_v56  ;;  %vm859_vm14 = vweird.f32 %v712_v24 }
 0x176   :  { %v866_v38 = vor.u32 1.1754944e-38, %v865_v37  ;;  %vm864_vm3 = vcmp.eq.f32.partialorder %v863_v59, 8.507059e+37  ;;  %v272_v4 = vpop.f32.mrf.mxu2 }
 0x177   :  { %3449 = vmatmul.msk.f32.gmra.mxu2 %vm114_vm1, %v966_v49  ;;  %v842_v52 = vmul.f32 %v3632_v31, %v841_v50 }
 0x178   :  { %v593_v1 = vpop.f32.mrf.mxu1 }
 0x179   :  { %v3634_v30 = vpop.eup %3633  ;;  %v843_v19 = vadd.f32 %v3632_v31, %v842_v52  ;;  %v594_v16 = vadd.f32 %v593_v1, %v269_v63 }
 0x17a   :  { %v3636_v43 = vpop.eup %3635  ;;  %v713_v54 = vadd.f32 1.0, %v3634_v30 }
 0x17b   :  { %v847_v47 = vsel %vm846_vm11, %v3632_v31, %v843_v19  ;;  %v855_v53 = vmul.f32 %v3636_v43, %v712_v24  ;;  %vm860_vm13 = vweird.f32 %v3636_v43 }
 0x17c   :  { %3637 = vrcp.f32 %v713_v54  ;;  %v852_v15 = vsel %vm849_vm12, %v851_v34, %v847_v47  ;;  %vm861_vm15 = vmor %vm859_vm14, %vm860_vm13  ;;  %v880_v11 = vand.u32 2147483648, %v713_v54  ;;  %v878_v44 = vand.u32 2147483647, %v713_v54 }
 0x17d   :  { %v967_v55 = vmul.f32 %v852_v15, %v4423_v26  ;;  %v856_v8 = vsub.f32 1.0, %v855_v53  ;;  %vm874_vm5 = vweird.f32 %v713_v54 }
 0x17e   :  { %v881_v21 = vor.u32 1.1754944e-38, %v880_v11  ;;  %vm879_vm7 = vcmp.eq.f32.partialorder %v878_v44, 8.507059e+37  ;;  %v275_v49 = vpop.f32.mrf.mxu2 }
 0x17f   :  { %3450 = vmatmul.msk.f32.gmra.mxu2 %vm114_vm1, %v967_v55  ;;  %v857_v57 = vmul.f32 %v3636_v43, %v856_v8 }
 0x180   :  { %v596_v27 = vpop.f32.mrf.mxu1 }
 0x181   :  { %v858_v61 = vadd.f32 %v3636_v43, %v857_v57  ;;  %v527_v3 = vpop.xlane.xlu2 %526  ;;  %v597_v32 = vadd.f32 %v596_v27, %v272_v4 }
 0x182   :  { %v3638_v2 = vpop.eup %3637  ;;  %v617_v5 = vmul.f32 %v4361_v58, %v527_v3 }
 0x183   :  { %v862_v6 = vsel %vm861_vm15, %v3636_v43, %v858_v61  ;;  %v870_v26 = vmul.f32 %v3638_v2, %v713_v54  ;;  %vm875_vm4 = vweird.f32 %v3638_v2 }
 0x184   :  { %v867_v7 = vsel %vm864_vm3, %v866_v38, %v862_v6  ;;  %v633_v33 = vadd.f32 %v617_v5, %v591_v60  ;;  %vm876_vm6 = vmor %vm874_vm5, %vm875_vm4 }
 0x185   :  { %v968_v9 = vmul.f32 %v867_v7, %v4430_v62  ;;  %v871_v10 = vsub.f32 1.0, %v870_v26 }
 0x186   :  { %v4449_v12 = vadd.f32 %v4366_v0, %v633_v33  ;;  %v278_v15 = vpop.f32.mrf.mxu2 }
 0x187   :  { %3451 = vmatmul.msk.f32.gmra.mxu2 %vm114_vm1, %v968_v9  ;;  %v872_v13 = vmul.f32 %v3638_v2, %v871_v10 }
 0x188   :  { %v666_v14 = vsub.f32 0.0, %v4449_v12  ;;  %v599_v50 = vpop.f32.mrf.mxu1 }
 0x189   :  { %v873_v17 = vadd.f32 %v3638_v2, %v872_v13  ;;  %v530_v18 = vpop.xlane.xlu0 %529  ;;  %v600_v52 = vadd.f32 %v599_v50, %v275_v49 }
 0x18a   :  { %v693_v23 = vmul.f32 1.442695, %v666_v14  ;;  %v618_v62 = vmul.f32 %v4361_v58, %v530_v18 }
 0x18b   :  { %v877_v25 = vsel %vm876_vm6, %v3638_v2, %v873_v17 }
 0x18c   :  { %v882_v40 = vsel %vm879_vm7, %v881_v21, %v877_v25  ;;  %3639 = vpow2.f32 %v693_v23  ;;  %v634_v29 = vadd.f32 %v618_v62, %v594_v16 }
 0x18d   :  { %v969_v22 = vmul.f32 %v882_v40, %v4437_v20 }
 0x18e   :  { %v4456_v41 = vadd.f32 %v4366_v0, %v634_v29 }
 0x18f   :  { %3452 = vmatmul.msk.f32.gmra.mxu2 %vm114_vm1, %v969_v22 }
 0x190   :  { %v667_v42 = vsub.f32 0.0, %v4456_v41  ;;  %v602_v55 = vpop.f32.mrf.mxu1 }
 0x191   :  { %v533_v31 = vpop.xlane.xlu1 %532  ;;  %v603_v60 = vadd.f32 %v602_v55, %v278_v15 }
 0x192   :  { %v3640_v24 = vpop.eup %3639  ;;  %v695_v45 = vmul.f32 1.442695, %v667_v42  ;;  %v619_v46 = vmul.f32 %v4361_v58, %v533_v31 }
 0x193   :  { %v714_v56 = vadd.f32 1.0, %v3640_v24 }
 0x194   :  { %3641 = vpow2.f32 %v695_v45  ;;  %v635_v48 = vadd.f32 %v619_v46, %v597_v32 }
 0x195   :  { %3643 = vrcp.f32 %v714_v56  ;;  %v895_v8 = vand.u32 2147483648, %v714_v56  ;;  %v893_v57 = vand.u32 2147483647, %v714_v56  ;;  %vm889_vm9 = vweird.f32 %v714_v56 }
 0x196   :  { %v4462_v20 = vadd.f32 %v4366_v0, %v635_v48 }
 0x197   :  { %v896_v5 = vor.u32 1.1754944e-38, %v895_v8  ;;  %vm894_vm11 = vcmp.eq.f32.partialorder %v893_v57, 8.507059e+37 }
 0x198   :  { %v668_v51 = vsub.f32 0.0, %v4462_v20 }
 0x199   :  { %v536_v35 = vpop.xlane.xlu2 %535 }
 0x19a   :  { %v3642_v28 = vpop.eup %3641  ;;  %v697_v39 = vmul.f32 1.442695, %v668_v51  ;;  %v620_v30 = vmul.f32 %v4361_v58, %v536_v35 }
 0x19b   :  { %v3644_v19 = vpop.eup %3643  ;;  %v715_v43 = vadd.f32 1.0, %v3642_v28 }
 0x19c   :  { %v885_v54 = vmul.f32 %v3644_v19, %v714_v56  ;;  %3645 = vpow2.f32 %v697_v39  ;;  %v636_v34 = vadd.f32 %v620_v30, %v600_v52  ;;  %vm890_vm8 = vweird.f32 %v3644_v19 }
 0x19d   :  { %3647 = vrcp.f32 %v715_v43  ;;  %vm891_vm10 = vmor %vm889_vm9, %vm890_vm8  ;;  %v910_v13 = vand.u32 2147483648, %v715_v43  ;;  %v908_v14 = vand.u32 2147483647, %v715_v43  ;;  %vm904_vm13 = vweird.f32 %v715_v43 }
 0x19e   :  { %v886_v47 = vsub.f32 1.0, %v885_v54  ;;  %v4467_v53 = vadd.f32 %v4366_v0, %v636_v34 }
 0x19f   :  { %v911_v23 = vor.u32 1.1754944e-38, %v910_v13  ;;  %vm909_vm15 = vcmp.eq.f32.partialorder %v908_v14, 8.507059e+37 }
 0x1a0   :  { %v887_v37 = vmul.f32 %v3644_v19, %v886_v47  ;;  %v669_v59 = vsub.f32 0.0, %v4467_v53 }
 0x1a1   :  { %v539_v61 = vpop.xlane.xlu0 %538 }
 0x1a2   :  { %v3646_v63 = vpop.eup %3645  ;;  %v888_v1 = vadd.f32 %v3644_v19, %v887_v37  ;;  %v699_v2 = vmul.f32 1.442695, %v669_v59  ;;  %v621_v3 = vmul.f32 %v4361_v58, %v539_v61  ;;  %v4484_v59 = vperm.slane %v4356_v36, 2 }
 0x1a3   :  { %v3648_v38 = vpop.eup %3647  ;;  %v716_v6 = vadd.f32 1.0, %v3646_v63 }
 0x1a4   :  { %v892_v26 = vsel %vm891_vm10, %v3644_v19, %v888_v1  ;;  %v900_v7 = vmul.f32 %v3648_v38, %v715_v43  ;;  %3649 = vpow2.f32 %v699_v2  ;;  %v637_v11 = vadd.f32 %v621_v3, %v603_v60 }
 0x1a5   :  { %v897_v33 = vsel %vm894_vm11, %v896_v5, %v892_v26  ;;  %3651 = vrcp.f32 %v716_v6  ;;  %vm905_vm12 = vweird.f32 %v3648_v38  ;;  %v925_v29 = vand.u32 2147483648, %v716_v6 }
 0x1a6   :  { %v970_v9 = vmul.f32 %v897_v33, %v4449_v12  ;;  %v901_v10 = vsub.f32 1.0, %v900_v7  ;;  %v4473_v58 = vadd.f32 %v4366_v0, %v637_v11  ;;  %vm906_vm14 = vmor %vm904_vm13, %vm905_vm12  ;;  %v923_v42 = vand.u32 2147483647, %v716_v6 }
 0x1a7   :  { %vm919_vm4 = vweird.f32 %v716_v6  ;;  %v926_v24 = vor.u32 1.1754944e-38, %v925_v29 }
 0x1a8   :  { %v902_v44 = vmul.f32 %v3648_v38, %v901_v10  ;;  %3453 = vmatmul.msk.f32.gmra.mxu2 %vm114_vm1, %v970_v9  ;;  %v670_v18 = vsub.f32 0.0, %v4473_v58  ;;  %vm924_vm6 = vcmp.eq.f32.partialorder %v923_v42, 8.507059e+37 }
 0x1aa   :  { %v3650_v16 = vpop.eup %3649  ;;  %v903_v17 = vadd.f32 %v3648_v38, %v902_v44  ;;  %v701_v4 = vmul.f32 1.442695, %v670_v18 }
 0x1ab   :  { %v3652_v21 = vpop.eup %3651  ;;  %v717_v12 = vadd.f32 1.0, %v3650_v16 }
 0x1ac   :  { %v907_v62 = vsel %vm906_vm14, %v3648_v38, %v903_v17  ;;  %v915_v25 = vmul.f32 %v3652_v21, %v716_v6  ;;  %vm920_vm3 = vweird.f32 %v3652_v21 }
 0x1ad   :  { %v912_v27 = vsel %vm909_vm15, %v911_v23, %v907_v62  ;;  %3653 = vrcp.f32 %v717_v12  ;;  %vm921_vm5 = vmor %vm919_vm4, %vm920_vm3  ;;  %v940_v51 = vand.u32 2147483648, %v717_v12  ;;  %v938_v35 = vand.u32 2147483647, %v717_v12 }
 0x1ae   :  { %v971_v0 = vmul.f32 %v912_v27, %v4456_v41  ;;  %v916_v40 = vsub.f32 1.0, %v915_v25  ;;  %3655 = vpow2.f32 %v701_v4  ;;  %vm934_vm8 = vweird.f32 %v717_v12 }
 0x1af   :  { %v941_v39 = vor.u32 1.1754944e-38, %v940_v51  ;;  %vm939_vm10 = vcmp.eq.f32.partialorder %v938_v35, 8.507059e+37 }
 0x1b0   :  { %v917_v22 = vmul.f32 %v3652_v21, %v916_v40  ;;  %3454 = vmatmul.msk.f32.gmra.mxu2 %vm114_vm1, %v971_v0 }
 0x1b2   :  { %v918_v32 = vadd.f32 %v3652_v21, %v917_v22 }
 0x1b3   :  { %v3654_v31 = vpop.eup %3653 }
 0x1b4   :  { %v3656_v45 = vpop.eup %3655  ;;  %v922_v46 = vsel %vm921_vm5, %v3652_v21, %v918_v32  ;;  %v930_v56 = vmul.f32 %v3654_v31, %v717_v12  ;;  %vm935_vm7 = vweird.f32 %v3654_v31 }
 0x1b5   :  { %v927_v48 = vsel %vm924_vm6, %v926_v24, %v922_v46  ;;  %v718_v49 = vadd.f32 1.0, %v3656_v45  ;;  %vm936_vm9 = vmor %vm934_vm8, %vm935_vm7 }
 0x1b6   :  { %v972_v41 = vmul.f32 %v927_v48, %v4462_v20  ;;  %v931_v50 = vsub.f32 1.0, %v930_v56 }
 0x1b7   :  { %3657 = vrcp.f32 %v718_v49  ;;  %v955_v47 = vand.u32 2147483648, %v718_v49  ;;  %v953_v8 = vand.u32 2147483647, %v718_v49  ;;  %vm949_vm12 = vweird.f32 %v718_v49 }
 0x1b8   :  { %v932_v52 = vmul.f32 %v3654_v31, %v931_v50  ;;  %3455 = vmatmul.msk.f32.gmra.mxu2 %vm114_vm1, %v972_v41 }
 0x1b9   :  { %v956_v57 = vor.u32 1.1754944e-38, %v955_v47  ;;  %vm954_vm14 = vcmp.eq.f32.partialorder %v953_v8, 8.507059e+37 }
 0x1ba   :  { %v933_v28 = vadd.f32 %v3654_v31, %v932_v52 }
 0x1bc   :  { %v937_v30 = vsel %vm936_vm9, %v3654_v31, %v933_v28 }
 0x1bd   :  { %v3658_v19 = vpop.eup %3657  ;;  %v942_v43 = vsel %vm939_vm10, %v941_v39, %v937_v30 }
 0x1be   :  { %v973_v54 = vmul.f32 %v942_v43, %v4467_v53  ;;  %v945_v34 = vmul.f32 %v3658_v19, %v718_v49  ;;  %vm950_vm11 = vweird.f32 %v3658_v19 }
 0x1bf   :  { %vm951_vm13 = vmor %vm949_vm12, %vm950_vm11 }
 0x1c0   :  { %v946_v20 = vsub.f32 1.0, %v945_v34  ;;  %3456 = vmatmul.msk.f32.gmra.mxu2 %vm114_vm1, %v973_v54 }
 0x1c2   :  { %v1041_v15 = vpop.f32.mrf.mxu2  ;;  %v947_v55 = vmul.f32 %v3658_v19, %v946_v20 }
 0x1c3   :  { %v4488_v63 = vadd.f32 %v1041_v15, %v4484_v59 }
 0x1c4   :  { %v948_v37 = vadd.f32 %v3658_v19, %v947_v55 }
 0x1c5   :  { %v1089_v3 = vsub.f32 0.0, %v4488_v63 }
 0x1c6   :  { %v952_v60 = vsel %vm951_vm13, %v3658_v19, %v948_v37 }
 0x1c7   :  { %v957_v61 = vsel %vm954_vm14, %v956_v57, %v952_v60  ;;  %v1105_v36 = vmul.f32 1.442695, %v1089_v3 }
 0x1c8   :  { %v974_v53 = vmul.f32 %v957_v61, %v4473_v58  ;;  %v3869_v61 = vld [vmem:[%s5929_s0] sm:$0xff] }
 0x1c9   :  { %3659 = vpow2.f32 %v1105_v36 }
 0x1ca   :  { %v1044_v1 = vpop.f32.mrf.mxu2  ;;  %3457 = vmatmul.msk.f32.gmra.mxu2 %vm114_vm1, %v974_v53 }
 0x1cb   :  { %v4492_v2 = vadd.f32 %v1044_v1, %v4484_v59 }
 0x1cd   :  { %v1090_v38 = vsub.f32 0.0, %v4492_v2 }
 0x1cf   :  { %v1107_v6 = vmul.f32 1.442695, %v1090_v38  ;;  %v3660_v11 = vpop.eup %3659 }
 0x1d0   :  { %v4504_v14 = vadd.f32 1.0, %v3660_v11 }
 0x1d1   :  { %3661 = vpow2.f32 %v1107_v6 }
 0x1d2   :  { %v1047_v5 = vpop.f32.mrf.mxu2  ;;  %vm1158_vm15 = vweird.f32 %v4504_v14  ;;  %v1162_v30 = vand.u32 2147483647, %v4504_v14  ;;  %v1164_v34 = vand.u32 2147483648, %v4504_v14 }
 0x1d3   :  { %v4497_v26 = vadd.f32 %v1047_v5, %v4484_v59 }
 0x1d4   :  { %v1165_v5 = vor.u32 1.1754944e-38, %v1164_v34  ;;  %vm1163_vm8 = vcmp.eq.f32.partialorder %v1162_v30, 8.507059e+37 }
 0x1d5   :  { %v1091_v7 = vsub.f32 0.0, %v4497_v26 }
 0x1d7   :  { %v1109_v33 = vmul.f32 1.442695, %v1091_v7  ;;  %v3662_v13 = vpop.eup %3661 }
 0x1d8   :  { %v4506_v16 = vadd.f32 1.0, %v3662_v13 }
 0x1d9   :  { %3663 = vpow2.f32 %v1109_v33 }
 0x1da   :  { %v1050_v9 = vpop.f32.mrf.mxu2  ;;  %vm1173_vm5 = vweird.f32 %v4506_v16  ;;  %v1177_v37 = vand.u32 2147483647, %v4506_v16  ;;  %v1179_v57 = vand.u32 2147483648, %v4506_v16 }
 0x1db   :  { %v4501_v10 = vadd.f32 %v1050_v9, %v4484_v59 }
 0x1dc   :  { %vm1178_vm9 = vcmp.eq.f32.partialorder %v1177_v37, 8.507059e+37  ;;  %v1180_v33 = vor.u32 1.1754944e-38, %v1179_v57 }
 0x1dd   :  { %v1092_v44 = vsub.f32 0.0, %v4501_v10 }
 0x1df   :  { %v1111_v58 = vmul.f32 1.442695, %v1092_v44  ;;  %v3664_v18 = vpop.eup %3663 }
 0x1e0   :  { %v4514_v12 = vadd.f32 1.0, %v3664_v18 }
 0x1e1   :  { %3665 = vpow2.f32 %v1111_v58 }
 0x1e2   :  { %v1053_v17 = vpop.f32.mrf.mxu2  ;;  %3667 = vrcp.f32 %v4504_v14  ;;  %vm1188_vm11 = vweird.f32 %v4514_v12 }
 0x1e3   :  { %v4510_v21 = vadd.f32 %v1053_v17, %v4484_v59  ;;  %3669 = vrcp.f32 %v4506_v16  ;;  %v1194_v17 = vand.u32 2147483648, %v4514_v12 }
 0x1e5   :  { %v1093_v23 = vsub.f32 0.0, %v4510_v21 }
 0x1e7   :  { %v3666_v62 = vpop.eup %3665  ;;  %v1113_v25 = vmul.f32 1.442695, %v1093_v23 }
 0x1e8   :  { %v4516_v4 = vadd.f32 1.0, %v3666_v62  ;;  %v3668_v27 = vpop.eup %3667 }
 0x1e9   :  { %3671 = vpow2.f32 %v1113_v25  ;;  %v4518_v0 = vpop.eup %3669  ;;  %v1154_v29 = vmul.f32 %v3668_v27, %v4504_v14  ;;  %vm1159_vm3 = vweird.f32 %v3668_v27 }
 0x1ea   :  { %3673 = vrcp.f32 %v4514_v12  ;;  %v1056_v40 = vpop.f32.mrf.mxu2  ;;  %v1169_v42 = vmul.f32 %v4518_v0, %v4506_v16  ;;  %vm1174_vm4 = vweird.f32 %v4518_v0  ;;  %vm4559_vm6 = vmor %vm1158_vm15, %vm1159_vm3  ;;  %v1192_v16 = vand.u32 2147483647, %v4514_v12 }
 0x1eb   :  { %3675 = vrcp.f32 %v4516_v4  ;;  %v4524_v22 = vadd.f32 %v1056_v40, %v4484_v59  ;;  %v1155_v45 = vsub.f32 1.0, %v1154_v29  ;;  %vm1175_vm7 = vmor %vm1173_vm5, %vm1174_vm4  ;;  %vm1203_vm14 = vweird.f32 %v4516_v4 }
 0x1ec   :  { %v1170_v48 = vsub.f32 1.0, %v1169_v42  ;;  %v1207_v42 = vand.u32 2147483647, %v4516_v4  ;;  %vm1193_vm5 = vcmp.eq.f32.partialorder %v1192_v16, 8.507059e+37 }
 0x1ed   :  { %v1094_v32 = vsub.f32 0.0, %v4524_v22  ;;  %v1156_v51 = vmul.f32 %v3668_v27, %v1155_v45 }
 0x1ee   :  { %v1171_v35 = vmul.f32 %v4518_v0, %v1170_v48 }
 0x1ef   :  { %v3672_v31 = vpop.eup %3671  ;;  %v1115_v56 = vmul.f32 1.442695, %v1094_v32  ;;  %v1157_v54 = vadd.f32 %v3668_v27, %v1156_v51 }
 0x1f0   :  { %v4529_v24 = vpop.eup %3673  ;;  %v4531_v46 = vadd.f32 1.0, %v3672_v31  ;;  %v1172_v47 = vadd.f32 %v4518_v0, %v1171_v35  ;;  %v1195_v31 = vor.u32 1.1754944e-38, %v1194_v17 }
 0x1f1   :  { %v4533_v49 = vpop.eup %3675  ;;  %v1184_v50 = vmul.f32 %v4529_v24, %v4514_v12  ;;  %v1161_v36 = vsel %vm4559_vm6, %v3668_v27, %v1157_v54  ;;  %vm1189_vm10 = vweird.f32 %v4529_v24  ;;  %v1209_v27 = vand.u32 2147483648, %v4516_v4  ;;  %v100_v12 = vld [vmem:[%s5934_s5 + $0x58] sm:$0xff] }
 0x1f2   :  { %3677 = vrcp.f32 %v4531_v46  ;;  %v1059_v41 = vpop.f32.mrf.mxu2  ;;  %v1199_v28 = vmul.f32 %v4533_v49, %v4516_v4  ;;  %v1176_v6 = vsel %vm1175_vm7, %v4518_v0, %v1172_v47  ;;  %v1166_v11 = vsel %vm1163_vm8, %v1165_v5, %v1161_v36  ;;  %vm4587_vm13 = vmor %vm1188_vm11, %vm1189_vm10  ;;  %1597 = vmatpush.msra.mxu3 %v100_v12  ;;  %v99_v4 = vld [vmem:[%s5934_s5 + $0x50] sm:$0xff] }
 0x1f3   :  { %3679 = vpow2.f32 %v1115_v56  ;;  %v4539_v52 = vadd.f32 %v1059_v41, %v4484_v59  ;;  %v1185_v19 = vsub.f32 1.0, %v1184_v50  ;;  %v1181_v58 = vsel %vm1178_vm9, %v1180_v33, %v1176_v6 }
 0x1f4   :  { %v1200_v15 = vsub.f32 1.0, %v1199_v28  ;;  %vm1204_vm12 = vweird.f32 %v4533_v49  ;;  %v1224_v32 = vand.u32 2147483648, %v4531_v46  ;;  %vm1218_vm4 = vweird.f32 %v4531_v46  ;;  %1598 = vmatpush.msra.mxu3 %v99_v4  ;;  %v98_v28 = vld [vmem:[%s5934_s5 + $0x48] sm:$0xff] }
 0x1f5   :  { %v1095_v39 = vsub.f32 0.0, %v4539_v52  ;;  %v1186_v53 = vmul.f32 %v4529_v24, %v1185_v19  ;;  %vm4606_vm3 = vmor %vm1203_vm14, %vm1204_vm12  ;;  %v1222_v56 = vand.u32 2147483647, %v4531_v46  ;;  %v1394_v48 = vmul.f32 %v1181_v58, %v4492_v2 }
 0x1f6   :  { %v1201_v7 = vmul.f32 %v4533_v49, %v1200_v15  ;;  %v1210_v51 = vor.u32 1.1754944e-38, %v1209_v27  ;;  %vm1208_vm7 = vcmp.eq.f32.partialorder %v1207_v42, 8.507059e+37  ;;  %1599 = vmatpush.msra.mxu3 %v98_v28 }
 0x1f7   :  { %v1117_v20 = vmul.f32 1.442695, %v1095_v39  ;;  %v1187_v13 = vadd.f32 %v4529_v24, %v1186_v53  ;;  %vm1223_vm8 = vcmp.eq.f32.partialorder %v1222_v56, 8.507059e+37  ;;  %v1416_v53 = vsel %vm114_vm1, %v1394_v48, 0.0 }
 0x1f8   :  { %v4547_v43 = vpop.eup %3677  ;;  %v1202_v18 = vadd.f32 %v4533_v49, %v1201_v7  ;;  %v106_v7 = vld [vmem:[%s5935_s6 + $0x28] sm:$0xff]  ;;  %v1417_v58 = vrot.slane %v1416_v53, 4 }
 0x1f9   :  { %v1214_v55 = vmul.f32 %v4547_v43, %v4531_v46  ;;  %v3680_v8 = vpop.eup %3679  ;;  %3681 = vpow2.f32 %v1117_v20  ;;  %vm1219_vm15 = vweird.f32 %v4547_v43  ;;  %v1191_v29 = vsel %vm4587_vm13, %v4529_v24, %v1187_v13  ;;  %v97_v20 = vld [vmem:[%s5934_s5 + $0x40] sm:$0xff] }
 0x1fa   :  { %v1062_v60 = vpop.f32.mrf.mxu2  ;;  %v4564_v3 = vadd.f32 1.0, %v3680_v8  ;;  %v1206_v41 = vsel %vm4606_vm3, %v4533_v49, %v1202_v18  ;;  %vm4622_vm6 = vmor %vm1218_vm4, %vm1219_vm15  ;;  %v1196_v46 = vsel %vm1193_vm5, %v1195_v31, %v1191_v29  ;;  %v1225_v49 = vor.u32 1.1754944e-38, %v1224_v32  ;;  %1600 = vmatpush.msra.mxu3 %v97_v20  ;;  %v3870_v29 = vld [vmem:[%s5929_s0 + $0x8] sm:$0xff] }
 0x1fb   :  { %v1215_v1 = vsub.f32 1.0, %v1214_v55  ;;  %v4567_v38 = vadd.f32 %v1062_v60, %v4484_v59  ;;  %v1211_v19 = vsel %vm1208_vm7, %v1210_v51, %v1206_v41  ;;  %v1395_v15 = vmul.f32 %v1196_v46, %v4497_v26  ;;  %v107_v60 = vld [vmem:[%s5935_s6 + $0x30] sm:$0xff]  ;;  %3460 = vmatmul.msk.f32.vlgmr.msra.gmra.mxu3 %vm114_vm1, %v3869_v61 }
 0x1fc   :  { %3683 = vrcp.f32 %v4564_v3  ;;  %v1237_v39 = vand.u32 2147483647, %v4564_v3  ;;  %v1239_v30 = vand.u32 2147483648, %v4564_v3  ;;  %v1393_v8 = vmul.f32 %v1166_v11, %v4488_v63 }
 0x1fd   :  { %v1216_v9 = vmul.f32 %v4547_v43, %v1215_v1  ;;  %v1096_v44 = vsub.f32 0.0, %v4567_v38  ;;  %vm1233_vm10 = vweird.f32 %v4564_v3  ;;  %v1396_v63 = vmul.f32 %v1211_v19, %v4501_v10 }
 0x1fe   :  { %vm1238_vm12 = vcmp.eq.f32.partialorder %v1237_v39, 8.507059e+37  ;;  %v1240_v1 = vor.u32 1.1754944e-38, %v1239_v30  ;;  %v1423_v33 = vsel %vm114_vm1, %v1395_v15, 0.0  ;;  %v1418_v45 = vadd.f32 %v1417_v58, %v1416_v53 }
 0x1ff   :  { %v3682_v14 = vpop.eup %3681  ;;  %v1119_v62 = vmul.f32 1.442695, %v1096_v44  ;;  %v1217_v0 = vadd.f32 %v4547_v43, %v1216_v9  ;;  %v1430_v16 = vsel %vm114_vm1, %v1396_v63, 0.0  ;;  %v1424_v17 = vrot.slane %v1423_v33, 4 }
 0x200   :  { %v4585_v23 = vadd.f32 1.0, %v3682_v14  ;;  %v1409_v14 = vsel %vm114_vm1, %v1393_v8, 0.0 }
 0x201   :  { %v1221_v35 = vsel %vm4622_vm6, %v4547_v43, %v1217_v0  ;;  %v108_v43 = vld [vmem:[%s5935_s6 + $0x38] sm:$0xff]  ;;  %v1410_v27 = vrot.slane %v1409_v14, 4  ;;  %v1431_v0 = vrot.slane %v1430_v16, 4 }
 0x202   :  { %v3684_v40 = vpop.eup %3683  ;;  %3685 = vrcp.f32 %v4585_v23  ;;  %v4637_v34 = vpop.f32.mrf.mxu2  ;;  %v1226_v55 = vsel %vm1223_vm8, %v1225_v49, %v1221_v35  ;;  %1574 = vmatpush.msrb.mxu1 %v108_v43  ;;  %v1252_v10 = vand.u32 2147483647, %v4585_v23  ;;  %v1254_v11 = vand.u32 2147483648, %v4585_v23 }
 0x203   :  { %v1229_v24 = vmul.f32 %v3684_v40, %v4564_v3  ;;  %3687 = vpow2.f32 %v1119_v62  ;;  %vm1234_vm9 = vweird.f32 %v3684_v40  ;;  %v1397_v3 = vmul.f32 %v1226_v55, %v4510_v21  ;;  %v105_v21 = vld [vmem:[%s5935_s6 + $0x20] sm:$0xff]  ;;  %3461 = vmatmul.msk.f32.gmra.mxu3 %vm114_vm1, %v3870_v29 }
 0x204   :  { %vm1235_vm11 = vmor %vm1233_vm10, %vm1234_vm9  ;;  %1575 = vmatpush.msrb.mxu1 %v107_v60  ;;  %vm1248_vm14 = vweird.f32 %v4585_v23  ;;  %v1255_v25 = vor.u32 1.1754944e-38, %v1254_v11  ;;  %vm1253_vm3 = vcmp.eq.f32.partialorder %v1252_v10, 8.507059e+37  ;;  %v1411_v48 = vadd.f32 %v1410_v27, %v1409_v14 }
 0x205   :  { %v1230_v2 = vsub.f32 1.0, %v1229_v24  ;;  %v1437_v18 = vsel %vm114_vm1, %v1397_v3, 0.0  ;;  %v1432_v41 = vadd.f32 %v1431_v0, %v1430_v16  ;;  %v4690_v3 = vadd.f32 %v4637_v34, %v4484_v59 }
 0x206   :  { %1576 = vmatpush.msrb.mxu1 %v106_v7  ;;  %v1438_v42 = vrot.slane %v1437_v18, 4  ;;  %vm1537_vm8 = vcmask 1041409   ;;  %vm1539_vm9 = vcmask 1042434   ;;  %vm1541_vm10 = vcmask 1043459  }
 0x207   :  { %v1231_v54 = vmul.f32 %v3684_v40, %v1230_v2  ;;  %v1419_v2 = vrot.slane %v1418_v45, 2  ;;  %v1433_v43 = vrot.slane %v1432_v41, 2  ;;  %v1097_v34 = vsub.f32 0.0, %v4690_v3 }
 0x208   :  { %v3686_v47 = vpop.eup %3685  ;;  %1577 = vmatpush.msrb.mxu1 %v105_v21  ;;  %v1439_v46 = vadd.f32 %v1438_v42, %v1437_v18 }
 0x209   :  { %v1232_v37 = vadd.f32 %v3684_v40, %v1231_v54  ;;  %v1244_v57 = vmul.f32 %v3686_v47, %v4585_v23  ;;  %v3688_v26 = vpop.eup %3687  ;;  %vm1249_vm13 = vweird.f32 %v3686_v47  ;;  %v1425_v23 = vadd.f32 %v1424_v17, %v1423_v33 }
 0x20a   :  { %v4657_v6 = vadd.f32 1.0, %v3688_v26  ;;  %vm1250_vm15 = vmor %vm1248_vm14, %vm1249_vm13  ;;  %v1440_v20 = vrot.slane %v1439_v46, 2  ;;  %v1420_v15 = vadd.f32 %v1419_v2, %v1418_v45  ;;  %v1434_v63 = vadd.f32 %v1433_v43, %v1432_v41 }
 0x20b   :  { %v1236_v36 = vsel %vm1235_vm11, %v3684_v40, %v1232_v37  ;;  %v1245_v5 = vsub.f32 1.0, %v1244_v57  ;;  %v1068_v40 = vpop.f32.mrf.mxu2  ;;  %v1426_v28 = vrot.slane %v1425_v23, 2  ;;  %vm1543_vm11 = vcmask 1044484  }
 0x20c   :  { %v1241_v9 = vsel %vm1238_vm12, %v1240_v1, %v1236_v36  ;;  %3689 = vrcp.f32 %v4657_v6  ;;  %v1269_v39 = vand.u32 2147483648, %v4657_v6  ;;  %v1267_v54 = vand.u32 2147483647, %v4657_v6 }
 0x20d   :  { %v1398_v13 = vmul.f32 %v1241_v9, %v4524_v22  ;;  %v1246_v44 = vmul.f32 %v3686_v47, %v1245_v5  ;;  %vm1263_vm5 = vweird.f32 %v4657_v6  ;;  %v4686_v37 = vadd.f32 %v1068_v40, %v4484_v59 }
 0x20e   :  { %v1270_v8 = vor.u32 1.1754944e-38, %v1269_v39  ;;  %v1427_v60 = vadd.f32 %v1426_v28, %v1425_v23  ;;  %vm1268_vm7 = vcmp.eq.f32.partialorder %v1267_v54, 8.507059e+37  ;;  %v1441_v36 = vadd.f32 %v1440_v20, %v1439_v46 }
 0x20f   :  { %v1247_v62 = vadd.f32 %v3686_v47, %v1246_v44  ;;  %v1444_v22 = vsel %vm114_vm1, %v1398_v13, 0.0  ;;  %v1421_v7 = vrot.slane %v1420_v15, 1  ;;  %v1098_v9 = vsub.f32 0.0, %v4686_v37 }
 0x210   :  { %v1445_v56 = vrot.slane %v1444_v22, 4  ;;  %v1428_v10 = vrot.slane %v1427_v60, 1  ;;  %v1435_v21 = vrot.slane %v1434_v63, 1  ;;  %v1442_v58 = vrot.slane %v1441_v36, 1 }
 0x211   :  { %v1251_v12 = vsel %vm1250_vm15, %v3686_v47, %v1247_v62  ;;  %v1123_v62 = vmul.f32 1.442695, %v1098_v9  ;;  %v1121_v40 = vmul.f32 1.442695, %v1097_v34  ;;  %vm1545_vm12 = vcmask 1045509  }
 0x212   :  { %v1256_v32 = vsel %vm1253_vm3, %v1255_v25, %v1251_v12  ;;  %v3690_v31 = vpop.eup %3689  ;;  %v1446_v49 = vadd.f32 %v1445_v56, %v1444_v22  ;;  %v1429_v22 = vadd.f32 %v1428_v10, %v1427_v60  ;;  %v1436_v0 = vadd.f32 %v1435_v21, %v1434_v63 }
 0x213   :  { %v1399_v24 = vmul.f32 %v1256_v32, %v4539_v52  ;;  %v1259_v4 = vmul.f32 %v3690_v31, %v4657_v6  ;;  %vm1264_vm4 = vweird.f32 %v3690_v31  ;;  %v1412_v52 = vrot.slane %v1411_v48, 2  ;;  %v1071_v57 = vpop.f32.mrf.mxu2 }
 0x214   :  { %v1447_v55 = vrot.slane %v1446_v49, 2  ;;  %vm1265_vm6 = vmor %vm1263_vm5, %vm1264_vm4  ;;  %v4694_v6 = vadd.f32 %v1071_v57, %v4484_v59  ;;  %v1443_v29 = vadd.f32 %v1442_v58, %v1441_v36  ;;  %3691 = vpow2.f32 %v1123_v62 }
 0x215   :  { %v1451_v50 = vsel %vm114_vm1, %v1399_v24, 0.0  ;;  %v1260_v35 = vsub.f32 1.0, %v1259_v4  ;;  %v1413_v53 = vadd.f32 %v1412_v52, %v1411_v48  ;;  %3693 = vpow2.f32 %v1121_v40 }
 0x216   :  { %v1452_v51 = vrot.slane %v1451_v50, 4  ;;  %v1448_v33 = vadd.f32 %v1447_v55, %v1446_v49  ;;  %v1099_v16 = vsub.f32 0.0, %v4694_v6  ;;  %vm1547_vm13 = vcmask 1046534  }
 0x217   :  { %v1261_v19 = vmul.f32 %v3690_v31, %v1260_v35  ;;  %v1414_v44 = vrot.slane %v1413_v53, 1  ;;  %vm5946_vm14 = vcmask 1047559  }
 0x218   :  { %v1453_v30 = vadd.f32 %v1452_v51, %v1451_v50  ;;  %v1449_v17 = vrot.slane %v1448_v33, 1  ;;  %v1125_v42 = vmul.f32 1.442695, %v1099_v16 }
 0x219   :  { %v1262_v47 = vadd.f32 %v3690_v31, %v1261_v19  ;;  %v1415_v27 = vadd.f32 %v1414_v44, %v1413_v53 }
 0x21a   :  { %v1454_v61 = vrot.slane %v1453_v30, 2  ;;  %3695 = vpow2.f32 %v1125_v42  ;;  %v3692_v2 = vpop.eup %3691 }
 0x21b   :  { %v1266_v26 = vsel %vm1265_vm6, %v3690_v31, %v1262_v47  ;;  %v1450_v31 = vadd.f32 %v1449_v17, %v1448_v33  ;;  %v3694_v39 = vpop.eup %3693  ;;  %v4712_v19 = vadd.f32 1.0, %v3692_v2 }
 0x21c   :  { %v1271_v1 = vsel %vm1268_vm7, %v1270_v8, %v1266_v26  ;;  %v1455_v11 = vadd.f32 %v1454_v61, %v1453_v30  ;;  %v4714_v52 = vadd.f32 1.0, %v3694_v39 }
 0x21d   :  { %v1400_v5 = vmul.f32 %v1271_v1, %v4567_v38  ;;  %v1422_v38 = vadd.f32 %v1421_v7, %v1420_v15  ;;  %vm1293_vm15 = vweird.f32 %v4712_v19  ;;  %v1297_v42 = vand.u32 2147483647, %v4712_v19 }
 0x21e   :  { %v1456_v25 = vrot.slane %v1455_v11, 1  ;;  %vm1278_vm7 = vweird.f32 %v4714_v52 }
 0x21f   :  { %v1458_v13 = vsel %vm114_vm1, %v1400_v5, 0.0  ;;  %v1538_v32 = vsel %vm1537_vm8, %v1422_v38, %v1415_v27 }
 0x220   :  { %v1459_v14 = vrot.slane %v1458_v13, 4  ;;  %v1540_v23 = vsel %vm1539_vm9, %v1429_v22, %v1538_v32  ;;  %v1457_v56 = vadd.f32 %v1456_v25, %v1455_v11  ;;  %v3696_v30 = vpop.eup %3695  ;;  %v1284_v22 = vand.u32 2147483648, %v4714_v52 }
 0x221   :  { %v1542_v4 = vsel %vm1541_vm10, %v1436_v0, %v1540_v23  ;;  %v4716_v43 = vadd.f32 1.0, %v3696_v30  ;;  %v1299_v32 = vand.u32 2147483648, %v4712_v19 }
 0x222   :  { %v1460_v18 = vadd.f32 %v1459_v14, %v1458_v13  ;;  %v1544_v48 = vsel %vm1543_vm11, %v1443_v29, %v1542_v4 }
 0x223   :  { %v1546_v50 = vsel %vm1545_vm12, %v1450_v31, %v1544_v48  ;;  %v1312_v23 = vand.u32 2147483647, %v4716_v43  ;;  %v1314_v4 = vand.u32 2147483648, %v4716_v43  ;;  %vm1308_vm2 = vweird.f32 %v4716_v43 }
 0x224   :  { %v1461_v12 = vrot.slane %v1460_v18, 2  ;;  %v1548_v51 = vsel %vm1547_vm13, %v1457_v56, %v1546_v50 }
 0x226   :  { %v1462_v45 = vadd.f32 %v1461_v12, %v1460_v18  ;;  %v1282_v18 = vand.u32 2147483647, %v4714_v52 }
 0x228   :  { %v1463_v24 = vrot.slane %v1462_v45, 1 }
 0x22a   :  { %v1464_v41 = vadd.f32 %v1463_v24, %v1462_v45 }
 0x22b   :  { %v1074_v46 = vpop.f32.mrf.mxu2 }
 0x22c   :  { %v4707_v35 = vadd.f32 %v1074_v46, %v4484_v59  ;;  %v1550_v28 = vsel %vm5946_vm14, %v1464_v41, %v1548_v51 }
 0x22d   :  { %3458 = vmatmul.msk.f32.vlgmr.msrb.gmra.mxu1 %vm114_vm1, %v1550_v28  ;;  %v1300_v28 = vor.u32 1.1754944e-38, %v1299_v32 }
 0x22e   :  { %v1100_v49 = vsub.f32 0.0, %v4707_v35 }
 0x230   :  { %v1127_v54 = vmul.f32 1.442695, %v1100_v49 }
 0x232   :  { %3697 = vpow2.f32 %v1127_v54 }
 0x233   :  { %v1077_v20 = vpop.f32.mrf.mxu2  ;;  %3699 = vrcp.f32 %v4712_v19 }
 0x234   :  { %v4720_v47 = vadd.f32 %v1077_v20, %v4484_v59  ;;  %3701 = vrcp.f32 %v4714_v52 }
 0x235   :  { %3703 = vrcp.f32 %v4716_v43 }
 0x236   :  { %v1101_v15 = vsub.f32 0.0, %v4720_v47 }
 0x238   :  { %v3698_v55 = vpop.eup %3697  ;;  %v1129_v8 = vmul.f32 1.442695, %v1101_v15  ;;  %v1315_v15 = vor.u32 1.1754944e-38, %v1314_v4 }
 0x239   :  { %v4725_v57 = vadd.f32 1.0, %v3698_v55  ;;  %v4727_v60 = vpop.eup %3699 }
 0x23a   :  { %3705 = vpow2.f32 %v1129_v8  ;;  %v4729_v26 = vpop.eup %3701  ;;  %v1289_v1 = vmul.f32 %v4727_v60, %v4712_v19  ;;  %vm1294_vm3 = vweird.f32 %v4727_v60  ;;  %v1285_v19 = vor.u32 1.1754944e-38, %v1284_v22 }
 0x23b   :  { %v1080_v61 = vpop.f32.mrf.mxu2  ;;  %3707 = vrcp.f32 %v4725_v57  ;;  %v4735_v63 = vpop.eup %3703  ;;  %v1274_v5 = vmul.f32 %v4729_v26, %v4714_v52  ;;  %vm1279_vm4 = vweird.f32 %v4729_v26  ;;  %vm4777_vm5 = vmor %vm1293_vm15, %vm1294_vm3  ;;  %vm4793_vm3 = vcmp.eq.f32.partialorder %v1282_v18, 8.507059e+37 }
 0x23c   :  { %v4733_v53 = vadd.f32 %v1080_v61, %v4484_v59  ;;  %v1304_v33 = vmul.f32 %v4735_v63, %v4716_v43  ;;  %v1290_v10 = vsub.f32 1.0, %v1289_v1  ;;  %vm1309_vm6 = vweird.f32 %v4735_v63  ;;  %vm4789_vm15 = vmor %vm1278_vm7, %vm1279_vm4 }
 0x23d   :  { %v1275_v44 = vsub.f32 1.0, %v1274_v5  ;;  %vm1298_vm4 = vcmp.eq.f32.partialorder %v1297_v42, 8.507059e+37  ;;  %vm4811_vm7 = vcmp.eq.f32.partialorder %v1312_v23, 8.507059e+37  ;;  %v1329_v61 = vand.u32 2147483648, %v4725_v57 }
 0x23e   :  { %v1102_v36 = vsub.f32 0.0, %v4733_v53  ;;  %v1305_v14 = vsub.f32 1.0, %v1304_v33  ;;  %v1291_v58 = vmul.f32 %v4727_v60, %v1290_v10 }
 0x23f   :  { %v1276_v17 = vmul.f32 %v4729_v26, %v1275_v44 }
 0x240   :  { %v3706_v7 = vpop.eup %3705  ;;  %v1131_v9 = vmul.f32 1.442695, %v1102_v36  ;;  %v1306_v25 = vmul.f32 %v4735_v63, %v1305_v14  ;;  %v1292_v12 = vadd.f32 %v4727_v60, %v1291_v58 }
 0x241   :  { %v4744_v11 = vadd.f32 1.0, %v3706_v7  ;;  %v4746_v13 = vpop.eup %3707  ;;  %v1277_v45 = vadd.f32 %v4729_v26, %v1276_v17 }
 0x242   :  { %3709 = vpow2.f32 %v1131_v9  ;;  %v1319_v16 = vmul.f32 %v4746_v13, %v4725_v57  ;;  %v1307_v24 = vadd.f32 %v4735_v63, %v1306_v25  ;;  %v1296_v41 = vsel %vm4777_vm5, %v4727_v60, %v1292_v12  ;;  %vm4807_vm5 = vmor %vm1308_vm2, %vm1309_vm6 }
 0x243   :  { %3711 = vrcp.f32 %v4744_v11  ;;  %v1083_v21 = vpop.f32.mrf.mxu2  ;;  %v1281_v30 = vsel %vm4789_vm15, %v4729_v26, %v1277_v45  ;;  %v1301_v20 = vsel %vm1298_vm4, %v1300_v28, %v1296_v41  ;;  %vm1324_vm2 = vweird.f32 %v4746_v13  ;;  %v3466_v28 = vld [vmem:[%s5934_s5 + $0x70] sm:$0xff] }
 0x244   :  { %v4750_v34 = vadd.f32 %v1083_v21, %v4484_v59  ;;  %v1320_v40 = vsub.f32 1.0, %v1319_v16  ;;  %vm1323_vm15 = vweird.f32 %v4725_v57  ;;  %v1344_v7 = vand.u32 2147483648, %v4744_v11 }
 0x245   :  { %vm4833_vm4 = vmor %vm1323_vm15, %vm1324_vm2  ;;  %v1342_v10 = vand.u32 2147483647, %v4744_v11  ;;  %v1330_v21 = vor.u32 1.1754944e-38, %v1329_v61  ;;  %v1286_v17 = vsel %vm4793_vm3, %v1285_v19, %v1281_v30  ;;  %v3465_v19 = vld [vmem:[%s5934_s5 + $0x68] sm:$0xff] }
 0x246   :  { %v1103_v38 = vsub.f32 0.0, %v4750_v34  ;;  %v1321_v50 = vmul.f32 %v4746_v13, %v1320_v40  ;;  %v1345_v18 = vor.u32 1.1754944e-38, %v1344_v7 }
 0x248   :  { %v3710_v62 = vpop.eup %3709  ;;  %v1133_v27 = vmul.f32 1.442695, %v1103_v38  ;;  %v1322_v60 = vadd.f32 %v4746_v13, %v1321_v50 }
 0x249   :  { %v4761_v0 = vpop.eup %3711  ;;  %v4765_v29 = vadd.f32 1.0, %v3710_v62 }
 0x24a   :  { %v1334_v31 = vmul.f32 %v4761_v0, %v4744_v11  ;;  %3713 = vpow2.f32 %v1133_v27  ;;  %vm1339_vm6 = vweird.f32 %v4761_v0 }
 0x24b   :  { %3715 = vrcp.f32 %v4765_v29  ;;  %v1359_v58 = vand.u32 2147483648, %v4765_v29  ;;  %vm1353_vm15 = vweird.f32 %v4765_v29 }
 0x24c   :  { %v1335_v48 = vsub.f32 1.0, %v1334_v31 }
 0x24d   :  { %v1086_v46 = vpop.f32.mrf.mxu2  ;;  %v1360_v12 = vor.u32 1.1754944e-38, %v1359_v58 }
 0x24e   :  { %v1336_v49 = vmul.f32 %v4761_v0, %v1335_v48  ;;  %v4800_v39 = vadd.f32 %v1086_v46, %v4484_v59  ;;  %v1311_v59 = vsel %vm4807_vm5, %v4735_v63, %v1307_v24  ;;  %v1327_v63 = vand.u32 2147483647, %v4725_v57  ;;  %v3467_v46 = vld [vmem:[%s5934_s5 + $0x78] sm:$0xff] }
 0x24f   :  { %v1316_v33 = vsel %vm4811_vm7, %v1315_v15, %v1311_v59  ;;  %vm1338_vm5 = vweird.f32 %v4744_v11  ;;  %v1326_v57 = vsel %vm4833_vm4, %v4746_v13, %v1322_v60  ;;  %v1357_v11 = vand.u32 2147483647, %v4765_v29  ;;  %1731 = vmatpush.msra.mxu1 %v3467_v46  ;;  %v3464_v15 = vld [vmem:[%s5934_s5 + $0x60] sm:$0xff] }
 0x250   :  { %v3714_v43 = vpop.eup %3713  ;;  %v1104_v55 = vsub.f32 0.0, %v4800_v39  ;;  %v1337_v1 = vadd.f32 %v4761_v0, %v1336_v49  ;;  %vm4842_vm0 = vmor %vm1338_vm5, %vm1339_vm6  ;;  %v1402_v13 = vmul.f32 %v1301_v20, %v4686_v37  ;;  %vm1328_vm2 = vcmp.eq.f32.partialorder %v1327_v63, 8.507059e+37 }
 0x251   :  { %v3716_v8 = vpop.eup %3715  ;;  %v4822_v26 = vadd.f32 1.0, %v3714_v43  ;;  %v1331_v62 = vsel %vm1328_vm2, %v1330_v21, %v1326_v57  ;;  %vm1343_vm6 = vcmp.eq.f32.partialorder %v1342_v10, 8.507059e+37  ;;  %v1403_v27 = vmul.f32 %v1316_v33, %v4694_v6  ;;  %1732 = vmatpush.msra.mxu1 %v3466_v28 }
 0x252   :  { %v1349_v36 = vmul.f32 %v3716_v8, %v4765_v29  ;;  %v1135_v5 = vmul.f32 1.442695, %v1104_v55  ;;  %v1341_v16 = vsel %vm4842_vm0, %v4761_v0, %v1337_v1  ;;  %vm1354_vm7 = vweird.f32 %v3716_v8 }
 0x253   :  { %3717 = vrcp.f32 %v4822_v26  ;;  %v1346_v0 = vsel %vm1343_vm6, %v1345_v18, %v1341_v16  ;;  %vm1355_vm0 = vmor %vm1353_vm15, %vm1354_vm7  ;;  %vm1358_vm4 = vcmp.eq.f32.partialorder %v1357_v11, 8.507059e+37  ;;  %v1401_v37 = vmul.f32 %v1286_v17, %v4690_v3  ;;  %1733 = vmatpush.msra.mxu1 %v3465_v19 }
 0x254   :  { %v1350_v44 = vsub.f32 1.0, %v1349_v36  ;;  %3719 = vpow2.f32 %v1135_v5  ;;  %v1404_v31 = vmul.f32 %v1331_v62, %v4707_v35  ;;  %v1472_v23 = vsel %vm114_vm1, %v1402_v13, 0.0 }
 0x255   :  { %v1405_v29 = vmul.f32 %v1346_v0, %v4720_v47  ;;  %v1479_v6 = vsel %vm114_vm1, %v1403_v27, 0.0  ;;  %v1374_v48 = vand.u32 2147483648, %v4822_v26  ;;  %v1372_v3 = vand.u32 2147483647, %v4822_v26  ;;  %1734 = vmatpush.msra.mxu1 %v3464_v15 }
 0x256   :  { %v1351_v38 = vmul.f32 %v3716_v8, %v1350_v44  ;;  %v1465_v35 = vsel %vm114_vm1, %v1401_v37, 0.0  ;;  %v1473_v50 = vrot.slane %v1472_v23, 4  ;;  %v1486_v47 = vsel %vm114_vm1, %v1404_v31, 0.0 }
 0x257   :  { %v1480_v51 = vrot.slane %v1479_v6, 4  ;;  %vm1368_vm5 = vweird.f32 %v4822_v26  ;;  %v1375_v30 = vor.u32 1.1754944e-38, %v1374_v48  ;;  %v1466_v54 = vrot.slane %v1465_v35, 4 }
 0x258   :  { %v1352_v22 = vadd.f32 %v3716_v8, %v1351_v38  ;;  %v1487_v52 = vrot.slane %v1486_v47, 4  ;;  %vm1373_vm2 = vcmp.eq.f32.partialorder %v1372_v3, 8.507059e+37 }
 0x259   :  { %v3718_v25 = vpop.eup %3717  ;;  %v1481_v60 = vadd.f32 %v1480_v51, %v1479_v6  ;;  %v1467_v36 = vadd.f32 %v1466_v54, %v1465_v35 }
 0x25a   :  { %v1356_v40 = vsel %vm1355_vm0, %v3716_v8, %v1352_v22  ;;  %v1364_v42 = vmul.f32 %v3718_v25, %v4822_v26  ;;  %v3720_v32 = vpop.eup %3719  ;;  %vm1369_vm3 = vweird.f32 %v3718_v25  ;;  %v1474_v8 = vadd.f32 %v1473_v50, %v1472_v23 }
 0x25b   :  { %v1361_v45 = vsel %vm1358_vm4, %v1360_v12, %v1356_v40  ;;  %v4861_v24 = vadd.f32 1.0, %v3720_v32  ;;  %vm1370_vm7 = vmor %vm1368_vm5, %vm1369_vm3  ;;  %v1488_v5 = vadd.f32 %v1487_v52, %v1486_v47  ;;  %v1482_v44 = vrot.slane %v1481_v60, 2 }
 0x25c   :  { %v1365_v56 = vsub.f32 1.0, %v1364_v42  ;;  %v1406_v4 = vmul.f32 %v1361_v45, %v4733_v53  ;;  %v1493_v53 = vsel %vm114_vm1, %v1405_v29, 0.0  ;;  %v1475_v10 = vrot.slane %v1474_v8, 2 }
 0x25d   :  { %3721 = vrcp.f32 %v4861_v24  ;;  %v1494_v20 = vrot.slane %v1493_v53, 4  ;;  %v1389_v21 = vand.u32 2147483648, %v4861_v24  ;;  %v1468_v16 = vrot.slane %v1467_v36, 2 }
 0x25e   :  { %v1366_v41 = vmul.f32 %v3718_v25, %v1365_v56  ;;  %v1500_v49 = vsel %vm114_vm1, %v1406_v4, 0.0  ;;  %v1489_v38 = vrot.slane %v1488_v5, 2  ;;  %vm1383_vm15 = vweird.f32 %v4861_v24 }
 0x25f   :  { %v1501_v61 = vrot.slane %v1500_v49, 4  ;;  %v1495_v7 = vadd.f32 %v1494_v20, %v1493_v53  ;;  %v1476_v13 = vadd.f32 %v1475_v10, %v1474_v8  ;;  %v1390_v62 = vor.u32 1.1754944e-38, %v1389_v21 }
 0x260   :  { %v1367_v2 = vadd.f32 %v3718_v25, %v1366_v41  ;;  %v1483_v22 = vadd.f32 %v1482_v44, %v1481_v60  ;;  %v1469_v0 = vadd.f32 %v1468_v16, %v1467_v36  ;;  %v1490_v12 = vadd.f32 %v1489_v38, %v1488_v5  ;;  %v112_v60 = vld [vmem:[%s5935_s6 + $0x58] sm:$0xff]  ;;  %v111_v36 = vld [vmem:[%s5935_s6 + $0x50] sm:$0xff] }
 0x261   :  { %v1502_v57 = vadd.f32 %v1501_v61, %v1500_v49  ;;  %v1496_v11 = vrot.slane %v1495_v7, 2  ;;  %v1477_v37 = vrot.slane %v1476_v13, 1  ;;  %v3871_v61 = vld [vmem:[%s5936_s7] sm:$0x1f]  ;;  %1669 = vmatpush.msra.mxu0 %v112_v60  ;;  %3585 = vmatpush.msrb.mxu3 %v112_v60 }
 0x262   :  { %v1371_v43 = vsel %vm1370_vm7, %v3718_v25, %v1367_v2  ;;  %v1484_v45 = vrot.slane %v1483_v22, 1  ;;  %v1470_v56 = vrot.slane %v1469_v0, 1  ;;  %v3884_v60 = vld [vmem:[%s5933_s4 + $0x40] sm:$0xff] }
 0x263   :  { %v1376_v59 = vsel %vm1373_vm2, %v1375_v30, %v1371_v43  ;;  %v3722_v55 = vpop.eup %3721  ;;  %v1503_v18 = vrot.slane %v1502_v57, 2  ;;  %v1497_v42 = vadd.f32 %v1496_v11, %v1495_v7  ;;  %v1478_v48 = vadd.f32 %v1477_v37, %v1476_v13  ;;  %1670 = vmatpush.msra.mxu0 %v111_v36  ;;  %3586 = vmatpush.msrb.mxu3 %v111_v36  ;;  %v3888_v36 = vld [vmem:[%s5933_s4 + $0x50] sm:$0xff] }
 0x264   :  { %v1407_v26 = vmul.f32 %v1376_v59, %v4750_v34  ;;  %v1379_v1 = vmul.f32 %v3722_v55, %v4861_v24  ;;  %vm1384_vm6 = vweird.f32 %v3722_v55  ;;  %v1387_v34 = vand.u32 2147483647, %v4861_v24 }
 0x265   :  { %vm1385_vm0 = vmor %vm1383_vm15, %vm1384_vm6  ;;  %v1504_v31 = vadd.f32 %v1503_v18, %v1502_v57  ;;  %v1491_v24 = vrot.slane %v1490_v12, 1  ;;  %v1498_v4 = vrot.slane %v1497_v42, 1  ;;  %v1485_v35 = vadd.f32 %v1484_v45, %v1483_v22  ;;  %v3468_v45 = vld [vmem:[%s5934_s5 + $0x80] sm:$0xff] }
 0x266   :  { %v1507_v63 = vsel %vm114_vm1, %v1407_v26, 0.0  ;;  %v1380_v9 = vsub.f32 1.0, %v1379_v1  ;;  %vm1388_vm4 = vcmp.eq.f32.partialorder %v1387_v34, 8.507059e+37  ;;  %v1471_v47 = vadd.f32 %v1470_v56, %v1469_v0  ;;  %v88_v56 = vld [vmem:[%s5932_s3 + $0x8] sm:$0xff] }
 0x267   :  { %v1508_v33 = vrot.slane %v1507_v63, 4  ;;  %v1505_v41 = vrot.slane %v1504_v31, 1  ;;  %v1492_v46 = vadd.f32 %v1491_v24, %v1490_v12  ;;  %v1499_v53 = vadd.f32 %v1498_v4, %v1497_v42  ;;  %v3471_v42 = vld [vmem:[%s5934_s5 + $0x98] sm:$0xff]  ;;  %1844 = vmatpush.msrb.mxu1 %v88_v56  ;;  %v87_v24 = vld [vmem:[%s5932_s3] sm:$0xff] }
 0x268   :  { %v1381_v58 = vmul.f32 %v3722_v55, %v1380_v9  ;;  %v1608_v26 = vperm.slane %v3871_v61, 3  ;;  %v109_v9 = vld [vmem:[%s5935_s6 + $0x40] sm:$0xff]  ;;  %vm5969_vm6 = vcmask 130048  }
 0x269   :  { %v1509_v14 = vadd.f32 %v1508_v33, %v1507_v63  ;;  %v1506_v2 = vadd.f32 %v1505_v41, %v1504_v31  ;;  %v110_v63 = vld [vmem:[%s5935_s6 + $0x48] sm:$0xff]  ;;  %1845 = vmatpush.msrb.mxu1 %v87_v24  ;;  %v5027_v61 = vld [vmem:[%s5933_s4 + $0xa0] sm:$0xff] }
 0x26a   :  { %v1382_v17 = vadd.f32 %v3722_v55, %v1381_v58  ;;  %v4923_v33 = vld [vmem:[%s5931_s2 + $0x8] sm:$0xff]  ;;  %1671 = vmatpush.msra.mxu0 %v110_v63  ;;  %3587 = vmatpush.msrb.mxu3 %v110_v63  ;;  %v3890_v63 = vld [vmem:[%s5933_s4 + $0x58] sm:$0xff] }
 0x26b   :  { %v1510_v25 = vrot.slane %v1509_v14, 2  ;;  %v3469_v31 = vld [vmem:[%s5934_s5 + $0x88] sm:$0xff] }
 0x26c   :  { %v1386_v27 = vsel %vm1385_vm0, %v3722_v55, %v1382_v17  ;;  %v4904_v55 = vld [vmem:[%s5931_s2] sm:$0xff]  ;;  %1672 = vmatpush.msra.mxu0 %v109_v9  ;;  %3588 = vmatpush.msrb.mxu3 %v109_v9 }
 0x26d   :  { %v1391_v40 = vsel %vm1388_vm4, %v1390_v62, %v1386_v27  ;;  %v1511_v23 = vadd.f32 %v1510_v25, %v1509_v14  ;;  %vm5970_vm4 = vmmov %vm5969_vm6  ;;  %v5075_v9 = vld [vmem:[%s5933_s4 + $0xc0] sm:$0xff] }
 0x26e   :  { %v1408_v32 = vmul.f32 %v1391_v40, %v4800_v39  ;;  %v1551_v39 = vsel %vm1537_vm8, %v1478_v48, %v1471_v47  ;;  %1754 = vmatpush.msra.mxu3 %v3471_v42  ;;  %v3479_v42 = vld [vmem:[%s5935_s6 + $0x78] sm:$0xff] }
 0x26f   :  { %v1512_v50 = vrot.slane %v1511_v23, 1  ;;  %v1552_v30 = vsel %vm1539_vm9, %v1485_v35, %v1551_v39 }
 0x270   :  { %v1514_v29 = vsel %vm114_vm1, %v1408_v32, 0.0  ;;  %v1553_v54 = vsel %vm1541_vm10, %v1492_v46, %v1552_v30  ;;  %v3470_v32 = vld [vmem:[%s5934_s5 + $0x90] sm:$0xff]  ;;  %v3873_v46 = vld [vmem:[%s5933_s4 + $0x8] sm:$0xff]  ;;  %v3875_v30 = vld [vmem:[%s5933_s4 + $0x18] sm:$0xff] }
 0x271   :  { %v1515_v6 = vrot.slane %v1514_v29, 4  ;;  %v1513_v49 = vadd.f32 %v1512_v50, %v1511_v23  ;;  %v1554_v52 = vsel %vm1543_vm11, %v1499_v53, %v1553_v54  ;;  %1755 = vmatpush.msra.mxu3 %v3470_v32  ;;  %v3876_v54 = vld [vmem:[%s5933_s4 + $0x20] sm:$0xff] }
 0x272   :  { %v1555_v20 = vsel %vm1545_vm12, %v1506_v2, %v1554_v52  ;;  %v4979_v52 = vld [vmem:[%s5933_s4 + $0x80] sm:$0xff] }
 0x273   :  { %v1516_v3 = vadd.f32 %v1515_v6, %v1514_v29  ;;  %v1556_v59 = vsel %vm1547_vm13, %v1513_v49, %v1555_v20  ;;  %1756 = vmatpush.msra.mxu3 %v3469_v31  ;;  %v3872_v6 = vld [vmem:[%s5933_s4] sm:$0xff]  ;;  %v3874_v49 = vld [vmem:[%s5933_s4 + $0x10] sm:$0xff]  ;;  %v4991_v20 = vld [vmem:[%s5933_s4 + $0x88] sm:$0xff] }
 0x275   :  { %v1517_v51 = vrot.slane %v1516_v3, 2  ;;  %1757 = vmatpush.msra.mxu3 %v3468_v45 }
 0x277   :  { %v1518_v28 = vadd.f32 %v1517_v51, %v1516_v3 }
 0x279   :  { %v1519_v19 = vrot.slane %v1518_v28, 1 }
 0x27b   :  { %v1520_v43 = vadd.f32 %v1519_v19, %v1518_v28 }
 0x27d   :  { %v1557_v15 = vsel %vm5946_vm14, %v1520_v43, %v1556_v59  ;;  %v3878_v43 = vld [vmem:[%s5933_s4 + $0x28] sm:$0xff]  ;;  %v3880_v59 = vld [vmem:[%s5933_s4 + $0x30] sm:$0xff] }
 0x27e   :  { %3459 = vmatmul.msk.f32.gmra.mxu1 %vm114_vm1, %v1557_v15  ;;  %v1602_v8 = vpop.f32.mrf.mxu3  ;;  %v5003_v15 = vld [vmem:[%s5933_s4 + $0x90] sm:$0xff] }
 0x286   :  { %3489 = vmatmul.msk.f32.vlgmr.msra.gmra.mxu1 %vm114_vm1, %v4904_v55  ;;  %v1605_v25 = vpop.f32.mrf.mxu3 }
 0x28e   :  { %3490 = vmatmul.msk.f32.gmra.mxu1 %vm114_vm1, %v4923_v33 }
 0x296   :  { %3509 = vmatmul.msk.f32.vlgmr.msrb.gmra.mxu1 %vm5969_vm6, %v3872_v6 }
 0x29e   :  { %3510 = vmatmul.msk.f32.gmra.mxu1 %vm5970_vm4, %v3873_v46 }
 0x2aa   :  { %v1579_v1 = vpop.f32.mrf.mxu1 }
 0x2ab   :  { %v1603_v5 = vadd.f32 %v1602_v8, %v1579_v1  ;;  %v5015_v8 = vld [vmem:[%s5933_s4 + $0x98] sm:$0xff]  ;;  %v5039_v1 = vld [vmem:[%s5933_s4 + $0xa8] sm:$0xff] }
 0x2ad   :  { %v1609_v7 = vadd.f32 %v1608_v26, %v1603_v5  ;;  %v5051_v5 = vld [vmem:[%s5933_s4 + $0xb0] sm:$0xff] }
 0x2af   :  { %v1611_v10 = vsub.f32 0.0, %v1609_v7 }
 0x2b1   :  { %v1613_v44 = vmul.f32 1.442695, %v1611_v10  ;;  %v3894_v10 = vld [vmem:[%s5933_s4 + $0x68] sm:$0xff] }
 0x2b3   :  { %3723 = vpow2.f32 %v1613_v44  ;;  %v5087_v44 = vld [vmem:[%s5933_s4 + $0xc8] sm:$0xff] }
 0x2b9   :  { %v3724_v57 = vpop.eup %3723 }
 0x2ba   :  { %v1617_v21 = vadd.f32 1.0, %v3724_v57  ;;  %v3896_v57 = vld [vmem:[%s5933_s4 + $0x70] sm:$0xff] }
 0x2bc   :  { %3725 = vrcp.f32 %v1617_v21  ;;  %v1630_v16 = vand.u32 2147483648, %v1617_v21  ;;  %v1628_v11 = vand.u32 2147483647, %v1617_v21  ;;  %vm1624_vm5 = vweird.f32 %v1617_v21 }
 0x2be   :  { %v1631_v13 = vor.u32 1.1754944e-38, %v1630_v16  ;;  %vm1629_vm2 = vcmp.eq.f32.partialorder %v1628_v11, 8.507059e+37 }
 0x2c2   :  { %v3726_v14 = vpop.eup %3725 }
 0x2c3   :  { %v1620_v58 = vmul.f32 %v3726_v14, %v1617_v21  ;;  %vm1625_vm3 = vweird.f32 %v3726_v14  ;;  %v5099_v21 = vld [vmem:[%s5933_s4 + $0xd0] sm:$0xff] }
 0x2c4   :  { %vm1626_vm7 = vmor %vm1624_vm5, %vm1625_vm3 }
 0x2c5   :  { %v1621_v34 = vsub.f32 1.0, %v1620_v58  ;;  %v5111_v58 = vld [vmem:[%s5933_s4 + $0xd8] sm:$0xff] }
 0x2c7   :  { %v1622_v38 = vmul.f32 %v3726_v14, %v1621_v34  ;;  %v5119_v34 = vld [vmem:[%s5933_s4 + $0xe0] sm:$0xff] }
 0x2c9   :  { %v1623_v17 = vadd.f32 %v3726_v14, %v1622_v38  ;;  %v5127_v38 = vld [vmem:[%s5933_s4 + $0xe8] sm:$0xff] }
 0x2cb   :  { %v1627_v18 = vsel %vm1626_vm7, %v3726_v14, %v1623_v17  ;;  %vm5971_vm7 = vmmov %vm5970_vm4  ;;  %v3898_v14 = vld [vmem:[%s5933_s4 + $0x78] sm:$0xff] }
 0x2cc   :  { %v1632_v62 = vsel %vm1629_vm2, %v1631_v13, %v1627_v18  ;;  %3511 = vmatmul.msk.f32.gmra.mxu1 %vm5971_vm7, %v3874_v49  ;;  %vm5972_vm2 = vmmov %vm5970_vm4  ;;  %v5137_v13 = vld [vmem:[%s5933_s4 + $0xf0] sm:$0xff] }
 0x2cd   :  { %v1649_v22 = vmul.f32 %v1632_v62, %v1609_v7  ;;  %vm5973_vm6 = vmmov %vm5972_vm2  ;;  %v5063_v7 = vld [vmem:[%s5933_s4 + $0xb8] sm:$0xff] }
 0x2cf   :  { %3462 = vmatmul.msk.f32.vlgmr.msra.gmra.mxu0 %vm114_vm1, %v1649_v22  ;;  %v5144_v22 = vld [vmem:[%s5933_s4 + $0xf8] sm:$0xff] }
 0x2d4   :  { %3512 = vmatmul.msk.f32.gmra.mxu1 %vm5972_vm2, %v3875_v30 }
 0x2fb   :  { %v1582_v27 = vpop.f32.mrf.mxu1 }
 0x2fc   :  { %v1606_v0 = vadd.f32 %v1605_v25, %v1582_v27 }
 0x2fe   :  { %v1610_v12 = vadd.f32 %v1608_v26, %v1606_v0  ;;  %v3886_v26 = vld [vmem:[%s5933_s4 + $0x48] sm:$0xff] }
 0x300   :  { %v1612_v40 = vsub.f32 0.0, %v1610_v12 }
 0x302   :  { %v1615_v37 = vmul.f32 1.442695, %v1612_v40 }
 0x303   :  { %v1736_v28 = vpop.f32.mrf.mxu1 }
 0x304   :  { %3727 = vpow2.f32 %v1615_v37 }
 0x30a   :  { %v3728_v23 = vpop.eup %3727 }
 0x30b   :  { %v1618_v29 = vadd.f32 1.0, %v3728_v23  ;;  %v1739_v19 = vpop.f32.mrf.mxu1 }
 0x30c   :  { %2054 = vmatpush.msra.mxu2 %v1739_v19 }
 0x30d   :  { %3729 = vrcp.f32 %v1618_v29  ;;  %v1645_v3 = vand.u32 2147483648, %v1618_v29  ;;  %v1643_v50 = vand.u32 2147483647, %v1618_v29  ;;  %vm1639_vm0 = vweird.f32 %v1618_v29 }
 0x30e   :  { %2055 = vmatpush.msra.mxu2 %v1736_v28 }
 0x30f   :  { %v1646_v51 = vor.u32 1.1754944e-38, %v1645_v3  ;;  %vm1644_vm5 = vcmp.eq.f32.partialorder %v1643_v50, 8.507059e+37  ;;  %3541 = vmatmul.msk.f32.vlgmr.msra.gmra.mxu2 %vm5973_vm6, %v3872_v6 }
 0x313   :  { %v3730_v4 = vpop.eup %3729  ;;  %v1847_v16 = vpop.f32.mrf.mxu1 }
 0x314   :  { %v1635_v48 = vmul.f32 %v3730_v4, %v1618_v29  ;;  %vm1640_vm15 = vweird.f32 %v3730_v4 }
 0x315   :  { %vm1641_vm3 = vmor %vm1639_vm0, %vm1640_vm15 }
 0x316   :  { %v1636_v41 = vsub.f32 1.0, %v1635_v48  ;;  %vm5974_vm15 = vmmov %vm5972_vm2 }
 0x317   :  { %3513 = vmatmul.msk.f32.gmra.mxu1 %vm5974_vm15, %v3876_v54  ;;  %vm5975_vm0 = vmmov %vm5972_vm2 }
 0x318   :  { %v1637_v35 = vmul.f32 %v3730_v4, %v1636_v41  ;;  %3542 = vmatmul.msk.f32.gmra.mxu2 %vm5975_vm0, %v3873_v46  ;;  %vm5976_vm4 = vmmov %vm5975_vm0 }
 0x319   :  { %vm5979_vm7 = vmmov %vm5975_vm0 }
 0x31a   :  { %v1638_v47 = vadd.f32 %v3730_v4, %v1637_v35  ;;  %vm5980_vm2 = vmmov %vm5975_vm0 }
 0x31b   :  { %vm5981_vm6 = vmmov %vm5975_vm0  ;;  %v1850_v17 = vpop.f32.mrf.mxu1 }
 0x31c   :  { %v1642_v53 = vsel %vm1641_vm3, %v3730_v4, %v1638_v47  ;;  %vm5977_vm3 = vmmov %vm5975_vm0 }
 0x31d   :  { %v1647_v39 = vsel %vm1644_vm5, %v1646_v51, %v1642_v53  ;;  %vm5978_vm5 = vmmov %vm5975_vm0 }
 0x31e   :  { %v1650_v2 = vmul.f32 %v1647_v39, %v1610_v12  ;;  %vm5982_vm15 = vmmov %vm5975_vm0  ;;  %v3478_v39 = vld [vmem:[%s5935_s6 + $0x70] sm:$0xff] }
 0x31f   :  { %3514 = vmatmul.msk.f32.gmra.mxu1 %vm5977_vm3, %v3878_v43  ;;  %vm5984_vm3 = vmmov %vm5975_vm0 }
 0x320   :  { %3463 = vmatmul.msk.f32.vlgmr.msrb.gmra.mxu3 %vm114_vm1, %v1650_v2  ;;  %3543 = vmatmul.msk.f32.gmra.mxu2 %vm5978_vm5, %v3874_v49  ;;  %vm5985_vm5 = vmmov %vm5975_vm0 }
 0x321   :  { %1909 = vmatpush.msrb.mxu3 %v88_v56 }
 0x323   :  { %1910 = vmatpush.msrb.mxu3 %v87_v24 }
 0x327   :  { %3515 = vmatmul.msk.f32.gmra.mxu1 %vm5980_vm2, %v3880_v59  ;;  %vm5987_vm2 = vmmov %vm5975_vm0 }
 0x328   :  { %3491 = vmatmul.msk.f32.vlgmr.msra.gmra.mxu3 %vm114_vm1, %v4904_v55  ;;  %3544 = vmatmul.msk.f32.gmra.mxu2 %vm5981_vm6, %v3875_v30  ;;  %v3882_v55 = vld [vmem:[%s5933_s4 + $0x38] sm:$0xff]  ;;  %vm5988_vm6 = vmmov %vm5975_vm0 }
 0x32f   :  { %3516 = vmatmul.msk.f32.gmra.mxu1 %vm5975_vm0, %v3882_v55 }
 0x330   :  { %3492 = vmatmul.msk.f32.gmra.mxu3 %vm114_vm1, %v4923_v33  ;;  %v3892_v33 = vld [vmem:[%s5933_s4 + $0x60] sm:$0xff] }
 0x337   :  { %3517 = vmatmul.msk.f32.gmra.mxu1 %vm5985_vm5, %v3884_v60  ;;  %vm5992_vm5 = vmmov %vm5975_vm0 }
 0x338   :  { %3525 = vmatmul.msk.f32.vlgmr.msrb.gmra.mxu3 %vm5976_vm4, %v4979_v52  ;;  %vm5983_vm4 = vmmov %vm5975_vm0 }
 0x339   :  { %3545 = vmatmul.msk.f32.gmra.mxu2 %vm5983_vm4, %v3876_v54  ;;  %vm5990_vm4 = vmmov %vm5975_vm0 }
 0x33f   :  { %3518 = vmatmul.msk.f32.gmra.mxu1 %vm5988_vm6, %v3886_v26  ;;  %vm5995_vm6 = vmmov %vm5975_vm0 }
 0x340   :  { %3526 = vmatmul.msk.f32.gmra.mxu3 %vm5979_vm7, %v4991_v20  ;;  %vm5986_vm7 = vmmov %vm5975_vm0 }
 0x341   :  { %3546 = vmatmul.msk.f32.gmra.mxu2 %vm5986_vm7, %v3878_v43  ;;  %vm5993_vm7 = vmmov %vm5975_vm0 }
 0x347   :  { %3519 = vmatmul.msk.f32.gmra.mxu1 %vm5990_vm4, %v3888_v36  ;;  %vm5997_vm4 = vmmov %vm5975_vm0 }
 0x348   :  { %3527 = vmatmul.msk.f32.gmra.mxu3 %vm5982_vm15, %v5003_v15  ;;  %vm5989_vm15 = vmmov %vm5975_vm0 }
 0x349   :  { %3547 = vmatmul.msk.f32.gmra.mxu2 %vm5989_vm15, %v3880_v59  ;;  %vm5996_vm15 = vmmov %vm5975_vm0  ;;  %v1853_v62 = vpop.f32.mrf.mxu1 }
 0x34f   :  { %3520 = vmatmul.msk.f32.gmra.mxu1 %vm5993_vm7, %v3890_v63  ;;  %vm6000_vm7 = vmmov %vm5975_vm0 }
 0x350   :  { %3528 = vmatmul.msk.f32.gmra.mxu3 %vm5984_vm3, %v5015_v8  ;;  %vm5991_vm3 = vmmov %vm5975_vm0 }
 0x351   :  { %3548 = vmatmul.msk.f32.gmra.mxu2 %vm5991_vm3, %v3882_v55  ;;  %vm5998_vm3 = vmmov %vm5975_vm0  ;;  %v1856_v27 = vpop.f32.mrf.mxu1 }
 0x357   :  { %3521 = vmatmul.msk.f32.gmra.mxu1 %vm5996_vm15, %v3892_v33  ;;  %vm6003_vm15 = vmmov %vm5975_vm0 }
 0x358   :  { %3529 = vmatmul.msk.f32.gmra.mxu3 %vm5987_vm2, %v5027_v61  ;;  %vm5994_vm2 = vmmov %vm5975_vm0 }
 0x359   :  { %3549 = vmatmul.msk.f32.gmra.mxu2 %vm5994_vm2, %v3884_v60  ;;  %vm6001_vm2 = vmmov %vm5975_vm0 }
 0x35f   :  { %3522 = vmatmul.msk.f32.gmra.mxu1 %vm5998_vm3, %v3894_v10  ;;  %vm6005_vm3 = vmmov %vm5975_vm0 }
 0x360   :  { %3530 = vmatmul.msk.f32.gmra.mxu3 %vm5975_vm0, %v5039_v1 }
 0x361   :  { %3550 = vmatmul.msk.f32.gmra.mxu2 %vm5975_vm0, %v3886_v26 }
 0x367   :  { %3523 = vmatmul.msk.f32.gmra.mxu1 %vm6001_vm2, %v3896_v57  ;;  %vm6008_vm2 = vmmov %vm5975_vm0 }
 0x368   :  { %3531 = vmatmul.msk.f32.gmra.mxu3 %vm5992_vm5, %v5051_v5  ;;  %vm5999_vm5 = vmmov %vm5975_vm0 }
 0x369   :  { %3551 = vmatmul.msk.f32.gmra.mxu2 %vm5999_vm5, %v3888_v36  ;;  %vm6006_vm5 = vmmov %vm5975_vm0 }
 0x36f   :  { %3524 = vmatmul.msk.f32.gmra.mxu1 %vm5975_vm0, %v3898_v14 }
 0x370   :  { %3532 = vmatmul.msk.f32.gmra.mxu3 %vm5995_vm6, %v5063_v7  ;;  %vm6002_vm6 = vmmov %vm5975_vm0 }
 0x371   :  { %3552 = vmatmul.msk.f32.gmra.mxu2 %vm6002_vm6, %v3890_v63  ;;  %vm6009_vm6 = vmmov %vm5975_vm0 }
 0x378   :  { %3533 = vmatmul.msk.f32.gmra.mxu3 %vm5997_vm4, %v5075_v9  ;;  %vm6004_vm4 = vmmov %vm5975_vm0 }
 0x379   :  { %3553 = vmatmul.msk.f32.gmra.mxu2 %vm6004_vm4, %v3892_v33  ;;  %vm6011_vm4 = vmmov %vm5975_vm0 }
 0x380   :  { %3534 = vmatmul.msk.f32.gmra.mxu3 %vm6000_vm7, %v5087_v44  ;;  %vm6007_vm7 = vmmov %vm5975_vm0 }
 0x381   :  { %3554 = vmatmul.msk.f32.gmra.mxu2 %vm6006_vm5, %v3894_v10  ;;  %vm6013_vm5 = vmmov %vm5975_vm0 }
 0x388   :  { %3535 = vmatmul.msk.f32.gmra.mxu3 %vm6003_vm15, %v5099_v21  ;;  %vm6010_vm15 = vmmov %vm5975_vm0 }
 0x389   :  { %3555 = vmatmul.msk.f32.gmra.mxu2 %vm6008_vm2, %v3896_v57  ;;  %vm6015_vm2 = vmmov %vm5975_vm0 }
 0x390   :  { %3536 = vmatmul.msk.f32.gmra.mxu3 %vm6005_vm3, %v5111_v58  ;;  %vm6012_vm3 = vmmov %vm5975_vm0 }
 0x391   :  { %3556 = vmatmul.msk.f32.gmra.mxu2 %vm6010_vm15, %v3898_v14  ;;  %vm6017_vm15 = vmmov %vm5975_vm0 }
 0x394   :  { %v1859_v31 = vpop.f32.mrf.mxu1 }
 0x398   :  { %3537 = vmatmul.msk.f32.gmra.mxu3 %vm6007_vm7, %v5119_v34  ;;  %vm6014_vm7 = vcmask 23552  }
 0x39c   :  { %v1862_v6 = vpop.f32.mrf.mxu1 }
 0x3a0   :  { %3538 = vmatmul.msk.f32.gmra.mxu3 %vm6009_vm6, %v5127_v38  ;;  %vm6016_vm6 = vmmov %vm6014_vm7 }
 0x3a3   :  { %v5131_v11 = vpop.f32.mrf.mxu3 }
 0x3a4   :  { %v1865_v50 = vpop.f32.mrf.mxu1 }
 0x3a8   :  { %3539 = vmatmul.msk.f32.gmra.mxu3 %vm5975_vm0, %v5137_v13  ;;  %vm6018_vm0 = vmmov %vm6016_vm6 }
 0x3ab   :  { %v1759_v18 = vpop.f32.mrf.mxu3 }
 0x3ac   :  { %v1868_v28 = vpop.f32.mrf.mxu1 }
 0x3b0   :  { %3540 = vmatmul.msk.f32.gmra.mxu3 %vm6011_vm4, %v5144_v22  ;;  %vm6019_vm4 = vmmov %vm6015_vm2 }
 0x3b3   :  { %v1762_v25 = vpop.f32.mrf.mxu3 }
 0x3b4   :  { %1779 = vmatpush.msrb.mxu0 %v1762_v25  ;;  %v1871_v43 = vpop.f32.mrf.mxu1 }
 0x3b6   :  { %1780 = vmatpush.msrb.mxu0 %v1759_v18 }
 0x3b7   :  { %3493 = vmatmul.msk.f32.vlgmr.msrb.gmra.mxu0 %vm6012_vm3, %v4979_v52  ;;  %vm6020_vm3 = vmmov %vm6018_vm0 }
 0x3b8   :  { %2536 = vmatpush.msra.mxu0 %v3479_v42 }
 0x3ba   :  { %2537 = vmatpush.msra.mxu0 %v3478_v39 }
 0x3bb   :  { %v1912_v0 = vpop.f32.mrf.mxu3 }
 0x3bc   :  { %v1960_v12 = vsub.f32 %v1847_v16, %v1912_v0  ;;  %v1874_v60 = vpop.f32.mrf.mxu1 }
 0x3be   :  { %v1976_v40 = vmul.f32 %v1960_v12, %v1960_v12 }
 0x3bf   :  { %3494 = vmatmul.msk.f32.gmra.mxu0 %vm6013_vm5, %v4991_v20  ;;  %vm6021_vm5 = vmmov %vm6015_vm2 }
 0x3c0   :  { %v1992_v32 = vsel %vm6014_vm7, %v1976_v40, 0.0  ;;  %vm6022_vm7 = vmmov %vm6018_vm0  ;;  %v2057_v40 = vpop.f32.mrf.mxu2 }
 0x3c1   :  { %1993 = vadd.xlane.f32.xlu1 %v1992_v32 }
 0x3c3   :  { %v1915_v37 = vpop.f32.mrf.mxu3 }
 0x3c4   :  { %v1961_v45 = vsub.f32 %v1850_v17, %v1915_v37  ;;  %v1877_v63 = vpop.f32.mrf.mxu1 }
 0x3c6   :  { %v1977_v23 = vmul.f32 %v1961_v45, %v1961_v45 }
 0x3c7   :  { %3495 = vmatmul.msk.f32.gmra.mxu0 %vm6015_vm2, %v5003_v15 }
 0x3c8   :  { %v1995_v29 = vsel %vm6016_vm6, %v1977_v23, 0.0  ;;  %vm6023_vm6 = vmmov %vm6018_vm0  ;;  %v2060_v45 = vpop.f32.mrf.mxu2 }
 0x3c9   :  { %1996 = vadd.xlane.f32.xlu2 %v1995_v29 }
 0x3cb   :  { %v1918_v56 = vpop.f32.mrf.mxu3 }
 0x3cc   :  { %v1962_v24 = vsub.f32 %v1853_v62, %v1918_v56  ;;  %v1880_v16 = vpop.f32.mrf.mxu1 }
 0x3ce   :  { %v1978_v4 = vmul.f32 %v1962_v24, %v1962_v24 }
 0x3cf   :  { %3496 = vmatmul.msk.f32.gmra.mxu0 %vm6017_vm15, %v5015_v8  ;;  %vm6024_vm15 = vmmov %vm6015_vm2 }
 0x3d0   :  { %v1998_v48 = vsel %vm6018_vm0, %v1978_v4, 0.0  ;;  %v2063_v24 = vpop.f32.mrf.mxu2 }
 0x3d1   :  { %1999 = vadd.xlane.f32.xlu0 %v1998_v48  ;;  %v5201_v48 = vpop.f32.mrf.mxu0 }
 0x3d3   :  { %v1921_v41 = vpop.f32.mrf.mxu3 }
 0x3d4   :  { %v1963_v3 = vsub.f32 %v1856_v27, %v1921_v41  ;;  %v1883_v27 = vpop.f32.mrf.mxu1 }
 0x3d6   :  { %v1979_v35 = vmul.f32 %v1963_v3, %v1963_v3 }
 0x3d7   :  { %3497 = vmatmul.msk.f32.gmra.mxu0 %vm6019_vm4, %v5027_v61  ;;  %vm6025_vm4 = vmmov %vm6015_vm2 }
 0x3d8   :  { %v2001_v47 = vsel %vm6020_vm3, %v1979_v35, 0.0  ;;  %vm6026_vm3 = vmmov %vm6018_vm0 }
 0x3d9   :  { %2002 = vadd.xlane.f32.xlu1 %v2001_v47  ;;  %v2066_v47 = vpop.f32.mrf.mxu2 }
 0x3db   :  { %v1924_v46 = vpop.f32.mrf.mxu3 }
 0x3dc   :  { %v1964_v51 = vsub.f32 %v1859_v31, %v1924_v46  ;;  %v1886_v37 = vpop.f32.mrf.mxu1 }
 0x3de   :  { %v1980_v53 = vmul.f32 %v1964_v51, %v1964_v51 }
 0x3df   :  { %3498 = vmatmul.msk.f32.gmra.mxu0 %vm6021_vm5, %v5039_v1  ;;  %vm6027_vm5 = vmmov %vm6015_vm2 }
 0x3e0   :  { %v2004_v2 = vsel %vm6022_vm7, %v1980_v53, 0.0  ;;  %vm6028_vm7 = vmmov %vm6018_vm0 }
 0x3e1   :  { %2005 = vadd.xlane.f32.xlu2 %v2004_v2 }
 0x3e3   :  { %v1927_v49 = vpop.f32.mrf.mxu3 }
 0x3e4   :  { %v1965_v30 = vsub.f32 %v1862_v6, %v1927_v49 }
 0x3e6   :  { %v1981_v19 = vmul.f32 %v1965_v30, %v1965_v30 }
 0x3e7   :  { %3499 = vmatmul.msk.f32.gmra.mxu0 %vm6015_vm2, %v5051_v5 }
 0x3e8   :  { %v2007_v54 = vsel %vm6023_vm6, %v1981_v19, 0.0  ;;  %vm6029_vm6 = vmmov %vm6018_vm0 }
 0x3e9   :  { %2008 = vadd.xlane.f32.xlu0 %v2007_v54 }
 0x3eb   :  { %v1930_v52 = vpop.f32.mrf.mxu3 }
 0x3ec   :  { %v1966_v20 = vsub.f32 %v1865_v50, %v1930_v52  ;;  %v3476_v52 = vld [vmem:[%s5935_s6 + $0x60] sm:$0xff] }
 0x3ee   :  { %v1982_v59 = vmul.f32 %v1966_v20, %v1966_v20  ;;  %v2069_v20 = vpop.f32.mrf.mxu2 }
 0x3ef   :  { %3500 = vmatmul.msk.f32.gmra.mxu0 %vm6024_vm15, %v5063_v7  ;;  %v3477_v7 = vld [vmem:[%s5935_s6 + $0x68] sm:$0xff]  ;;  %vm6030_vm15 = vmmov %vm6015_vm2 }
 0x3f0   :  { %v2010_v15 = vsel %vm6018_vm0, %v1982_v59, 0.0  ;;  %2538 = vmatpush.msra.mxu0 %v3477_v7 }
 0x3f1   :  { %2011 = vadd.xlane.f32.xlu1 %v2010_v15 }
 0x3f2   :  { %2539 = vmatpush.msra.mxu0 %v3476_v52 }
 0x3f3   :  { %v1933_v55 = vpop.f32.mrf.mxu3 }
 0x3f4   :  { %v1967_v8 = vsub.f32 %v1868_v28, %v1933_v55 }
 0x3f6   :  { %v1983_v61 = vmul.f32 %v1967_v8, %v1967_v8 }
 0x3f7   :  { %3501 = vmatmul.msk.f32.gmra.mxu0 %vm6025_vm4, %v5075_v9  ;;  %vm6031_vm4 = vmmov %vm6015_vm2 }
 0x3f8   :  { %v2013_v26 = vsel %vm6026_vm3, %v1983_v61, 0.0  ;;  %vm6032_vm3 = vmmov %vm6018_vm0 }
 0x3f9   :  { %2014 = vadd.xlane.f32.xlu2 %v2013_v26 }
 0x3fb   :  { %v1936_v1 = vpop.f32.mrf.mxu3 }
 0x3fc   :  { %v1968_v36 = vsub.f32 %v1871_v43, %v1936_v1 }
 0x3fe   :  { %v1984_v5 = vmul.f32 %v1968_v36, %v1968_v36 }
 0x3ff   :  { %3502 = vmatmul.msk.f32.gmra.mxu0 %vm6027_vm5, %v5087_v44  ;;  %vm6033_vm5 = vmmov %vm6015_vm2 }
 0x400   :  { %v2016_v33 = vsel %vm6028_vm7, %v1984_v5, 0.0  ;;  %vm6034_vm7 = vmmov %vm6018_vm0 }
 0x401   :  { %2017 = vadd.xlane.f32.xlu0 %v2016_v33 }
 0x403   :  { %v1939_v10 = vpop.f32.mrf.mxu3 }
 0x404   :  { %v1969_v9 = vsub.f32 %v1874_v60, %v1939_v10 }
 0x406   :  { %v1985_v57 = vmul.f32 %v1969_v9, %v1969_v9  ;;  %v2072_v9 = vpop.f32.mrf.mxu2 }
 0x407   :  { %3503 = vmatmul.msk.f32.gmra.mxu0 %vm6015_vm2, %v5099_v21 }
 0x408   :  { %v2019_v14 = vsel %vm6029_vm6, %v1985_v57, 0.0  ;;  %vm6035_vm6 = vmmov %vm6018_vm0 }
 0x409   :  { %2020 = vadd.xlane.f32.xlu1 %v2019_v14 }
 0x40b   :  { %v1942_v44 = vpop.f32.mrf.mxu3 }
 0x40c   :  { %v1970_v17 = vsub.f32 %v1877_v63, %v1942_v44 }
 0x40e   :  { %v1986_v18 = vmul.f32 %v1970_v17, %v1970_v17 }
 0x40f   :  { %3504 = vmatmul.msk.f32.gmra.mxu0 %vm6030_vm15, %v5111_v58  ;;  %vm6036_vm15 = vmmov %vm6015_vm2 }
 0x410   :  { %v2022_v62 = vsel %vm6018_vm0, %v1986_v18, 0.0 }
 0x411   :  { %2023 = vadd.xlane.f32.xlu2 %v2022_v62 }
 0x413   :  { %v1945_v25 = vpop.f32.mrf.mxu3 }
 0x414   :  { %v1971_v0 = vsub.f32 %v1880_v16, %v1945_v25 }
 0x416   :  { %v1987_v12 = vmul.f32 %v1971_v0, %v1971_v0 }
 0x417   :  { %3505 = vmatmul.msk.f32.gmra.mxu0 %vm6031_vm4, %v5119_v34  ;;  %v1889_v34 = vpop.f32.mrf.mxu1  ;;  %vm6037_vm4 = vmmov %vm6018_vm0 }
 0x418   :  { %v2025_v21 = vsel %vm6032_vm3, %v1987_v12, 0.0 }
 0x419   :  { %2026 = vadd.xlane.f32.xlu0 %v2025_v21 }
 0x41b   :  { %v1948_v42 = vpop.f32.mrf.mxu3 }
 0x41c   :  { %v1972_v32 = vsub.f32 %v1883_v27, %v1948_v42 }
 0x41e   :  { %v1988_v31 = vmul.f32 %v1972_v32, %v1972_v32  ;;  %v5237_v32 = vpop.f32.mrf.mxu2 }
 0x41f   :  { %3506 = vmatmul.msk.f32.gmra.mxu0 %vm6033_vm5, %v5127_v38  ;;  %v5206_v38 = vld [vmem:[%s5936_s7 + $0x8] sm:$0x1f]  ;;  %v1892_v35 = vpop.f32.mrf.mxu1 }
 0x420   :  { %v2028_v58 = vsel %vm6034_vm7, %v1988_v31, 0.0  ;;  %v5212_v50 = vperm.slane %v5206_v38, 0  ;;  %v5216_v49 = vperm.slane %v5206_v38, 1 }
 0x421   :  { %2029 = vadd.xlane.f32.xlu1 %v2028_v58 }
 0x423   :  { %v1951_v23 = vpop.f32.mrf.mxu3 }
 0x424   :  { %v1973_v29 = vsub.f32 %v1886_v37, %v1951_v23 }
 0x426   :  { %v1989_v56 = vmul.f32 %v1973_v29, %v1973_v29 }
 0x427   :  { %3507 = vmatmul.msk.f32.gmra.mxu0 %vm6015_vm2, %v5137_v13 }
 0x428   :  { %v2031_v6 = vsel %vm6035_vm6, %v1989_v56, 0.0 }
 0x429   :  { %2032 = vadd.xlane.f32.xlu2 %v2031_v6 }
 0x42b   :  { %v1954_v4 = vpop.f32.mrf.mxu3 }
 0x42c   :  { %v1974_v41 = vsub.f32 %v1889_v34, %v1954_v4 }
 0x42e   :  { %v1990_v3 = vmul.f32 %v1974_v41, %v1974_v41 }
 0x42f   :  { %3508 = vmatmul.msk.f32.gmra.mxu0 %vm6036_vm15, %v5144_v22 }
 0x430   :  { %v2034_v13 = vsel %vm6018_vm0, %v1990_v3, 0.0 }
 0x431   :  { %2035 = vadd.xlane.f32.xlu0 %v2034_v13 }
 0x433   :  { %v1957_v46 = vpop.f32.mrf.mxu3 }
 0x434   :  { %v1975_v51 = vsub.f32 %v1892_v35, %v1957_v46  ;;  %v1994_v53 = vpop.xlane.xlu1 %1993  ;;  %v1782_v39 = vpop.f32.mrf.mxu0 }
 0x435   :  { %v2106_v2 = vmul.f32 %v5212_v50, %v1994_v53  ;;  %v2058_v28 = vadd.f32 %v2057_v40, %v1782_v39 }
 0x436   :  { %v1991_v30 = vmul.f32 %v1975_v51, %v1975_v51 }
 0x437   :  { %v2122_v22 = vadd.f32 %v2106_v2, %v2058_v28 }
 0x438   :  { %v2037_v19 = vsel %vm6037_vm4, %v1991_v30, 0.0 }
 0x439   :  { %v5220_v54 = vadd.f32 %v5216_v49, %v2122_v22  ;;  %2038 = vadd.xlane.f32.xlu1 %v2037_v19  ;;  %v5248_v22 = vpop.f32.mrf.mxu2 }
 0x43b   :  { %v2155_v43 = vsub.f32 0.0, %v5220_v54 }
 0x43c   :  { %v1997_v59 = vpop.xlane.xlu2 %1996  ;;  %v1785_v15 = vpop.f32.mrf.mxu0 }
 0x43d   :  { %v2171_v55 = vmul.f32 1.442695, %v2155_v43  ;;  %v2107_v8 = vmul.f32 %v5212_v50, %v1997_v59  ;;  %v2061_v60 = vadd.f32 %v2060_v45, %v1785_v15 }
 0x43f   :  { %3731 = vpow2.f32 %v2171_v55  ;;  %v2123_v61 = vadd.f32 %v2107_v8, %v2061_v60 }
 0x441   :  { %v5228_v26 = vadd.f32 %v5216_v49, %v2123_v61 }
 0x443   :  { %v2156_v1 = vsub.f32 0.0, %v5228_v26 }
 0x444   :  { %v2000_v36 = vpop.xlane.xlu0 %1999  ;;  %v1788_v5 = vpop.f32.mrf.mxu0 }
 0x445   :  { %v3732_v63 = vpop.eup %3731  ;;  %v2173_v7 = vmul.f32 1.442695, %v2156_v1  ;;  %v2108_v33 = vmul.f32 %v5212_v50, %v2000_v36  ;;  %v2064_v10 = vadd.f32 %v2063_v24, %v1788_v5 }
 0x446   :  { %v2203_v57 = vadd.f32 1.0, %v3732_v63 }
 0x447   :  { %3733 = vpow2.f32 %v2173_v7  ;;  %v2124_v14 = vadd.f32 %v2108_v33, %v2064_v10 }
 0x448   :  { %3735 = vrcp.f32 %v2203_v57  ;;  %v2228_v45 = vand.u32 2147483647, %v2203_v57  ;;  %v2230_v58 = vand.u32 2147483648, %v2203_v57  ;;  %vm2224_vm5 = vweird.f32 %v2203_v57 }
 0x449   :  { %v5233_v16 = vadd.f32 %v5216_v49, %v2124_v14 }
 0x44a   :  { %vm2229_vm2 = vcmp.eq.f32.partialorder %v2228_v45, 8.507059e+37  ;;  %v2231_v35 = vor.u32 1.1754944e-38, %v2230_v58 }
 0x44b   :  { %v2157_v44 = vsub.f32 0.0, %v5233_v16 }
 0x44c   :  { %v2003_v17 = vpop.xlane.xlu1 %2002  ;;  %v1791_v18 = vpop.f32.mrf.mxu0 }
 0x44d   :  { %v3734_v62 = vpop.eup %3733  ;;  %v2175_v25 = vmul.f32 1.442695, %v2157_v44  ;;  %v2109_v27 = vmul.f32 %v5212_v50, %v2003_v17  ;;  %v2067_v0 = vadd.f32 %v2066_v47, %v1791_v18 }
 0x44e   :  { %v3736_v12 = vpop.eup %3735  ;;  %v2204_v40 = vadd.f32 1.0, %v3734_v62 }
 0x44f   :  { %v2220_v21 = vmul.f32 %v3736_v12, %v2203_v57  ;;  %3737 = vpow2.f32 %v2175_v25  ;;  %v2125_v42 = vadd.f32 %v2109_v27, %v2067_v0  ;;  %vm2225_vm3 = vweird.f32 %v3736_v12  ;;  %v5259_v25 = vpop.f32.mrf.mxu2 }
 0x450   :  { %3739 = vrcp.f32 %v2204_v40  ;;  %vm2226_vm7 = vmor %vm2224_vm5, %vm2225_vm3  ;;  %v2243_v19 = vand.u32 2147483647, %v2204_v40  ;;  %v2245_v52 = vand.u32 2147483648, %v2204_v40  ;;  %vm2239_vm15 = vweird.f32 %v2204_v40 }
 0x451   :  { %v2221_v37 = vsub.f32 1.0, %v2220_v21  ;;  %v5240_v31 = vadd.f32 %v5216_v49, %v2125_v42 }
 0x452   :  { %vm2244_vm4 = vcmp.eq.f32.partialorder %v2243_v19, 8.507059e+37  ;;  %v2246_v5 = vor.u32 1.1754944e-38, %v2245_v52 }
 0x453   :  { %v2222_v23 = vmul.f32 %v3736_v12, %v2221_v37  ;;  %v2158_v29 = vsub.f32 0.0, %v5240_v31 }
 0x454   :  { %v2006_v56 = vpop.xlane.xlu2 %2005  ;;  %v1794_v34 = vpop.f32.mrf.mxu0 }
 0x455   :  { %v3738_v24 = vpop.eup %3737  ;;  %v2223_v6 = vadd.f32 %v3736_v12, %v2222_v23  ;;  %v2177_v4 = vmul.f32 1.442695, %v2158_v29  ;;  %v2110_v41 = vmul.f32 %v5212_v50, %v2006_v56  ;;  %v2070_v3 = vadd.f32 %v2069_v20, %v1794_v34 }
 0x456   :  { %v3740_v13 = vpop.eup %3739  ;;  %v2205_v47 = vadd.f32 1.0, %v3738_v24 }
 0x457   :  { %v2227_v46 = vsel %vm2226_vm7, %v3736_v12, %v2223_v6  ;;  %3741 = vpow2.f32 %v2177_v4  ;;  %v2126_v51 = vadd.f32 %v2110_v41, %v2070_v3  ;;  %v2235_v53 = vmul.f32 %v3740_v13, %v2204_v40 }
 0x458   :  { %v2232_v39 = vsel %vm2229_vm2, %v2231_v35, %v2227_v46  ;;  %3743 = vrcp.f32 %v2205_v47  ;;  %vm2240_vm6 = vweird.f32 %v3740_v13  ;;  %v2258_v17 = vand.u32 2147483647, %v2205_v47 }
 0x459   :  { %v2459_v2 = vmul.f32 %v2232_v39, %v5220_v54  ;;  %v5246_v28 = vadd.f32 %v5216_v49, %v2126_v51  ;;  %v2236_v30 = vsub.f32 1.0, %v2235_v53  ;;  %vm2241_vm0 = vmor %vm2239_vm15, %vm2240_vm6  ;;  %vm2254_vm5 = vweird.f32 %v2205_v47 }
 0x45a   :  { %vm2259_vm2 = vcmp.eq.f32.partialorder %v2258_v17, 8.507059e+37 }
 0x45b   :  { %v2159_v43 = vsub.f32 0.0, %v5246_v28  ;;  %3557 = vmatmul.msk.f32.vlgmr.msra.gmra.mxu0 %vm114_vm1, %v2459_v2  ;;  %v2237_v20 = vmul.f32 %v3740_v13, %v2236_v30 }
 0x45c   :  { %v2009_v59 = vpop.xlane.xlu0 %2008  ;;  %v1797_v15 = vpop.f32.mrf.mxu0 }
 0x45d   :  { %v3742_v55 = vpop.eup %3741  ;;  %v2179_v8 = vmul.f32 1.442695, %v2159_v43  ;;  %v2111_v54 = vmul.f32 %v5212_v50, %v2009_v59  ;;  %v2073_v60 = vadd.f32 %v2072_v9, %v1797_v15  ;;  %v2238_v61 = vadd.f32 %v3740_v13, %v2237_v20 }
 0x45e   :  { %v3744_v1 = vpop.eup %3743  ;;  %v2206_v36 = vadd.f32 1.0, %v3742_v55  ;;  %v2260_v9 = vand.u32 2147483648, %v2205_v47 }
 0x45f   :  { %3745 = vpow2.f32 %v2179_v8  ;;  %v2127_v63 = vadd.f32 %v2111_v54, %v2073_v60  ;;  %v2242_v7 = vsel %vm2241_vm0, %v3740_v13, %v2238_v61  ;;  %v2250_v33 = vmul.f32 %v3744_v1, %v2205_v47 }
 0x460   :  { %3747 = vrcp.f32 %v2206_v36  ;;  %v2247_v10 = vsel %vm2244_vm4, %v2246_v5, %v2242_v7  ;;  %vm2255_vm3 = vweird.f32 %v3744_v1  ;;  %v2261_v58 = vor.u32 1.1754944e-38, %v2260_v9 }
 0x461   :  { %v5254_v57 = vadd.f32 %v5216_v49, %v2127_v63  ;;  %v2460_v14 = vmul.f32 %v2247_v10, %v5228_v26  ;;  %v2251_v44 = vsub.f32 1.0, %v2250_v33  ;;  %vm2256_vm7 = vmor %vm2254_vm5, %vm2255_vm3  ;;  %v2273_v41 = vand.u32 2147483647, %v2206_v36 }
 0x462   :  { %vm2269_vm15 = vweird.f32 %v2206_v36 }
 0x463   :  { %v2160_v18 = vsub.f32 0.0, %v5254_v57  ;;  %3558 = vmatmul.msk.f32.gmra.mxu0 %vm114_vm1, %v2460_v14  ;;  %v2252_v62 = vmul.f32 %v3744_v1, %v2251_v44  ;;  %vm2274_vm4 = vcmp.eq.f32.partialorder %v2273_v41, 8.507059e+37 }
 0x464   :  { %v2012_v27 = vpop.xlane.xlu1 %2011  ;;  %v1800_v0 = vpop.f32.mrf.mxu0 }
 0x465   :  { %v3746_v12 = vpop.eup %3745  ;;  %v2181_v40 = vmul.f32 1.442695, %v2160_v18  ;;  %v2112_v21 = vmul.f32 %v5212_v50, %v2012_v27  ;;  %v2076_v26 = vadd.f32 %v5237_v32, %v1800_v0  ;;  %v2253_v42 = vadd.f32 %v3744_v1, %v2252_v62 }
 0x466   :  { %v3748_v37 = vpop.eup %3747  ;;  %v2207_v45 = vadd.f32 1.0, %v3746_v12  ;;  %v2275_v32 = vand.u32 2147483648, %v2206_v36 }
 0x467   :  { %3749 = vpow2.f32 %v2181_v40  ;;  %v2128_v23 = vadd.f32 %v2112_v21, %v2076_v26  ;;  %v2257_v29 = vsel %vm2256_vm7, %v3744_v1, %v2253_v42  ;;  %v2265_v56 = vmul.f32 %v3748_v37, %v2206_v36 }
 0x468   :  { %3751 = vrcp.f32 %v2207_v45  ;;  %v2262_v34 = vsel %vm2259_vm2, %v2261_v58, %v2257_v29  ;;  %vm2270_vm6 = vweird.f32 %v3748_v37  ;;  %v2276_v52 = vor.u32 1.1754944e-38, %v2275_v32 }
 0x469   :  { %v5264_v24 = vadd.f32 %v5216_v49, %v2128_v23  ;;  %v2461_v6 = vmul.f32 %v2262_v34, %v5233_v16  ;;  %v2266_v4 = vsub.f32 1.0, %v2265_v56  ;;  %v2084_v16 = vpop.f32.mrf.mxu2  ;;  %vm2271_vm0 = vmor %vm2269_vm15, %vm2270_vm6  ;;  %v2290_v60 = vand.u32 2147483648, %v2207_v45 }
 0x46a   :  { %vm2284_vm5 = vweird.f32 %v2207_v45 }
 0x46b   :  { %v2161_v3 = vsub.f32 0.0, %v5264_v24  ;;  %3559 = vmatmul.msk.f32.gmra.mxu0 %vm114_vm1, %v2461_v6  ;;  %v2267_v13 = vmul.f32 %v3748_v37, %v2266_v4  ;;  %v2291_v17 = vor.u32 1.1754944e-38, %v2290_v60 }
 0x46c   :  { %v2015_v35 = vpop.xlane.xlu2 %2014  ;;  %v1803_v47 = vpop.f32.mrf.mxu0 }
 0x46d   :  { %v3750_v46 = vpop.eup %3749  ;;  %v2183_v51 = vmul.f32 1.442695, %v2161_v3  ;;  %v2113_v53 = vmul.f32 %v5212_v50, %v2015_v35  ;;  %v2079_v39 = vadd.f32 %v5248_v22, %v1803_v47  ;;  %v2268_v2 = vadd.f32 %v3748_v37, %v2267_v13 }
 0x46e   :  { %v3752_v30 = vpop.eup %3751  ;;  %v2208_v19 = vadd.f32 1.0, %v3750_v46  ;;  %v2288_v22 = vand.u32 2147483647, %v2207_v45 }
 0x46f   :  { %3753 = vpow2.f32 %v2183_v51  ;;  %v2129_v43 = vadd.f32 %v2113_v53, %v2079_v39  ;;  %v2272_v20 = vsel %vm2271_vm0, %v3748_v37, %v2268_v2  ;;  %v2280_v59 = vmul.f32 %v3752_v30, %v2207_v45 }
 0x470   :  { %3755 = vrcp.f32 %v2208_v19  ;;  %v2277_v15 = vsel %vm2274_vm4, %v2276_v52, %v2272_v20  ;;  %vm2285_vm3 = vweird.f32 %v3752_v30  ;;  %vm2289_vm2 = vcmp.eq.f32.partialorder %v2288_v22, 8.507059e+37 }
 0x471   :  { %v5272_v55 = vadd.f32 %v5216_v49, %v2129_v43  ;;  %v2462_v8 = vmul.f32 %v2277_v15, %v5240_v31  ;;  %v2281_v54 = vsub.f32 1.0, %v2280_v59  ;;  %vm2286_vm7 = vmor %vm2284_vm5, %vm2285_vm3  ;;  %v2087_v27 = vpop.f32.mrf.mxu2  ;;  %v2303_v21 = vand.u32 2147483647, %v2208_v19 }
 0x472   :  { %v2305_v26 = vand.u32 2147483648, %v2208_v19  ;;  %vm2299_vm15 = vweird.f32 %v2208_v19 }
 0x473   :  { %v2162_v61 = vsub.f32 0.0, %v5272_v55  ;;  %3560 = vmatmul.msk.f32.gmra.mxu0 %vm114_vm1, %v2462_v8  ;;  %v2282_v1 = vmul.f32 %v3752_v30, %v2281_v54  ;;  %vm2304_vm4 = vcmp.eq.f32.partialorder %v2303_v21, 8.507059e+37 }
 0x474   :  { %v2018_v36 = vpop.xlane.xlu0 %2017  ;;  %v1806_v5 = vpop.f32.mrf.mxu0  ;;  %v2306_v41 = vor.u32 1.1754944e-38, %v2305_v26 }
 0x475   :  { %v3754_v63 = vpop.eup %3753  ;;  %v2185_v7 = vmul.f32 1.442695, %v2162_v61  ;;  %v2114_v33 = vmul.f32 %v5212_v50, %v2018_v36  ;;  %v2082_v10 = vadd.f32 %v5259_v25, %v1806_v5  ;;  %v2283_v14 = vadd.f32 %v3752_v30, %v2282_v1 }
 0x476   :  { %v3756_v31 = vpop.eup %3755  ;;  %v5279_v44 = vadd.f32 1.0, %v3754_v63 }
 0x477   :  { %3757 = vpow2.f32 %v2185_v7  ;;  %v2130_v9 = vadd.f32 %v2114_v33, %v2082_v10  ;;  %v2287_v18 = vsel %vm2286_vm7, %v3752_v30, %v2283_v14  ;;  %v2295_v62 = vmul.f32 %v3756_v31, %v2208_v19 }
 0x478   :  { %3759 = vrcp.f32 %v5279_v44  ;;  %v2292_v0 = vsel %vm2289_vm2, %v2291_v17, %v2287_v18  ;;  %vm2300_vm6 = vweird.f32 %v3756_v31  ;;  %v2320_v39 = vand.u32 2147483648, %v5279_v44 }
 0x479   :  { %v5283_v12 = vadd.f32 %v5216_v49, %v2130_v9  ;;  %v2463_v25 = vmul.f32 %v2292_v0, %v5246_v28  ;;  %v2296_v40 = vsub.f32 1.0, %v2295_v62  ;;  %vm2301_vm0 = vmor %vm2299_vm15, %vm2300_vm6  ;;  %v2090_v53 = vpop.f32.mrf.mxu2  ;;  %vm2314_vm5 = vweird.f32 %v5279_v44 }
 0x47a   :  { %v2318_v52 = vand.u32 2147483647, %v5279_v44  ;;  %v2321_v22 = vor.u32 1.1754944e-38, %v2320_v39 }
 0x47b   :  { %v2163_v42 = vsub.f32 0.0, %v5283_v12  ;;  %3561 = vmatmul.msk.f32.gmra.mxu0 %vm114_vm1, %v2463_v25  ;;  %v2297_v37 = vmul.f32 %v3756_v31, %v2296_v40 }
 0x47c   :  { %v2021_v45 = vpop.xlane.xlu1 %2020  ;;  %v1809_v58 = vpop.f32.mrf.mxu0  ;;  %vm2319_vm2 = vcmp.eq.f32.partialorder %v2318_v52, 8.507059e+37 }
 0x47d   :  { %v3758_v23 = vpop.eup %3757  ;;  %v2187_v29 = vmul.f32 1.442695, %v2163_v42  ;;  %v2115_v56 = vmul.f32 %v5212_v50, %v2021_v45  ;;  %v2085_v34 = vadd.f32 %v2084_v16, %v1809_v58  ;;  %v2298_v6 = vadd.f32 %v3756_v31, %v2297_v37 }
 0x47e   :  { %v3760_v4 = vpop.eup %3759  ;;  %v5289_v28 = vadd.f32 1.0, %v3758_v23 }
 0x47f   :  { %3761 = vpow2.f32 %v2187_v29  ;;  %v2131_v32 = vadd.f32 %v2115_v56, %v2085_v34  ;;  %v2302_v3 = vsel %vm2301_vm0, %v3756_v31, %v2298_v6  ;;  %v2310_v13 = vmul.f32 %v3760_v4, %v5279_v44 }
 0x480   :  { %3763 = vrcp.f32 %v5289_v28  ;;  %v2307_v35 = vsel %vm2304_vm4, %v2306_v41, %v2302_v3  ;;  %vm2315_vm3 = vweird.f32 %v3760_v4  ;;  %v2333_v17 = vand.u32 2147483647, %v5289_v28 }
 0x481   :  { %v5294_v47 = vadd.f32 %v5216_v49, %v2131_v32  ;;  %v2464_v46 = vmul.f32 %v2307_v35, %v5254_v57  ;;  %v2311_v51 = vsub.f32 1.0, %v2310_v13  ;;  %vm2316_vm7 = vmor %vm2314_vm5, %vm2315_vm3  ;;  %v2093_v14 = vpop.f32.mrf.mxu2  ;;  %v2335_v9 = vand.u32 2147483648, %v5289_v28 }
 0x482   :  { %vm2329_vm15 = vweird.f32 %v5289_v28  ;;  %vm2334_vm4 = vcmp.eq.f32.partialorder %v2333_v17, 8.507059e+37 }
 0x483   :  { %v2164_v2 = vsub.f32 0.0, %v5294_v47  ;;  %3562 = vmatmul.msk.f32.gmra.mxu0 %vm114_vm1, %v2464_v46  ;;  %v2312_v16 = vmul.f32 %v3760_v4, %v2311_v51  ;;  %v2336_v42 = vor.u32 1.1754944e-38, %v2335_v9 }
 0x484   :  { %v2024_v30 = vpop.xlane.xlu2 %2023  ;;  %v1812_v19 = vpop.f32.mrf.mxu0 }
 0x485   :  { %v3762_v43 = vpop.eup %3761  ;;  %v2189_v20 = vmul.f32 1.442695, %v2164_v2  ;;  %v2116_v57 = vmul.f32 %v5212_v50, %v2024_v30  ;;  %v2088_v59 = vadd.f32 %v2087_v27, %v1812_v19  ;;  %v2313_v15 = vadd.f32 %v3760_v4, %v2312_v16 }
 0x486   :  { %v3764_v8 = vpop.eup %3763  ;;  %v5303_v54 = vadd.f32 1.0, %v3762_v43 }
 0x487   :  { %3765 = vpow2.f32 %v2189_v20  ;;  %v2132_v60 = vadd.f32 %v2116_v57, %v2088_v59  ;;  %v2317_v61 = vsel %vm2316_vm7, %v3760_v4, %v2313_v15  ;;  %v2325_v1 = vmul.f32 %v3764_v8, %v5289_v28 }
 0x488   :  { %3767 = vrcp.f32 %v5303_v54  ;;  %v2322_v5 = vsel %vm2319_vm2, %v2321_v22, %v2317_v61  ;;  %vm2330_vm6 = vweird.f32 %v3764_v8  ;;  %v2348_v23 = vand.u32 2147483647, %v5303_v54 }
 0x489   :  { %v5308_v36 = vadd.f32 %v5216_v49, %v2132_v60  ;;  %v2326_v63 = vsub.f32 1.0, %v2325_v1  ;;  %v2465_v7 = vmul.f32 %v2322_v5, %v5264_v24  ;;  %vm2331_vm0 = vmor %vm2329_vm15, %vm2330_vm6  ;;  %v2350_v29 = vand.u32 2147483648, %v5303_v54  ;;  %v2096_v2 = vpop.f32.mrf.mxu2 }
 0x48a   :  { %vm2344_vm5 = vweird.f32 %v5303_v54  ;;  %vm2349_vm2 = vcmp.eq.f32.partialorder %v2348_v23, 8.507059e+37 }
 0x48b   :  { %v2165_v33 = vsub.f32 0.0, %v5308_v36  ;;  %v2327_v10 = vmul.f32 %v3764_v8, %v2326_v63  ;;  %3563 = vmatmul.msk.f32.gmra.mxu0 %vm114_vm1, %v2465_v7 }
 0x48c   :  { %v2027_v31 = vpop.xlane.xlu0 %2026  ;;  %v1815_v44 = vpop.f32.mrf.mxu0 }
 0x48d   :  { %v3766_v18 = vpop.eup %3765  ;;  %v2191_v62 = vmul.f32 1.442695, %v2165_v33  ;;  %v2117_v27 = vmul.f32 %v5212_v50, %v2027_v31  ;;  %v2091_v0 = vadd.f32 %v2090_v53, %v1815_v44  ;;  %v2328_v25 = vadd.f32 %v3764_v8, %v2327_v10 }
 0x48e   :  { %v3768_v24 = vpop.eup %3767  ;;  %v2212_v40 = vadd.f32 1.0, %v3766_v18  ;;  %v2351_v53 = vor.u32 1.1754944e-38, %v2350_v29 }
 0x48f   :  { %v2340_v21 = vmul.f32 %v3768_v24, %v5303_v54  ;;  %3769 = vpow2.f32 %v2191_v62  ;;  %v2133_v26 = vadd.f32 %v2117_v27, %v2091_v0  ;;  %v2332_v58 = vsel %vm2331_vm0, %v3764_v8, %v2328_v25 }
 0x490   :  { %3771 = vrcp.f32 %v2212_v40  ;;  %v2337_v56 = vsel %vm2334_vm4, %v2336_v42, %v2332_v58  ;;  %vm2345_vm3 = vweird.f32 %v3768_v24  ;;  %v2365_v20 = vand.u32 2147483648, %v2212_v40 }
 0x491   :  { %v2341_v37 = vsub.f32 1.0, %v2340_v21  ;;  %v5320_v45 = vadd.f32 %v5216_v49, %v2133_v26  ;;  %v2466_v4 = vmul.f32 %v2337_v56, %v5272_v55  ;;  %vm2346_vm7 = vmor %vm2344_vm5, %vm2345_vm3  ;;  %v2363_v59 = vand.u32 2147483647, %v2212_v40  ;;  %v2099_v44 = vpop.f32.mrf.mxu2 }
 0x492   :  { %vm2359_vm15 = vweird.f32 %v2212_v40 }
 0x493   :  { %v2342_v34 = vmul.f32 %v3768_v24, %v2341_v37  ;;  %v2166_v6 = vsub.f32 0.0, %v5320_v45  ;;  %3564 = vmatmul.msk.f32.gmra.mxu0 %vm114_vm1, %v2466_v4  ;;  %vm2364_vm4 = vcmp.eq.f32.partialorder %v2363_v59, 8.507059e+37 }
 0x494   :  { %v2030_v28 = vpop.xlane.xlu1 %2029  ;;  %v1818_v41 = vpop.f32.mrf.mxu0 }
 0x495   :  { %v3770_v32 = vpop.eup %3769  ;;  %v2343_v3 = vadd.f32 %v3768_v24, %v2342_v34  ;;  %v2193_v13 = vmul.f32 1.442695, %v2166_v6  ;;  %v2118_v35 = vmul.f32 %v5212_v50, %v2030_v28  ;;  %v2094_v46 = vadd.f32 %v2093_v14, %v1818_v41 }
 0x496   :  { %v3772_v51 = vpop.eup %3771  ;;  %v2213_v39 = vadd.f32 1.0, %v3770_v32 }
 0x497   :  { %v2347_v16 = vsel %vm2346_vm7, %v3768_v24, %v2343_v3  ;;  %v2355_v55 = vmul.f32 %v3772_v51, %v2212_v40  ;;  %3773 = vpow2.f32 %v2193_v13  ;;  %v2134_v43 = vadd.f32 %v2118_v35, %v2094_v46 }
 0x498   :  { %v2352_v30 = vsel %vm2349_vm2, %v2351_v53, %v2347_v16  ;;  %3775 = vrcp.f32 %v2213_v39  ;;  %vm2360_vm6 = vweird.f32 %v3772_v51  ;;  %v2380_v18 = vand.u32 2147483648, %v2213_v39 }
 0x499   :  { %v2467_v19 = vmul.f32 %v2352_v30, %v5283_v12  ;;  %v2356_v52 = vsub.f32 1.0, %v2355_v55  ;;  %v5331_v15 = vadd.f32 %v5216_v49, %v2134_v43  ;;  %vm2361_vm0 = vmor %vm2359_vm15, %vm2360_vm6  ;;  %v2366_v12 = vor.u32 1.1754944e-38, %v2365_v20  ;;  %v2102_v46 = vpop.f32.mrf.mxu2 }
 0x49a   :  { %v2378_v0 = vand.u32 2147483647, %v2213_v39  ;;  %vm2374_vm5 = vweird.f32 %v2213_v39  ;;  %v2381_v37 = vor.u32 1.1754944e-38, %v2380_v18 }
 0x49b   :  { %v2357_v57 = vmul.f32 %v3772_v51, %v2356_v52  ;;  %v2167_v61 = vsub.f32 0.0, %v5331_v15  ;;  %3565 = vmatmul.msk.f32.gmra.mxu0 %vm114_vm1, %v2467_v19 }
 0x49c   :  { %v2033_v8 = vpop.xlane.xlu2 %2032  ;;  %v1821_v54 = vpop.f32.mrf.mxu0  ;;  %vm2379_vm2 = vcmp.eq.f32.partialorder %v2378_v0, 8.507059e+37 }
 0x49d   :  { %v3774_v22 = vpop.eup %3773  ;;  %v2358_v60 = vadd.f32 %v3772_v51, %v2357_v57  ;;  %v2119_v63 = vmul.f32 %v5212_v50, %v2033_v8  ;;  %v2097_v7 = vadd.f32 %v2096_v2, %v1821_v54  ;;  %v2195_v14 = vmul.f32 1.442695, %v2167_v61 }
 0x49e   :  { %v3776_v1 = vpop.eup %3775  ;;  %v2214_v5 = vadd.f32 1.0, %v3774_v22 }
 0x49f   :  { %v2362_v33 = vsel %vm2361_vm0, %v3772_v51, %v2358_v60  ;;  %v2370_v10 = vmul.f32 %v3776_v1, %v2213_v39  ;;  %v2135_v62 = vadd.f32 %v2119_v63, %v2097_v7  ;;  %vm2375_vm3 = vweird.f32 %v3776_v1 }
 0x4a0   :  { %v2367_v31 = vsel %vm2364_vm4, %v2366_v12, %v2362_v33  ;;  %3777 = vrcp.f32 %v2214_v5  ;;  %vm2376_vm7 = vmor %vm2374_vm5, %vm2375_vm3  ;;  %v2393_v13 = vand.u32 2147483647, %v2214_v5  ;;  %v2395_v35 = vand.u32 2147483648, %v2214_v5 }
 0x4a1   :  { %v2468_v17 = vmul.f32 %v2367_v31, %v5294_v47  ;;  %v2371_v9 = vsub.f32 1.0, %v2370_v10  ;;  %3779 = vpow2.f32 %v2195_v14  ;;  %v5338_v25 = vadd.f32 %v5216_v49, %v2135_v62 }
 0x4a2   :  { %vm2389_vm15 = vweird.f32 %v2214_v5  ;;  %v2396_v19 = vor.u32 1.1754944e-38, %v2395_v35  ;;  %vm2394_vm4 = vcmp.eq.f32.partialorder %v2393_v13, 8.507059e+37 }
 0x4a3   :  { %v2372_v27 = vmul.f32 %v3776_v1, %v2371_v9  ;;  %3566 = vmatmul.msk.f32.gmra.mxu0 %vm114_vm1, %v2468_v17  ;;  %v2168_v58 = vsub.f32 0.0, %v5338_v25 }
 0x4a4   :  { %v2036_v24 = vpop.xlane.xlu0 %2035  ;;  %v1824_v40 = vpop.f32.mrf.mxu0 }
 0x4a5   :  { %v2373_v21 = vadd.f32 %v3776_v1, %v2372_v27  ;;  %v2120_v26 = vmul.f32 %v5212_v50, %v2036_v24  ;;  %v2100_v42 = vadd.f32 %v2099_v44, %v1824_v40  ;;  %v2197_v28 = vmul.f32 1.442695, %v2168_v58 }
 0x4a6   :  { %v3778_v47 = vpop.eup %3777 }
 0x4a7   :  { %v3780_v23 = vpop.eup %3779  ;;  %v2377_v29 = vsel %vm2376_vm7, %v3776_v1, %v2373_v21  ;;  %v2385_v56 = vmul.f32 %v3778_v47, %v2214_v5  ;;  %v2136_v34 = vadd.f32 %v2120_v26, %v2100_v42  ;;  %vm2390_vm6 = vweird.f32 %v3778_v47 }
 0x4a8   :  { %v2382_v6 = vsel %vm2379_vm2, %v2381_v37, %v2377_v29  ;;  %v2215_v4 = vadd.f32 1.0, %v3780_v23  ;;  %vm2391_vm0 = vmor %vm2389_vm15, %vm2390_vm6 }
 0x4a9   :  { %v2469_v41 = vmul.f32 %v2382_v6, %v5308_v36  ;;  %v2386_v32 = vsub.f32 1.0, %v2385_v56  ;;  %v5345_v3 = vadd.f32 %v5216_v49, %v2136_v34 }
 0x4aa   :  { %3781 = vrcp.f32 %v2215_v4  ;;  %v2410_v1 = vand.u32 2147483648, %v2215_v4  ;;  %v2408_v63 = vand.u32 2147483647, %v2215_v4  ;;  %vm2404_vm5 = vweird.f32 %v2215_v4 }
 0x4ab   :  { %v2387_v51 = vmul.f32 %v3778_v47, %v2386_v32  ;;  %3783 = vpow2.f32 %v2197_v28  ;;  %v2169_v53 = vsub.f32 0.0, %v5345_v3  ;;  %3567 = vmatmul.msk.f32.gmra.mxu0 %vm114_vm1, %v2469_v41 }
 0x4ac   :  { %v2039_v39 = vpop.xlane.xlu1 %2038  ;;  %v1827_v2 = vpop.f32.mrf.mxu0  ;;  %vm2409_vm2 = vcmp.eq.f32.partialorder %v2408_v63, 8.507059e+37 }
 0x4ad   :  { %v2388_v16 = vadd.f32 %v3778_v47, %v2387_v51  ;;  %v2199_v55 = vmul.f32 1.442695, %v2169_v53  ;;  %v2121_v36 = vmul.f32 %v5212_v50, %v2039_v39  ;;  %v2103_v30 = vadd.f32 %v2102_v46, %v1827_v2 }
 0x4af   :  { %v2392_v52 = vsel %vm2391_vm0, %v3778_v47, %v2388_v16  ;;  %3785 = vpow2.f32 %v2199_v55  ;;  %v2137_v43 = vadd.f32 %v2121_v36, %v2103_v30  ;;  %v5365_v30 = vperm.slane %v5206_v38, 2 }
 0x4b0   :  { %v3782_v20 = vpop.eup %3781  ;;  %v2397_v57 = vsel %vm2394_vm4, %v2396_v19, %v2392_v52 }
 0x4b1   :  { %v3784_v59 = vpop.eup %3783  ;;  %v2470_v8 = vmul.f32 %v2397_v57, %v5320_v45  ;;  %v2400_v54 = vmul.f32 %v3782_v20, %v2215_v4  ;;  %v5352_v22 = vadd.f32 %v5216_v49, %v2137_v43  ;;  %vm2405_vm3 = vweird.f32 %v3782_v20 }
 0x4b2   :  { %v2216_v60 = vadd.f32 1.0, %v3784_v59  ;;  %vm2406_vm7 = vmor %vm2404_vm5, %vm2405_vm3  ;;  %v2411_v49 = vor.u32 1.1754944e-38, %v2410_v1 }
 0x4b3   :  { %v2401_v61 = vsub.f32 1.0, %v2400_v54  ;;  %v2170_v50 = vsub.f32 0.0, %v5352_v22  ;;  %3568 = vmatmul.msk.f32.gmra.mxu0 %vm114_vm1, %v2470_v8 }
 0x4b4   :  { %3787 = vrcp.f32 %v2216_v60  ;;  %v2423_v27 = vand.u32 2147483647, %v2216_v60  ;;  %v2425_v0 = vand.u32 2147483648, %v2216_v60  ;;  %vm2419_vm15 = vweird.f32 %v2216_v60 }
 0x4b5   :  { %v3786_v12 = vpop.eup %3785  ;;  %v2402_v5 = vmul.f32 %v3782_v20, %v2401_v61  ;;  %v2201_v7 = vmul.f32 1.442695, %v2170_v50 }
 0x4b6   :  { %v2217_v33 = vadd.f32 1.0, %v3786_v12  ;;  %vm2424_vm4 = vcmp.eq.f32.partialorder %v2423_v27, 8.507059e+37  ;;  %v2426_v47 = vor.u32 1.1754944e-38, %v2425_v0 }
 0x4b7   :  { %v2403_v10 = vadd.f32 %v3782_v20, %v2402_v5  ;;  %3789 = vpow2.f32 %v2201_v7 }
 0x4b8   :  { %3791 = vrcp.f32 %v2217_v33  ;;  %v2438_v23 = vand.u32 2147483647, %v2217_v33  ;;  %vm2434_vm5 = vweird.f32 %v2217_v33 }
 0x4b9   :  { %v2407_v45 = vsel %vm2406_vm7, %v3782_v20, %v2403_v10 }
 0x4ba   :  { %v3788_v14 = vpop.eup %3787  ;;  %v2412_v31 = vsel %vm2409_vm2, %v2411_v49, %v2407_v45  ;;  %vm2439_vm2 = vcmp.eq.f32.partialorder %v2438_v23, 8.507059e+37  ;;  %v3475_v23 = vld [vmem:[%s5934_s5 + $0xb8] sm:$0xff] }
 0x4bb   :  { %v2471_v44 = vmul.f32 %v2412_v31, %v5331_v15  ;;  %v2415_v17 = vmul.f32 %v3788_v14, %v2216_v60  ;;  %vm2420_vm6 = vweird.f32 %v3788_v14  ;;  %v2440_v15 = vand.u32 2147483648, %v2217_v33  ;;  %3090 = vmatpush.msra.mxu3 %v3475_v23 }
 0x4bc   :  { %vm2421_vm0 = vmor %vm2419_vm15, %vm2420_vm6 }
 0x4bd   :  { %v3790_v9 = vpop.eup %3789  ;;  %v2416_v18 = vsub.f32 1.0, %v2415_v17  ;;  %3569 = vmatmul.msk.f32.gmra.mxu0 %vm114_vm1, %v2471_v44  ;;  %v2441_v4 = vor.u32 1.1754944e-38, %v2440_v15 }
 0x4be   :  { %v3792_v62 = vpop.eup %3791  ;;  %v2218_v24 = vadd.f32 1.0, %v3790_v9 }
 0x4bf   :  { %v2417_v40 = vmul.f32 %v3788_v14, %v2416_v18  ;;  %v2430_v21 = vmul.f32 %v3792_v62, %v2217_v33  ;;  %vm2435_vm3 = vweird.f32 %v3792_v62 }
 0x4c0   :  { %3793 = vrcp.f32 %v2218_v24  ;;  %vm2436_vm7 = vmor %vm2434_vm5, %vm2435_vm3  ;;  %v2455_v35 = vand.u32 2147483648, %v2218_v24  ;;  %v2453_v53 = vand.u32 2147483647, %v2218_v24  ;;  %vm2449_vm15 = vweird.f32 %v2218_v24 }
 0x4c1   :  { %v2418_v26 = vadd.f32 %v3788_v14, %v2417_v40  ;;  %v2431_v42 = vsub.f32 1.0, %v2430_v21 }
 0x4c3   :  { %v2422_v37 = vsel %vm2421_vm0, %v3788_v14, %v2418_v26  ;;  %v2432_v58 = vmul.f32 %v3792_v62, %v2431_v42 }
 0x4c4   :  { %v2427_v29 = vsel %vm2424_vm4, %v2426_v47, %v2422_v37  ;;  %vm2454_vm4 = vcmp.eq.f32.partialorder %v2453_v53, 8.507059e+37 }
 0x4c5   :  { %v2472_v56 = vmul.f32 %v2427_v29, %v5338_v25  ;;  %v2433_v34 = vadd.f32 %v3792_v62, %v2432_v58  ;;  %v2456_v25 = vor.u32 1.1754944e-38, %v2455_v35  ;;  %v3483_v29 = vld [vmem:[%s5935_s6 + $0x98] sm:$0xff] }
 0x4c6   :  { %v3794_v6 = vpop.eup %3793  ;;  %3067 = vmatpush.msra.mxu1 %v3483_v29 }
 0x4c7   :  { %v2437_v28 = vsel %vm2436_vm7, %v3792_v62, %v2433_v34  ;;  %v2445_v41 = vmul.f32 %v3794_v6, %v2218_v24  ;;  %3570 = vmatmul.msk.f32.gmra.mxu0 %vm114_vm1, %v2472_v56  ;;  %vm2450_vm6 = vweird.f32 %v3794_v6 }
 0x4c8   :  { %v2442_v32 = vsel %vm2439_vm2, %v2441_v4, %v2437_v28  ;;  %vm2451_vm0 = vmor %vm2449_vm15, %vm2450_vm6 }
 0x4c9   :  { %v2446_v13 = vsub.f32 1.0, %v2445_v41  ;;  %v2473_v46 = vmul.f32 %v2442_v32, %v5345_v3 }
 0x4cb   :  { %v2447_v51 = vmul.f32 %v3794_v6, %v2446_v13 }
 0x4cd   :  { %v2448_v39 = vadd.f32 %v3794_v6, %v2447_v51 }
 0x4cf   :  { %v2452_v2 = vsel %vm2451_vm0, %v3794_v6, %v2448_v39  ;;  %3571 = vmatmul.msk.f32.gmra.mxu0 %vm114_vm1, %v2473_v46 }
 0x4d0   :  { %v2457_v16 = vsel %vm2454_vm4, %v2456_v25, %v2452_v2 }
 0x4d1   :  { %v2474_v55 = vmul.f32 %v2457_v16, %v5352_v22 }
 0x4d7   :  { %3572 = vmatmul.msk.f32.gmra.mxu0 %vm114_vm1, %v2474_v55 }
 0x4d8   :  { %v2541_v36 = vpop.f32.mrf.mxu0 }
 0x4d9   :  { %v5368_v3 = vadd.f32 %v2541_v36, %v5365_v30 }
 0x4db   :  { %v2589_v52 = vsub.f32 0.0, %v5368_v3 }
 0x4dd   :  { %v2605_v20 = vmul.f32 1.442695, %v2589_v52 }
 0x4df   :  { %3795 = vpow2.f32 %v2605_v20 }
 0x4e0   :  { %v2544_v19 = vpop.f32.mrf.mxu0 }
 0x4e1   :  { %v5372_v43 = vadd.f32 %v2544_v19, %v5365_v30 }
 0x4e3   :  { %v2590_v57 = vsub.f32 0.0, %v5372_v43 }
 0x4e5   :  { %v2607_v54 = vmul.f32 1.442695, %v2590_v57  ;;  %v3796_v22 = vpop.eup %3795 }
 0x4e6   :  { %v5382_v1 = vadd.f32 1.0, %v3796_v22 }
 0x4e7   :  { %3797 = vpow2.f32 %v2607_v54 }
 0x4e8   :  { %v2547_v59 = vpop.f32.mrf.mxu0  ;;  %vm2658_vm5 = vweird.f32 %v5382_v1  ;;  %v2664_v35 = vand.u32 2147483648, %v5382_v1  ;;  %v2662_v53 = vand.u32 2147483647, %v5382_v1 }
 0x4e9   :  { %v5376_v8 = vadd.f32 %v2547_v59, %v5365_v30 }
 0x4ea   :  { %v2665_v20 = vor.u32 1.1754944e-38, %v2664_v35  ;;  %vm2663_vm6 = vcmp.eq.f32.partialorder %v2662_v53, 8.507059e+37 }
 0x4eb   :  { %v2591_v38 = vsub.f32 0.0, %v5376_v8 }
 0x4ed   :  { %v2609_v60 = vmul.f32 1.442695, %v2591_v38  ;;  %v3798_v5 = vpop.eup %3797 }
 0x4ee   :  { %v5386_v7 = vadd.f32 1.0, %v3798_v5 }
 0x4ef   :  { %3799 = vpow2.f32 %v2609_v60 }
 0x4f0   :  { %v2550_v61 = vpop.f32.mrf.mxu0  ;;  %3801 = vrcp.f32 %v5382_v1  ;;  %v2677_v16 = vand.u32 2147483647, %v5386_v7  ;;  %v2679_v57 = vand.u32 2147483648, %v5386_v7  ;;  %vm2673_vm15 = vweird.f32 %v5386_v7 }
 0x4f1   :  { %v5380_v50 = vadd.f32 %v2550_v61, %v5365_v30 }
 0x4f2   :  { %vm2678_vm4 = vcmp.eq.f32.partialorder %v2677_v16, 8.507059e+37 }
 0x4f3   :  { %v2592_v12 = vsub.f32 0.0, %v5380_v50 }
 0x4f5   :  { %v2611_v63 = vmul.f32 1.442695, %v2592_v12  ;;  %v3800_v49 = vpop.eup %3799 }
 0x4f6   :  { %v3802_v14 = vpop.eup %3801  ;;  %v5393_v44 = vadd.f32 1.0, %v3800_v49 }
 0x4f7   :  { %3803 = vpow2.f32 %v2611_v63  ;;  %v2654_v9 = vmul.f32 %v3802_v14, %v5382_v1  ;;  %vm2659_vm3 = vweird.f32 %v3802_v14  ;;  %v2680_v63 = vor.u32 1.1754944e-38, %v2679_v57 }
 0x4f8   :  { %v2553_v33 = vpop.f32.mrf.mxu0  ;;  %3805 = vrcp.f32 %v5386_v7  ;;  %vm5434_vm7 = vmor %vm2658_vm5, %vm2659_vm3  ;;  %v2692_v1 = vand.u32 2147483647, %v5393_v44  ;;  %vm2688_vm3 = vweird.f32 %v5393_v44 }
 0x4f9   :  { %v5389_v10 = vadd.f32 %v2553_v33, %v5365_v30  ;;  %v2655_v24 = vsub.f32 1.0, %v2654_v9  ;;  %v3481_v9 = vld [vmem:[%s5935_s6 + $0x88] sm:$0xff] }
 0x4fb   :  { %v2593_v45 = vsub.f32 0.0, %v5389_v10  ;;  %v2656_v37 = vmul.f32 %v3802_v14, %v2655_v24 }
 0x4fd   :  { %v3804_v31 = vpop.eup %3803  ;;  %v2613_v17 = vmul.f32 1.442695, %v2593_v45  ;;  %v2657_v28 = vadd.f32 %v3802_v14, %v2656_v37 }
 0x4fe   :  { %v5396_v18 = vadd.f32 1.0, %v3804_v31  ;;  %v5398_v27 = vpop.eup %3805 }
 0x4ff   :  { %3807 = vpow2.f32 %v2613_v17  ;;  %v2669_v40 = vmul.f32 %v5398_v27, %v5386_v7  ;;  %v2661_v2 = vsel %vm5434_vm7, %v3802_v14, %v2657_v28  ;;  %vm2674_vm2 = vweird.f32 %v5398_v27 }
 0x500   :  { %v2556_v62 = vpop.f32.mrf.mxu0  ;;  %3809 = vrcp.f32 %v5393_v44  ;;  %v2666_v60 = vsel %vm2663_vm6, %v2665_v20, %v2661_v2  ;;  %vm5451_vm0 = vmor %vm2673_vm15, %vm2674_vm2  ;;  %v2694_v7 = vand.u32 2147483648, %v5393_v44  ;;  %vm5470_vm7 = vcmp.eq.f32.partialorder %v2692_v1, 8.507059e+37  ;;  %v3473_v2 = vld [vmem:[%s5934_s5 + $0xa8] sm:$0xff] }
 0x501   :  { %v5402_v0 = vadd.f32 %v2556_v62, %v5365_v30  ;;  %3811 = vrcp.f32 %v5396_v18  ;;  %v2670_v58 = vsub.f32 1.0, %v2669_v40  ;;  %v2893_v14 = vmul.f32 %v2666_v60, %v5368_v3 }
 0x502   :  { %v2707_v3 = vand.u32 2147483647, %v5396_v18  ;;  %v2709_v40 = vand.u32 2147483648, %v5396_v18 }
 0x503   :  { %v2594_v21 = vsub.f32 0.0, %v5402_v0  ;;  %v2671_v41 = vmul.f32 %v5398_v27, %v2670_v58  ;;  %v2909_v20 = vsel %vm114_vm1, %v2893_v14, 0.0 }
 0x505   :  { %v3808_v26 = vpop.eup %3807  ;;  %v2615_v47 = vmul.f32 1.442695, %v2594_v21  ;;  %v2672_v19 = vadd.f32 %v5398_v27, %v2671_v41  ;;  %v5587_v41 = vld [vmem:[%s5931_s2 + $0x8] sm:$0xff] }
 0x506   :  { %v5408_v42 = vadd.f32 1.0, %v3808_v26  ;;  %v5410_v15 = vpop.eup %3809  ;;  %v2695_v26 = vor.u32 1.1754944e-38, %v2694_v7 }
 0x507   :  { %v5419_v56 = vpop.eup %3811  ;;  %v2684_v6 = vmul.f32 %v5410_v15, %v5393_v44  ;;  %v2676_v12 = vsel %vm5451_vm0, %v5398_v27, %v2672_v19  ;;  %vm2689_vm5 = vweird.f32 %v5410_v15  ;;  %vm2703_vm0 = vweird.f32 %v5396_v18 }
 0x508   :  { %3813 = vrcp.f32 %v5408_v42  ;;  %v2559_v34 = vpop.f32.mrf.mxu0  ;;  %v2699_v32 = vmul.f32 %v5419_v56, %v5396_v18  ;;  %v2681_v17 = vsel %vm2678_vm4, %v2680_v63, %v2676_v12  ;;  %vm2704_vm2 = vweird.f32 %v5419_v56  ;;  %vm5481_vm6 = vmor %vm2688_vm3, %vm2689_vm5  ;;  %v5554_v12 = vld [vmem:[%s5931_s2] sm:$0xff] }
 0x509   :  { %3815 = vpow2.f32 %v2615_v47  ;;  %v5424_v4 = vadd.f32 %v2559_v34, %v5365_v30  ;;  %v2685_v39 = vsub.f32 1.0, %v2684_v6  ;;  %v2724_v58 = vand.u32 2147483648, %v5408_v42  ;;  %vm5497_vm4 = vmor %vm2703_vm0, %vm2704_vm2 }
 0x50a   :  { %v2700_v52 = vsub.f32 1.0, %v2699_v32  ;;  %v2894_v34 = vmul.f32 %v2681_v17, %v5372_v43  ;;  %vm2718_vm3 = vweird.f32 %v5408_v42  ;;  %v2722_v28 = vand.u32 2147483647, %v5408_v42 }
 0x50b   :  { %v2595_v13 = vsub.f32 0.0, %v5424_v4  ;;  %v2686_v38 = vmul.f32 %v5410_v15, %v2685_v39  ;;  %vm5506_vm5 = vcmp.eq.f32.partialorder %v2707_v3, 8.507059e+37  ;;  %v2710_v43 = vor.u32 1.1754944e-38, %v2709_v40 }
 0x50c   :  { %v2701_v5 = vmul.f32 %v5419_v56, %v2700_v52  ;;  %v2725_v53 = vor.u32 1.1754944e-38, %v2724_v58  ;;  %v3472_v52 = vld [vmem:[%s5934_s5 + $0xa0] sm:$0xff] }
 0x50d   :  { %v2617_v25 = vmul.f32 1.442695, %v2595_v13  ;;  %v2687_v31 = vadd.f32 %v5410_v15, %v2686_v38 }
 0x50e   :  { %v5432_v46 = vpop.eup %3813  ;;  %v2702_v24 = vadd.f32 %v5419_v56, %v2701_v5 }
 0x50f   :  { %v2714_v55 = vmul.f32 %v5432_v46, %v5408_v42  ;;  %v3816_v36 = vpop.eup %3815  ;;  %3817 = vpow2.f32 %v2617_v25  ;;  %vm2719_vm15 = vweird.f32 %v5432_v46  ;;  %v2691_v37 = vsel %vm5481_vm6, %v5410_v15, %v2687_v31  ;;  %v3474_v42 = vld [vmem:[%s5934_s5 + $0xb0] sm:$0xff] }
 0x510   :  { %v5447_v54 = vadd.f32 1.0, %v3816_v36  ;;  %v2562_v22 = vpop.f32.mrf.mxu0  ;;  %v2706_v18 = vsel %vm5497_vm4, %v5419_v56, %v2702_v24  ;;  %vm5512_vm2 = vmor %vm2718_vm3, %vm2719_vm15  ;;  %v2696_v35 = vsel %vm5470_vm7, %v2695_v26, %v2691_v37  ;;  %3091 = vmatpush.msra.mxu3 %v3474_v42  ;;  %vm2723_vm7 = vcmp.eq.f32.partialorder %v2722_v28, 8.507059e+37 }
 0x511   :  { %v2715_v59 = vsub.f32 1.0, %v2714_v55  ;;  %v5464_v49 = vadd.f32 %v2562_v22, %v5365_v30  ;;  %v2711_v55 = vsel %vm5506_vm5, %v2710_v43, %v2706_v18  ;;  %v2895_v57 = vmul.f32 %v2696_v35, %v5376_v8  ;;  %v3482_v8 = vld [vmem:[%s5935_s6 + $0x90] sm:$0xff] }
 0x512   :  { %3819 = vrcp.f32 %v5447_v54  ;;  %v2739_v51 = vand.u32 2147483648, %v5447_v54  ;;  %v2737_v25 = vand.u32 2147483647, %v5447_v54  ;;  %3092 = vmatpush.msra.mxu3 %v3473_v2  ;;  %vm2733_vm15 = vweird.f32 %v5447_v54  ;;  %3068 = vmatpush.msra.mxu1 %v3482_v8 }
 0x513   :  { %v2716_v33 = vmul.f32 %v5432_v46, %v2715_v59  ;;  %v2596_v27 = vsub.f32 0.0, %v5464_v49  ;;  %v2896_v63 = vmul.f32 %v2711_v55, %v5380_v50  ;;  %v2923_v24 = vsel %vm114_vm1, %v2895_v57, 0.0 }
 0x514   :  { %v2740_v38 = vor.u32 1.1754944e-38, %v2739_v51  ;;  %3093 = vmatpush.msra.mxu3 %v3472_v52  ;;  %vm2738_vm4 = vcmp.eq.f32.partialorder %v2737_v25, 8.507059e+37  ;;  %3069 = vmatpush.msra.mxu1 %v3481_v9  ;;  %v2924_v26 = vrot.slane %v2923_v24, 4 }
 0x515   :  { %v3818_v45 = vpop.eup %3817  ;;  %v2717_v47 = vadd.f32 %v5432_v46, %v2716_v33  ;;  %v2619_v15 = vmul.f32 1.442695, %v2596_v27  ;;  %3575 = vmatmul.msk.f32.vlgmr.msra.gmra.mxu3 %vm114_vm1, %v5554_v12  ;;  %v2930_v21 = vsel %vm114_vm1, %v2896_v63, 0.0 }
 0x516   :  { %v5474_v62 = vadd.f32 1.0, %v3818_v45  ;;  %v2931_v6 = vrot.slane %v2930_v21, 4  ;;  %v2925_v42 = vadd.f32 %v2924_v26, %v2923_v24 }
 0x517   :  { %v2721_v56 = vsel %vm5512_vm2, %v5432_v46, %v2717_v47 }
 0x518   :  { %v3820_v44 = vpop.eup %3819  ;;  %3821 = vrcp.f32 %v5474_v62  ;;  %v2565_v29 = vpop.f32.mrf.mxu0  ;;  %v2726_v46 = vsel %vm2723_vm7, %v2725_v53, %v2721_v56  ;;  %v2754_v45 = vand.u32 2147483648, %v5474_v62  ;;  %v2752_v31 = vand.u32 2147483647, %v5474_v62 }
 0x519   :  { %v2729_v23 = vmul.f32 %v3820_v44, %v5447_v54  ;;  %3823 = vpow2.f32 %v2619_v15  ;;  %vm2734_vm6 = vweird.f32 %v3820_v44  ;;  %v5543_v22 = vadd.f32 %v2565_v29, %v5365_v30 }
 0x51a   :  { %vm5538_vm0 = vmor %vm2733_vm15, %vm2734_vm6  ;;  %v2916_v54 = vsel %vm114_vm1, %v2894_v34, 0.0  ;;  %v2897_v7 = vmul.f32 %v2726_v46, %v5389_v10  ;;  %vm2748_vm5 = vweird.f32 %v5474_v62  ;;  %vm2753_vm6 = vcmp.eq.f32.partialorder %v2752_v31, 8.507059e+37 }
 0x51b   :  { %v2730_v13 = vsub.f32 1.0, %v2729_v23  ;;  %v2917_v27 = vrot.slane %v2916_v54, 4  ;;  %v2597_v10 = vsub.f32 0.0, %v5543_v22  ;;  %v2932_v25 = vadd.f32 %v2931_v6, %v2930_v21 }
 0x51c   :  { %v2937_v47 = vsel %vm114_vm1, %v2897_v7, 0.0 }
 0x51d   :  { %v2731_v39 = vmul.f32 %v3820_v44, %v2730_v13  ;;  %v2621_v29 = vmul.f32 1.442695, %v2597_v10  ;;  %v2918_v34 = vadd.f32 %v2917_v27, %v2916_v54  ;;  %3576 = vmatmul.msk.f32.gmra.mxu3 %vm114_vm1, %v5587_v41  ;;  %v2938_v43 = vrot.slane %v2937_v47, 4 }
 0x51e   :  { %v3822_v16 = vpop.eup %3821 }
 0x51f   :  { %v2732_v36 = vadd.f32 %v3820_v44, %v2731_v39  ;;  %v2744_v19 = vmul.f32 %v3822_v16, %v5474_v62  ;;  %v3824_v5 = vpop.eup %3823  ;;  %vm2749_vm3 = vweird.f32 %v3822_v16  ;;  %v2910_v62 = vrot.slane %v2909_v20, 4 }
 0x520   :  { %v2568_v1 = vpop.f32.mrf.mxu0  ;;  %v5562_v17 = vadd.f32 1.0, %v3824_v5  ;;  %vm2750_vm2 = vmor %vm2748_vm5, %vm2749_vm3  ;;  %v2919_v39 = vrot.slane %v2918_v34, 2  ;;  %v2939_v55 = vadd.f32 %v2938_v43, %v2937_v47 }
 0x521   :  { %v2736_v60 = vsel %vm5538_vm0, %v3820_v44, %v2732_v36  ;;  %v2745_v61 = vsub.f32 1.0, %v2744_v19  ;;  %v5573_v40 = vadd.f32 %v2568_v1, %v5365_v30  ;;  %v3480_v44 = vld [vmem:[%s5935_s6 + $0x80] sm:$0xff]  ;;  %v2911_v56 = vadd.f32 %v2910_v62, %v2909_v20 }
 0x522   :  { %v2741_v33 = vsel %vm2738_vm4, %v2740_v38, %v2736_v60  ;;  %3825 = vrcp.f32 %v5562_v17  ;;  %3070 = vmatpush.msra.mxu1 %v3480_v44  ;;  %v2926_v36 = vrot.slane %v2925_v42, 2  ;;  %v2769_v52 = vand.u32 2147483648, %v5562_v17 }
 0x523   :  { %v2746_v14 = vmul.f32 %v3822_v16, %v2745_v61  ;;  %v2898_v50 = vmul.f32 %v2741_v33, %v5402_v0  ;;  %v2755_v0 = vor.u32 1.1754944e-38, %v2754_v45  ;;  %v2598_v15 = vsub.f32 0.0, %v5573_v40 }
 0x524   :  { %3827 = vpow2.f32 %v2621_v29  ;;  %v2767_v20 = vand.u32 2147483647, %v5562_v17  ;;  %v2912_v54 = vrot.slane %v2911_v56, 2  ;;  %v2920_v60 = vadd.f32 %v2919_v39, %v2918_v34 }
 0x525   :  { %v2747_v3 = vadd.f32 %v3822_v16, %v2746_v14  ;;  %v2944_v58 = vsel %vm114_vm1, %v2898_v50, 0.0  ;;  %v2623_v2 = vmul.f32 1.442695, %v2598_v15  ;;  %v2933_v61 = vrot.slane %v2932_v25, 2 }
 0x526   :  { %v2945_v35 = vrot.slane %v2944_v58, 4  ;;  %v2940_v5 = vrot.slane %v2939_v55, 2  ;;  %vm2763_vm15 = vweird.f32 %v5562_v17  ;;  %v2927_v33 = vadd.f32 %v2926_v36, %v2925_v42 }
 0x527   :  { %v2751_v37 = vsel %vm2750_vm2, %v3822_v16, %v2747_v3  ;;  %3829 = vpow2.f32 %v2623_v2  ;;  %v2770_v14 = vor.u32 1.1754944e-38, %v2769_v52  ;;  %vm2768_vm4 = vcmp.eq.f32.partialorder %v2767_v20, 8.507059e+37 }
 0x528   :  { %v2756_v23 = vsel %vm2753_vm6, %v2755_v0, %v2751_v37  ;;  %v2571_v18 = vpop.f32.mrf.mxu0  ;;  %v3826_v13 = vpop.eup %3825  ;;  %v2946_v19 = vadd.f32 %v2945_v35, %v2944_v58  ;;  %v2913_v24 = vadd.f32 %v2912_v54, %v2911_v56  ;;  %v2934_v50 = vadd.f32 %v2933_v61, %v2932_v25 }
 0x529   :  { %v2899_v28 = vmul.f32 %v2756_v23, %v5424_v4  ;;  %v5592_v32 = vadd.f32 %v2571_v18, %v5365_v30  ;;  %v2759_v53 = vmul.f32 %v3826_v13, %v5562_v17  ;;  %vm2764_vm7 = vweird.f32 %v3826_v13 }
 0x52a   :  { %v3828_v1 = vpop.eup %3827  ;;  %v2947_v45 = vrot.slane %v2946_v19, 2  ;;  %vm2765_vm0 = vmor %vm2763_vm15, %vm2764_vm7  ;;  %v2941_v44 = vadd.f32 %v2940_v5, %v2939_v55  ;;  %v2921_v26 = vrot.slane %v2920_v60, 1  ;;  %v2928_v37 = vrot.slane %v2927_v33, 1 }
 0x52b   :  { %v2951_v4 = vsel %vm114_vm1, %v2899_v28, 0.0  ;;  %v2599_v16 = vsub.f32 0.0, %v5592_v32  ;;  %v2760_v46 = vsub.f32 1.0, %v2759_v53  ;;  %v5604_v3 = vadd.f32 1.0, %v3828_v1 }
 0x52c   :  { %v2952_v51 = vrot.slane %v2951_v4, 4  ;;  %v2948_v47 = vadd.f32 %v2947_v45, %v2946_v19  ;;  %v2914_v29 = vrot.slane %v2913_v24, 1  ;;  %v2935_v34 = vrot.slane %v2934_v50, 1 }
 0x52d   :  { %v2625_v57 = vmul.f32 1.442695, %v2599_v16  ;;  %v2761_v38 = vmul.f32 %v3826_v13, %v2760_v46  ;;  %v3830_v0 = vpop.eup %3829  ;;  %v2942_v15 = vrot.slane %v2941_v44, 1  ;;  %v2929_v42 = vadd.f32 %v2928_v37, %v2927_v33 }
 0x52e   :  { %v2953_v59 = vadd.f32 %v2952_v51, %v2951_v4  ;;  %v5609_v18 = vadd.f32 1.0, %v3830_v0  ;;  %v2949_v43 = vrot.slane %v2948_v47, 1  ;;  %v2915_v51 = vadd.f32 %v2914_v29, %v2913_v24 }
 0x52f   :  { %v2762_v63 = vadd.f32 %v3826_v13, %v2761_v38  ;;  %3831 = vpow2.f32 %v2625_v57  ;;  %v2936_v53 = vadd.f32 %v2935_v34, %v2934_v50  ;;  %v2943_v2 = vadd.f32 %v2942_v15, %v2941_v44 }
 0x530   :  { %v2574_v8 = vpop.f32.mrf.mxu0  ;;  %v2954_v31 = vrot.slane %v2953_v59, 2  ;;  %v2950_v36 = vadd.f32 %v2949_v43, %v2948_v47  ;;  %v2799_v15 = vand.u32 2147483648, %v5609_v18  ;;  %vm2778_vm5 = vweird.f32 %v5604_v3 }
 0x531   :  { %v5601_v7 = vadd.f32 %v2574_v8, %v5365_v30  ;;  %v2766_v9 = vsel %vm2765_vm0, %v3826_v13, %v2762_v63  ;;  %vm2793_vm7 = vweird.f32 %v5609_v18 }
 0x532   :  { %v2771_v10 = vsel %vm2768_vm4, %v2770_v14, %v2766_v9  ;;  %v2955_v62 = vadd.f32 %v2954_v31, %v2953_v59 }
 0x533   :  { %v2600_v27 = vsub.f32 0.0, %v5601_v7  ;;  %v2900_v17 = vmul.f32 %v2771_v10, %v5464_v49  ;;  %v2922_v49 = vadd.f32 %v2921_v26, %v2920_v60 }
 0x534   :  { %v2956_v35 = vrot.slane %v2955_v62, 1 }
 0x535   :  { %v2627_v21 = vmul.f32 1.442695, %v2600_v27  ;;  %v2958_v58 = vsel %vm114_vm1, %v2900_v17, 0.0  ;;  %v3832_v23 = vpop.eup %3831  ;;  %v3037_v46 = vsel %vm1537_vm8, %v2922_v49, %v2915_v51 }
 0x536   :  { %v2959_v6 = vrot.slane %v2958_v58, 4  ;;  %v5611_v4 = vadd.f32 1.0, %v3832_v23  ;;  %v3038_v57 = vsel %vm1539_vm9, %v2929_v42, %v3037_v46  ;;  %v2957_v59 = vadd.f32 %v2956_v35, %v2955_v62 }
 0x537   :  { %3833 = vpow2.f32 %v2627_v21  ;;  %v3039_v20 = vsel %vm1541_vm10, %v2936_v53, %v3038_v57  ;;  %v2782_v62 = vand.u32 2147483647, %v5604_v3 }
 0x538   :  { %3835 = vrcp.f32 %v5604_v3  ;;  %v2960_v13 = vadd.f32 %v2959_v6, %v2958_v58  ;;  %v3040_v60 = vsel %vm1543_vm11, %v2943_v2, %v3039_v20  ;;  %v2784_v58 = vand.u32 2147483648, %v5604_v3 }
 0x539   :  { %3837 = vrcp.f32 %v5609_v18  ;;  %v3041_v5 = vsel %vm1545_vm12, %v2950_v36, %v3040_v60  ;;  %vm5666_vm2 = vcmp.eq.f32.partialorder %v2782_v62, 8.507059e+37 }
 0x53a   :  { %v2577_v28 = vpop.f32.mrf.mxu0  ;;  %v2961_v39 = vrot.slane %v2960_v13, 2  ;;  %3839 = vrcp.f32 %v5611_v4  ;;  %v3042_v33 = vsel %vm1547_vm13, %v2957_v59, %v3041_v5  ;;  %v2785_v42 = vor.u32 1.1754944e-38, %v2784_v58 }
 0x53b   :  { %v5614_v56 = vadd.f32 %v2577_v28, %v5365_v30  ;;  %v2797_v28 = vand.u32 2147483647, %v5609_v18 }
 0x53c   :  { %v2962_v19 = vadd.f32 %v2961_v39, %v2960_v13 }
 0x53d   :  { %v3834_v25 = vpop.eup %3833  ;;  %v2601_v16 = vsub.f32 0.0, %v5614_v56  ;;  %vm5681_vm0 = vcmp.eq.f32.partialorder %v2797_v28, 8.507059e+37 }
 0x53e   :  { %v5618_v55 = vpop.eup %3835  ;;  %v5621_v52 = vadd.f32 1.0, %v3834_v25  ;;  %v2963_v54 = vrot.slane %v2962_v19, 1 }
 0x53f   :  { %v2629_v38 = vmul.f32 1.442695, %v2601_v16  ;;  %v2774_v61 = vmul.f32 %v5618_v55, %v5604_v3  ;;  %v5631_v63 = vpop.eup %3837  ;;  %vm2779_vm3 = vweird.f32 %v5618_v55  ;;  %v2800_v16 = vor.u32 1.1754944e-38, %v2799_v15 }
 0x540   :  { %3841 = vrcp.f32 %v5621_v52  ;;  %v2964_v8 = vadd.f32 %v2963_v54, %v2962_v19  ;;  %v5638_v31 = vpop.eup %3839  ;;  %v2789_v27 = vmul.f32 %v5631_v63, %v5609_v18  ;;  %vm5670_vm6 = vmor %vm2778_vm5, %vm2779_vm3  ;;  %vm2794_vm15 = vweird.f32 %v5631_v63 }
 0x541   :  { %3843 = vpow2.f32 %v2629_v38  ;;  %v2775_v9 = vsub.f32 1.0, %v2774_v61  ;;  %v2804_v10 = vmul.f32 %v5638_v31, %v5611_v4  ;;  %v2814_v19 = vand.u32 2147483648, %v5611_v4  ;;  %vm5705_vm5 = vmor %vm2793_vm7, %vm2794_vm15 }
 0x542   :  { %v3043_v14 = vsel %vm5946_vm14, %v2964_v8, %v3042_v33  ;;  %v2790_v26 = vsub.f32 1.0, %v2789_v27  ;;  %vm2809_vm4 = vweird.f32 %v5638_v31 }
 0x543   :  { %3573 = vmatmul.msk.f32.vlgmr.msra.gmra.mxu1 %vm114_vm1, %v3043_v14  ;;  %v2776_v21 = vmul.f32 %v5618_v55, %v2775_v9  ;;  %v2805_v29 = vsub.f32 1.0, %v2804_v10  ;;  %v2815_v33 = vor.u32 1.1754944e-38, %v2814_v19  ;;  %v2827_v14 = vand.u32 2147483647, %v5621_v52 }
 0x544   :  { %v2580_v1 = vpop.f32.mrf.mxu0  ;;  %v2791_v49 = vmul.f32 %v5631_v63, %v2790_v26 }
 0x545   :  { %v5635_v45 = vadd.f32 %v2580_v1, %v5365_v30  ;;  %v2777_v6 = vadd.f32 %v5618_v55, %v2776_v21  ;;  %v2806_v51 = vmul.f32 %v5638_v31, %v2805_v29 }
 0x546   :  { %v5644_v50 = vpop.eup %3841  ;;  %v2792_v36 = vadd.f32 %v5631_v63, %v2791_v49 }
 0x547   :  { %v2602_v24 = vsub.f32 0.0, %v5635_v45  ;;  %v2819_v44 = vmul.f32 %v5644_v50, %v5621_v52  ;;  %v3844_v17 = vpop.eup %3843  ;;  %v2781_v3 = vsel %vm5670_vm6, %v5618_v55, %v2777_v6  ;;  %v2829_v55 = vand.u32 2147483648, %v5621_v52 }
 0x548   :  { %v5651_v47 = vadd.f32 1.0, %v3844_v17  ;;  %v2807_v54 = vadd.f32 %v5638_v31, %v2806_v51  ;;  %vm2824_vm3 = vweird.f32 %v5644_v50  ;;  %v2786_v61 = vsel %vm5666_vm2, %v2785_v42, %v2781_v3 }
 0x549   :  { %v2631_v0 = vmul.f32 1.442695, %v2602_v24  ;;  %v2820_v34 = vsub.f32 1.0, %v2819_v44  ;;  %vm2808_vm6 = vweird.f32 %v5611_v4  ;;  %vm2823_vm2 = vweird.f32 %v5621_v52 }
 0x54a   :  { %vm5711_vm14 = vmor %vm2808_vm6, %vm2809_vm4  ;;  %v2796_v9 = vsel %vm5705_vm5, %v5631_v63, %v2792_v36  ;;  %v2844_v17 = vand.u32 2147483648, %v5651_v47  ;;  %vm2838_vm4 = vweird.f32 %v5651_v47 }
 0x54b   :  { %3845 = vpow2.f32 %v2631_v0  ;;  %v2821_v53 = vmul.f32 %v5644_v50, %v2820_v34  ;;  %vm5721_vm7 = vmor %vm2823_vm2, %vm2824_vm3  ;;  %v2811_v44 = vsel %vm5711_vm14, %v5638_v31, %v2807_v54  ;;  %v2842_v0 = vand.u32 2147483647, %v5651_v47 }
 0x54c   :  { %v2583_v37 = vpop.f32.mrf.mxu0  ;;  %3847 = vrcp.f32 %v5651_v47  ;;  %v2801_v62 = vsel %vm5681_vm0, %v2800_v16, %v2796_v9  ;;  %vm2828_vm14 = vcmp.eq.f32.partialorder %v2827_v14, 8.507059e+37  ;;  %v2901_v34 = vmul.f32 %v2786_v61, %v5543_v22 }
 0x54d   :  { %v5656_v23 = vadd.f32 %v2583_v37, %v5365_v30  ;;  %v2822_v60 = vadd.f32 %v5644_v50, %v2821_v53  ;;  %v2845_v6 = vor.u32 1.1754944e-38, %v2844_v17  ;;  %vm2843_vm6 = vcmp.eq.f32.partialorder %v2842_v0, 8.507059e+37 }
 0x54e   :  { %v2965_v22 = vsel %vm114_vm1, %v2901_v34, 0.0 }
 0x54f   :  { %v2603_v43 = vsub.f32 0.0, %v5656_v23  ;;  %v2826_v52 = vsel %vm5721_vm7, %v5644_v50, %v2822_v60 }
 0x551   :  { %v2633_v39 = vmul.f32 1.442695, %v2603_v43  ;;  %v3846_v25 = vpop.eup %3845 }
 0x552   :  { %v3848_v46 = vpop.eup %3847  ;;  %v5687_v57 = vadd.f32 1.0, %v3846_v25 }
 0x553   :  { %3849 = vpow2.f32 %v2633_v39  ;;  %v2834_v38 = vmul.f32 %v3848_v46, %v5651_v47  ;;  %vm2839_vm15 = vweird.f32 %v3848_v46  ;;  %v2902_v47 = vmul.f32 %v2801_v62, %v5573_v40 }
 0x554   :  { %v2586_v59 = vpop.f32.mrf.mxu0  ;;  %3851 = vrcp.f32 %v5687_v57  ;;  %vm2840_vm5 = vmor %vm2838_vm4, %vm2839_vm15  ;;  %v2859_v13 = vand.u32 2147483648, %v5687_v57  ;;  %v2857_v35 = vand.u32 2147483647, %v5687_v57  ;;  %vm2853_vm2 = vweird.f32 %v5687_v57 }
 0x555   :  { %v5693_v20 = vadd.f32 %v2586_v59, %v5365_v30  ;;  %v2812_v30 = vand.u32 2147483647, %v5611_v4  ;;  %v2835_v1 = vsub.f32 1.0, %v2834_v38  ;;  %v2830_v4 = vor.u32 1.1754944e-38, %v2829_v55 }
 0x556   :  { %v2860_v2 = vor.u32 1.1754944e-38, %v2859_v13  ;;  %vm2858_vm15 = vcmp.eq.f32.partialorder %v2857_v35, 8.507059e+37  ;;  %v2966_v55 = vrot.slane %v2965_v22, 4 }
 0x557   :  { %v2604_v18 = vsub.f32 0.0, %v5693_v20  ;;  %v2836_v24 = vmul.f32 %v3848_v46, %v2835_v1  ;;  %vm2813_vm3 = vcmp.eq.f32.partialorder %v2812_v30, 8.507059e+37  ;;  %v2831_v50 = vsel %vm2828_vm14, %v2830_v4, %v2826_v52 }
 0x558   :  { %v2816_v31 = vsel %vm2813_vm3, %v2815_v33, %v2811_v44  ;;  %v2904_v49 = vmul.f32 %v2831_v50, %v5601_v7  ;;  %v2972_v7 = vsel %vm114_vm1, %v2902_v47, 0.0  ;;  %v2967_v4 = vadd.f32 %v2966_v55, %v2965_v22 }
 0x559   :  { %v3850_v10 = vpop.eup %3849  ;;  %v2635_v21 = vmul.f32 1.442695, %v2604_v18  ;;  %v2837_v63 = vadd.f32 %v3848_v46, %v2836_v24  ;;  %v2903_v15 = vmul.f32 %v2816_v31, %v5592_v32  ;;  %v2973_v36 = vrot.slane %v2972_v7, 4 }
 0x55a   :  { %v5734_v26 = vadd.f32 1.0, %v3850_v10  ;;  %v3852_v37 = vpop.eup %3851  ;;  %v2986_v3 = vsel %vm114_vm1, %v2904_v49, 0.0  ;;  %v2968_v50 = vrot.slane %v2967_v4, 2 }
 0x55b   :  { %3853 = vpow2.f32 %v2635_v21  ;;  %v2841_v58 = vsel %vm2840_vm5, %v3848_v46, %v2837_v63  ;;  %v2849_v29 = vmul.f32 %v3852_v37, %v5687_v57  ;;  %vm2854_vm0 = vweird.f32 %v3852_v37 }
 0x55c   :  { %3855 = vrcp.f32 %v5734_v26  ;;  %v2846_v43 = vsel %vm2843_vm6, %v2845_v6, %v2841_v58  ;;  %v2979_v25 = vsel %vm114_vm1, %v2903_v15, 0.0  ;;  %vm2855_vm7 = vmor %vm2853_vm2, %vm2854_vm0  ;;  %v2987_v54 = vrot.slane %v2986_v3, 4 }
 0x55d   :  { %v2850_v28 = vsub.f32 1.0, %v2849_v29  ;;  %v2905_v53 = vmul.f32 %v2846_v43, %v5614_v56  ;;  %v2980_v38 = vrot.slane %v2979_v25, 4  ;;  %v2874_v60 = vand.u32 2147483648, %v5734_v26 }
 0x55e   :  { %v2872_v30 = vand.u32 2147483647, %v5734_v26  ;;  %v2974_v33 = vadd.f32 %v2973_v36, %v2972_v7  ;;  %vm2868_vm3 = vweird.f32 %v5734_v26  ;;  %v2988_v24 = vadd.f32 %v2987_v54, %v2986_v3 }
 0x55f   :  { %v2851_v42 = vmul.f32 %v3852_v37, %v2850_v28  ;;  %v2993_v19 = vsel %vm114_vm1, %v2905_v53, 0.0  ;;  %v2875_v9 = vor.u32 1.1754944e-38, %v2874_v60 }
 0x560   :  { %v2994_v1 = vrot.slane %v2993_v19, 4  ;;  %vm2873_vm5 = vcmp.eq.f32.partialorder %v2872_v30, 8.507059e+37  ;;  %v2975_v21 = vrot.slane %v2974_v33, 2  ;;  %v2989_v58 = vrot.slane %v2988_v24, 2 }
 0x561   :  { %v3854_v51 = vpop.eup %3853  ;;  %v2852_v39 = vadd.f32 %v3852_v37, %v2851_v42  ;;  %v2969_v42 = vadd.f32 %v2968_v50, %v2967_v4 }
 0x562   :  { %v5749_v40 = vadd.f32 1.0, %v3854_v51  ;;  %v3856_v32 = vpop.eup %3855  ;;  %v2995_v44 = vadd.f32 %v2994_v1, %v2993_v19  ;;  %v2976_v28 = vadd.f32 %v2975_v21, %v2974_v33  ;;  %v2990_v35 = vadd.f32 %v2989_v58, %v2988_v24  ;;  %v3486_v21 = vld [vmem:[%s5935_s6 + $0xb0] sm:$0xff] }
 0x563   :  { %v2856_v16 = vsel %vm2855_vm7, %v3852_v37, %v2852_v39  ;;  %v2864_v46 = vmul.f32 %v3856_v32, %v5734_v26  ;;  %vm2869_vm4 = vweird.f32 %v3856_v32 }
 0x564   :  { %3857 = vrcp.f32 %v5749_v40  ;;  %v2861_v56 = vsel %vm2858_vm15, %v2860_v2, %v2856_v16  ;;  %vm2870_vm14 = vmor %vm2868_vm3, %vm2869_vm4  ;;  %v2889_v37 = vand.u32 2147483648, %v5749_v40  ;;  %v2887_v31 = vand.u32 2147483647, %v5749_v40 }
 0x565   :  { %v2906_v57 = vmul.f32 %v2861_v56, %v5635_v45  ;;  %v2865_v59 = vsub.f32 1.0, %v2864_v46  ;;  %v2981_v45 = vadd.f32 %v2980_v38, %v2979_v25  ;;  %v2996_v34 = vrot.slane %v2995_v44, 2 }
 0x566   :  { %vm2883_vm0 = vweird.f32 %v5749_v40  ;;  %vm2888_vm7 = vcmp.eq.f32.partialorder %v2887_v31, 8.507059e+37  ;;  %v2970_v2 = vrot.slane %v2969_v42, 1  ;;  %v2991_v16 = vrot.slane %v2990_v35, 1 }
 0x567   :  { %v3000_v61 = vsel %vm114_vm1, %v2906_v57, 0.0  ;;  %v2866_v8 = vmul.f32 %v3856_v32, %v2865_v59  ;;  %v2982_v62 = vrot.slane %v2981_v45, 2  ;;  %v2997_v22 = vadd.f32 %v2996_v34, %v2995_v44  ;;  %v5784_v44 = vld [vmem:[%s5936_s7 + $0x8] sm:$0x1f] }
 0x568   :  { %v3001_v14 = vrot.slane %v3000_v61, 4  ;;  %v2971_v38 = vadd.f32 %v2970_v2, %v2969_v42  ;;  %v2992_v54 = vadd.f32 %v2991_v16, %v2990_v35  ;;  %vm6066_vm15 = vcmask 1047559  }
 0x569   :  { %v2867_v18 = vadd.f32 %v3856_v32, %v2866_v8  ;;  %v2983_v49 = vadd.f32 %v2982_v62, %v2981_v45  ;;  %v2998_v56 = vrot.slane %v2997_v22, 1  ;;  %v3484_v62 = vld [vmem:[%s5935_s6 + $0xa0] sm:$0xff] }
 0x56a   :  { %v3858_v5 = vpop.eup %3857  ;;  %v3002_v63 = vadd.f32 %v3001_v14, %v3000_v61 }
 0x56b   :  { %v2879_v27 = vmul.f32 %v3858_v5, %v5749_v40  ;;  %v2871_v10 = vsel %vm2870_vm14, %v3856_v32, %v2867_v18  ;;  %vm2884_vm6 = vweird.f32 %v3858_v5  ;;  %v2977_v32 = vrot.slane %v2976_v28, 1 }
 0x56c   :  { %v2876_v52 = vsel %vm2873_vm5, %v2875_v9, %v2871_v10  ;;  %v3003_v15 = vrot.slane %v3002_v63, 2  ;;  %vm2885_vm2 = vmor %vm2883_vm0, %vm2884_vm6  ;;  %v2984_v25 = vrot.slane %v2983_v49, 1  ;;  %v2999_v61 = vadd.f32 %v2998_v56, %v2997_v22  ;;  %v3487_v10 = vld [vmem:[%s5935_s6 + $0xb8] sm:$0xff] }
 0x56d   :  { %v2880_v17 = vsub.f32 1.0, %v2879_v27  ;;  %v2907_v0 = vmul.f32 %v2876_v52, %v5656_v23  ;;  %v2890_v23 = vor.u32 1.1754944e-38, %v2889_v37  ;;  %v2978_v36 = vadd.f32 %v2977_v32, %v2976_v28  ;;  %3162 = vmatpush.msrb.mxu1 %v3487_v10 }
 0x56e   :  { %v3004_v7 = vadd.f32 %v3003_v15, %v3002_v63  ;;  %v2985_v59 = vadd.f32 %v2984_v25, %v2983_v49  ;;  %v3101_v52 = vperm.slane %v5784_v44, 3  ;;  %vm3240_vm6 = vcmask 523264  }
 0x56f   :  { %v2881_v26 = vmul.f32 %v3858_v5, %v2880_v17  ;;  %v3007_v29 = vsel %vm114_vm1, %v2907_v0, 0.0  ;;  %3163 = vmatpush.msrb.mxu1 %v3486_v21  ;;  %v3485_v0 = vld [vmem:[%s5935_s6 + $0xa8] sm:$0xff] }
 0x570   :  { %v3008_v6 = vrot.slane %v3007_v29, 4  ;;  %v3005_v19 = vrot.slane %v3004_v7, 1 }
 0x571   :  { %v2882_v47 = vadd.f32 %v3858_v5, %v2881_v26  ;;  %3164 = vmatpush.msrb.mxu1 %v3485_v0 }
 0x572   :  { %v3009_v43 = vadd.f32 %v3008_v6, %v3007_v29  ;;  %v3006_v8 = vadd.f32 %v3005_v19, %v3004_v7 }
 0x573   :  { %v2886_v13 = vsel %vm2885_vm2, %v3858_v5, %v2882_v47  ;;  %3165 = vmatpush.msrb.mxu1 %v3484_v62 }
 0x574   :  { %v2891_v51 = vsel %vm2888_vm7, %v2890_v23, %v2886_v13  ;;  %v3010_v53 = vrot.slane %v3009_v43, 2 }
 0x575   :  { %v2908_v39 = vmul.f32 %v2891_v51, %v5693_v20  ;;  %v3044_v20 = vsel %vm1537_vm8, %v2978_v36, %v2971_v38 }
 0x576   :  { %v3011_v3 = vadd.f32 %v3010_v53, %v3009_v43  ;;  %v3045_v1 = vsel %vm1539_vm9, %v2985_v59, %v3044_v20  ;;  %v3235_v20 = vld [vmem:[%s5937_s8 + $0x38] sm:$0xff] }
 0x577   :  { %v3014_v40 = vsel %vm114_vm1, %v2908_v39, 0.0  ;;  %v3046_v14 = vsel %vm1541_vm10, %v2992_v54, %v3045_v1  ;;  %3252 = vmatpush.msrb.mxu3 %v3235_v20  ;;  %v3233_v1 = vld [vmem:[%s5937_s8 + $0x28] sm:$0xff] }
 0x578   :  { %v3015_v46 = vrot.slane %v3014_v40, 4  ;;  %v3012_v55 = vrot.slane %v3011_v3, 1  ;;  %v3047_v18 = vsel %vm1543_vm11, %v2999_v61, %v3046_v14  ;;  %v3231_v14 = vld [vmem:[%s5937_s8 + $0x18] sm:$0xff]  ;;  %v3270_v20 = vld [vmem:[%s5939_s10 + $0x28] sm:$0xff] }
 0x579   :  { %v3048_v9 = vsel %vm1545_vm12, %v3006_v8, %v3047_v18  ;;  %v3234_v8 = vld [vmem:[%s5937_s8 + $0x30] sm:$0xff] }
 0x57a   :  { %v3016_v57 = vadd.f32 %v3015_v46, %v3014_v40  ;;  %v3013_v5 = vadd.f32 %v3012_v55, %v3011_v3  ;;  %3253 = vmatpush.msrb.mxu3 %v3234_v8  ;;  %v3230_v18 = vld [vmem:[%s5937_s8 + $0x10] sm:$0xff] }
 0x57c   :  { %v3017_v60 = vrot.slane %v3016_v57, 2  ;;  %v3049_v27 = vsel %vm1547_vm13, %v3013_v5, %v3048_v9  ;;  %v3936_v5 = vmov 8.0   ;;  %3254 = vmatpush.msrb.mxu3 %v3233_v1 }
 0x57e   :  { %v3018_v30 = vadd.f32 %v3017_v60, %v3016_v57  ;;  %v3175_v60 = vperm.slane %v5784_v44, 4 }
 0x580   :  { %v3019_v33 = vrot.slane %v3018_v30, 1 }
 0x582   :  { %v3020_v45 = vadd.f32 %v3019_v33, %v3018_v30 }
 0x584   :  { %v3050_v4 = vsel %vm6066_vm15, %v3020_v45, %v3049_v27  ;;  %v3229_v27 = vld [vmem:[%s5937_s8 + $0x8] sm:$0xff] }
 0x585   :  { %3574 = vmatmul.msk.f32.gmra.mxu1 %vm114_vm1, %v3050_v4 }
 0x598   :  { %v3095_v24 = vpop.f32.mrf.mxu3 }
 0x5a0   :  { %v3098_v35 = vpop.f32.mrf.mxu3 }
 0x5c0   :  { %v3072_v17 = vpop.f32.mrf.mxu1 }
 0x5c1   :  { %v3096_v63 = vadd.f32 %v3095_v24, %v3072_v17 }
 0x5c3   :  { %v3102_v37 = vadd.f32 %v3101_v52, %v3096_v63 }
 0x5c5   :  { %v3104_v26 = vsub.f32 0.0, %v3102_v37 }
 0x5c7   :  { %v3106_v31 = vmul.f32 1.442695, %v3104_v26 }
 0x5c9   :  { %3859 = vpow2.f32 %v3106_v31 }
 0x5cf   :  { %v3860_v50 = vpop.eup %3859 }
 0x5d0   :  { %v3110_v58 = vadd.f32 1.0, %v3860_v50 }
 0x5d2   :  { %3861 = vrcp.f32 %v3110_v58  ;;  %v3123_v47 = vand.u32 2147483648, %v3110_v58  ;;  %v3121_v15 = vand.u32 2147483647, %v3110_v58  ;;  %vm3117_vm10 = vweird.f32 %v3110_v58 }
 0x5d4   :  { %v3124_v49 = vor.u32 1.1754944e-38, %v3123_v47  ;;  %vm3122_vm12 = vcmp.eq.f32.partialorder %v3121_v15, 8.507059e+37 }
 0x5d8   :  { %v3862_v29 = vpop.eup %3861 }
 0x5d9   :  { %v3113_v34 = vmul.f32 %v3862_v29, %v3110_v58  ;;  %vm3118_vm9 = vweird.f32 %v3862_v29 }
 0x5da   :  { %vm3119_vm11 = vmor %vm3117_vm10, %vm3118_vm9 }
 0x5db   :  { %v3114_v6 = vsub.f32 1.0, %v3113_v34 }
 0x5dd   :  { %v3115_v28 = vmul.f32 %v3862_v29, %v3114_v6 }
 0x5df   :  { %v3116_v23 = vadd.f32 %v3862_v29, %v3115_v28 }
 0x5e1   :  { %v3120_v43 = vsel %vm3119_vm11, %v3862_v29, %v3116_v23  ;;  %v3907_v23 = vld [vmem:[%s5929_s0 + $0x8] sm:$0xff] }
 0x5e2   :  { %v3125_v13 = vsel %vm3122_vm12, %v3124_v49, %v3120_v43  ;;  %v1681_v49 = vadd.f32 %v3907_v23, %v5131_v11  ;;  %v3908_v43 = vld [vmem:[%s5929_s0] sm:$0xff]  ;;  %v3280_v11 = vld [vmem:[%s5939_s10 + $0x78] sm:$0xff]  ;;  %s3938_s0 = smov [#allocation2]  }
 0x5e3   :  { %v3142_v42 = vmul.f32 %v3125_v13, %v3102_v37  ;;  %v1680_v13 = vadd.f32 %v3908_v43, %v5201_v48  ;;  %v3279_v48 = vld [vmem:[%s5939_s10 + $0x70] sm:$0xff]  ;;  %3285 = vmatpush.msra.mxu1 %v3280_v11  ;;  %s3347_s22 = sshll.u32 %s3938_s0, 4  ;;  %s3348_s22 = int_to_ptr.vmem [resolvable:$true] %s3347_s22 }
 0x5e5   :  { %3577 = vmatmul.msk.f32.vlgmr.msrb.gmra.mxu1 %vm114_vm1, %v3142_v42  ;;  %v3909_v42 = vld [vmem:[%s5936_s7] sm:$0x1f] }
 0x5e6   :  { %3286 = vmatpush.msra.mxu1 %v3279_v48 }
 0x602   :  { %v3075_v51 = vpop.f32.mrf.mxu1 }
 0x603   :  { %v3099_v22 = vadd.f32 %v3098_v35, %v3075_v51  ;;  %v1682_v35 = vperm.slane %v3909_v42, 4 }
 0x605   :  { %v3103_v53 = vadd.f32 %v3101_v52, %v3099_v22  ;;  %v1684_v51 = vadd.f32 %v1682_v35, %v1681_v49  ;;  %v1683_v22 = vadd.f32 %v1682_v35, %v1680_v13 }
 0x607   :  { %v3105_v39 = vsub.f32 0.0, %v3103_v53 }
 0x609   :  { %v3108_v32 = vmul.f32 1.442695, %v3105_v39  ;;  %v3228_v39 = vld [vmem:[%s5937_s8] sm:$0xff] }
 0x60b   :  { %3863 = vpow2.f32 %v3108_v32  ;;  %v3178_v32 = vsel %vm114_vm1, %v1683_v22, 0.0 }
 0x611   :  { %v3864_v7 = vpop.eup %3863 }
 0x612   :  { %v3111_v25 = vadd.f32 1.0, %v3864_v7 }
 0x614   :  { %3865 = vrcp.f32 %v3111_v25  ;;  %v3138_v16 = vand.u32 2147483648, %v3111_v25  ;;  %v3136_v56 = vand.u32 2147483647, %v3111_v25  ;;  %vm3132_vm4 = vweird.f32 %v3111_v25 }
 0x615   :  { %3867 = vrcp.f32 %v3936_v5  ;;  %v3268_v5 = vld [vmem:[%s5939_s10 + $0x18] sm:$0xff] }
 0x616   :  { %v3139_v19 = vor.u32 1.1754944e-38, %v3138_v16  ;;  %vm3137_vm14 = vcmp.eq.f32.partialorder %v3136_v56, 8.507059e+37  ;;  %v3276_v16 = vld [vmem:[%s5939_s10 + $0x58] sm:$0xff]  ;;  %v3275_v56 = vld [vmem:[%s5939_s10 + $0x50] sm:$0xff] }
 0x61a   :  { %v3866_v3 = vpop.eup %3865 }
 0x61b   :  { %v3128_v40 = vmul.f32 %v3866_v3, %v3111_v25  ;;  %vm3133_vm13 = vweird.f32 %v3866_v3  ;;  %v3868_v45 = vpop.eup %3867  ;;  %v3278_v25 = vld [vmem:[%s5939_s10 + $0x68] sm:$0xff] }
 0x61c   :  { %vm3134_vm3 = vmor %vm3132_vm4, %vm3133_vm13  ;;  %v3193_v10 = vmul.f32 8.0, %v3868_v45  ;;  %vm3197_vm5 = vweird.f32 %v3868_v45  ;;  %3287 = vmatpush.msra.mxu1 %v3278_v25 }
 0x61d   :  { %v3129_v2 = vsub.f32 1.0, %v3128_v40  ;;  %v3277_v40 = vld [vmem:[%s5939_s10 + $0x60] sm:$0xff] }
 0x61e   :  { %v3194_v21 = vsub.f32 1.0, %v3193_v10  ;;  %3288 = vmatpush.msra.mxu1 %v3277_v40  ;;  %v3313_v10 = vld [vmem:[%s5941_s12 + $0x38] sm:$0xff] }
 0x61f   :  { %v3130_v46 = vmul.f32 %v3866_v3, %v3129_v2 }
 0x620   :  { %v3195_v62 = vmul.f32 %v3868_v45, %v3194_v21  ;;  %3289 = vmatpush.msra.mxu1 %v3276_v16  ;;  %v3309_v21 = vld [vmem:[%s5941_s12 + $0x18] sm:$0xff] }
 0x621   :  { %v3131_v36 = vadd.f32 %v3866_v3, %v3130_v46 }
 0x622   :  { %v3196_v58 = vadd.f32 %v3868_v45, %v3195_v62  ;;  %3290 = vmatpush.msra.mxu1 %v3275_v56 }
 0x623   :  { %v3135_v57 = vsel %vm3134_vm3, %v3866_v3, %v3131_v36  ;;  %v3179_v3 = vrot.slane %v3178_v32, 4 }
 0x624   :  { %v3140_v59 = vsel %vm3137_vm14, %v3139_v19, %v3135_v57  ;;  %v3274_v19 = vld [vmem:[%s5939_s10 + $0x48] sm:$0xff] }
 0x625   :  { %v3143_v55 = vmul.f32 %v3140_v59, %v3103_v53  ;;  %v3185_v53 = vsel %vm114_vm1, %v1684_v51, 0.0  ;;  %v3180_v46 = vadd.f32 %v3179_v3, %v3178_v32  ;;  %v3273_v59 = vld [vmem:[%s5939_s10 + $0x40] sm:$0xff]  ;;  %3291 = vmatpush.msra.mxu1 %v3274_v19 }
 0x626   :  { %v3186_v7 = vrot.slane %v3185_v53, 4 }
 0x627   :  { %3578 = vmatmul.msk.f32.gmra.mxu1 %vm114_vm1, %v3143_v55  ;;  %v3181_v57 = vrot.slane %v3180_v46, 2 }
 0x628   :  { %v3187_v2 = vadd.f32 %v3186_v7, %v3185_v53  ;;  %3292 = vmatpush.msra.mxu1 %v3273_v59 }
 0x62a   :  { %v3188_v36 = vrot.slane %v3187_v2, 2 }
 0x62c   :  { %v3189_v55 = vadd.f32 %v3188_v36, %v3187_v2 }
 0x662   :  { %v3167_v38 = vpop.f32.mrf.mxu1 }
 0x663   :  { %v3173_v54 = vadd.f32 %v5554_v12, %v3167_v38  ;;  %v3232_v12 = vld [vmem:[%s5937_s8 + $0x20] sm:$0xff]  ;;  %v3272_v38 = vld [vmem:[%s5939_s10 + $0x38] sm:$0xff] }
 0x664   :  { %3255 = vmatpush.msrb.mxu3 %v3232_v12  ;;  %3293 = vmatpush.msra.mxu1 %v3272_v38 }
 0x665   :  { %v3176_v61 = vadd.f32 %v3175_v60, %v3173_v54  ;;  %v3182_v54 = vadd.f32 %v3181_v57, %v3180_v46 }
 0x666   :  { %3256 = vmatpush.msrb.mxu3 %v3231_v14 }
 0x667   :  { %v3201_v30 = vsel %vm114_vm1, %v3176_v61, 0.0  ;;  %v3190_v61 = vrot.slane %v3189_v55, 1  ;;  %v3183_v8 = vrot.slane %v3182_v54, 1 }
 0x668   :  { %v3202_v33 = vrot.slane %v3201_v30, 4  ;;  %3257 = vmatpush.msrb.mxu3 %v3230_v18 }
 0x669   :  { %v3191_v1 = vadd.f32 %v3190_v61, %v3189_v55  ;;  %v3184_v12 = vadd.f32 %v3183_v8, %v3182_v54 }
 0x66a   :  { %v3203_v9 = vadd.f32 %v3202_v33, %v3201_v30  ;;  %3258 = vmatpush.msrb.mxu3 %v3229_v27  ;;  %v3269_v30 = vld [vmem:[%s5939_s10 + $0x20] sm:$0xff]  ;;  %v3267_v27 = vld [vmem:[%s5939_s10 + $0x10] sm:$0xff] }
 0x66c   :  { %v3204_v44 = vrot.slane %v3203_v9, 2  ;;  %3259 = vmatpush.msrb.mxu3 %v3228_v39 }
 0x66e   :  { %v3205_v63 = vadd.f32 %v3204_v44, %v3203_v9  ;;  %v3312_v44 = vld [vmem:[%s5941_s12 + $0x30] sm:$0xff]  ;;  %3329 = vmatpush.msra.mxu3 %v3313_v10 }
 0x670   :  { %v3206_v26 = vrot.slane %v3205_v63, 1  ;;  %3330 = vmatpush.msra.mxu3 %v3312_v44 }
 0x672   :  { %v3207_v34 = vadd.f32 %v3206_v26, %v3205_v63  ;;  %v3592_v63 = vld [vmem:[%s5938_s9] ss:$0 sm:$0xff]  ;;  %v3308_v26 = vld [vmem:[%s5941_s12 + $0x10] sm:$0xff] }
 0x6a4   :  { %v3170_v4 = vpop.f32.mrf.mxu1 }
 0x6a5   :  { %v3174_v24 = vadd.f32 %v5587_v41, %v3170_v4  ;;  %v3198_v41 = vsel %vm3197_vm5, %v3868_v45, %v3196_v58  ;;  %v3266_v4 = vld [vmem:[%s5939_s10 + $0x8] sm:$0xff]  ;;  %v3593_v58 = vld [vmem:[%s5940_s11] ss:$0 sm:$0xff] }
 0x6a6   :  { %v3215_v47 = vmul.f32 %v3207_v34, %v3198_v41  ;;  %v3200_v33 = vmul.f32 %v3198_v41, %v3191_v1  ;;  %v3199_v14 = vmul.f32 %v3198_v41, %v3184_v12 }
 0x6a7   :  { %v3177_v52 = vadd.f32 %v3175_v60, %v3174_v24  ;;  %v3271_v60 = vld [vmem:[%s5939_s10 + $0x30] sm:$0xff]  ;;  %v3265_v24 = vld [vmem:[%s5939_s10] sm:$0xff] }
 0x6a8   :  { %3294 = vmatpush.msra.mxu1 %v3271_v60  ;;  %v3219_v45 = vsel %vm1537_vm8, %v3200_v33, %v3199_v14 }
 0x6a9   :  { %v3208_v17 = vsel %vm114_vm1, %v3177_v52, 0.0  ;;  %v3311_v52 = vld [vmem:[%s5941_s12 + $0x28] sm:$0xff] }
 0x6aa   :  { %v3209_v0 = vrot.slane %v3208_v17, 4  ;;  %3295 = vmatpush.msra.mxu1 %v3270_v20  ;;  %3331 = vmatpush.msra.mxu3 %v3311_v52 }
 0x6ac   :  { %v3210_v37 = vadd.f32 %v3209_v0, %v3208_v17  ;;  %3296 = vmatpush.msra.mxu1 %v3269_v30  ;;  %v3310_v17 = vld [vmem:[%s5941_s12 + $0x20] sm:$0xff] }
 0x6ad   :  { %3332 = vmatpush.msra.mxu3 %v3310_v17 }
 0x6ae   :  { %v3211_v31 = vrot.slane %v3210_v37, 2  ;;  %3297 = vmatpush.msra.mxu1 %v3268_v5 }
 0x6af   :  { %3333 = vmatpush.msra.mxu3 %v3309_v21 }
 0x6b0   :  { %v3212_v50 = vadd.f32 %v3211_v31, %v3210_v37  ;;  %3298 = vmatpush.msra.mxu1 %v3267_v27  ;;  %v3307_v31 = vld [vmem:[%s5941_s12 + $0x8] sm:$0xff] }
 0x6b1   :  { %3334 = vmatpush.msra.mxu3 %v3308_v26 }
 0x6b2   :  { %v3213_v29 = vrot.slane %v3212_v50, 1  ;;  %3299 = vmatpush.msra.mxu1 %v3266_v4 }
 0x6b3   :  { %3335 = vmatpush.msra.mxu3 %v3307_v31 }
 0x6b4   :  { %v3214_v6 = vadd.f32 %v3213_v29, %v3212_v50  ;;  %3300 = vmatpush.msra.mxu1 %v3265_v24  ;;  %v3306_v50 = vld [vmem:[%s5941_s12] sm:$0xff]  ;;  %s3349_s12 = sshll.u32 %s5943_s14, 4  ;;  %s3350_s12 = int_to_ptr.hbm [resolvable:$true] %s3349_s12 }
 0x6b5   :  { %3336 = vmatpush.msra.mxu3 %v3306_v50 }
 0x6b6   :  { %v3216_v28 = vmul.f32 %v3214_v6, %v3198_v41  ;;  %v3594_v41 = vld [vmem:[%s5942_s13] ss:$0 sm:$0xff] }
 0x6b8   :  { %v3223_v15 = vsel %vm1537_vm8, %v3216_v28, %v3215_v47 }
 0x6b9   :  { %3224 = vrot.lane.b32.xlu2 %v3223_v15, %s3937_s15 }
 0x713   :  { %v3225_v18 = vpop.permute.xlu2 %3224 }
 0x714   :  { %v3227_v9 = vsel %vm114_vm1, %v3219_v45, %v3225_v18 }
 0x715   :  { %3579 = vmatmul.msk.f32.vlgmr.msrb.gmra.mxu3 %vm3240_vm6, %v3227_v9 }
 0x798   :  { %v3261_v0 = vpop.f32.mrf.mxu3 }
 0x799   :  { %v3262_v37 = vadd.f32 %v3592_v63, %v3261_v0 }
 0x79b   :  { %v3264_v62 = vmax.f32 %v3262_v37, 0.0 }
 0x79d   :  { %3301 = vmatmul.f32.vlgmr.msra.gmra.mxu1 %v3264_v62 }
 0x81a   :  { %v3302_v29 = vpop.f32.mrf.mxu1 }
 0x81b   :  { %v3303_v34 = vadd.f32 %v3593_v58, %v3302_v29 }
 0x81d   :  { %v3305_v6 = vmax.f32 %v3303_v34, 0.0 }
 0x81f   :  { %3580 = vmatmul.msk.f32.vlgmr.msra.gmra.mxu3 %vm3240_vm6, %v3305_v6 }
 0x8a2   :  { %v3338_v47 = vpop.f32.mrf.mxu3 }
 0x8a3   :  { %v3339_v28 = vadd.f32 %v3594_v41, %v3338_v47 }
 0x8a5   :  { %3341 = vst [vmem:[#allocation2] sm:$0x3] %v3339_v28 }
 0x8a6   :  { %3352 = dma.vmem_to_hbm [thread:$0]  %s3348_s22, 32, %s3350_s12, [#allocation3]  }
 0x8a7   :  { %3934 = dma.done.wait [#allocation3], 32  }
 0x8a8   :  { %3935 = vsyncadd [#allocation3], 4294967264 }
 0x8a9   :  { %3357 = vsyncpa [#allocation3], 1 }

</bundles_post_ra>
